<compile_context>
chip_gen: v7x
topology: tpu7x:2x2x1
jax: 0.10.0
libtpu: 0.0.40
codegen_flags: <defaults>
</compile_context>

<pallas_src>
import jax
import jax.numpy as jnp
from jax.experimental import pallas as pl
from jax.experimental.pallas import tpu as pltpu


# ---------------------------------------------------------------------------
# Fused kernel: whole Bottleneck block for one image per grid step.
# ---------------------------------------------------------------------------

def _bottleneck_fused_kernel(x_ref, w1_ref, b1_ref, w2_ref, b2_ref,
                             w3_ref, b3_ref, o_ref, xp_ref, acc_ref):
    _, H, W, Cin = x_ref.shape          # Cin  = lane-padded inplanes
    P = w1_ref.shape[1]                 # P    = lane-padded planes
    Cout = w3_ref.shape[1]              # Cout = lane-padded planes*expansion == Cin

    # ---- zero only the 1-pixel halo ring (interior is overwritten below) ---
    xp_ref[0:1] = jnp.zeros((1, W + 2, P), xp_ref.dtype)
    xp_ref[H + 1:H + 2] = jnp.zeros((1, W + 2, P), xp_ref.dtype)
    xp_ref[1:H + 1, 0:1, :] = jnp.zeros((H, 1, P), xp_ref.dtype)
    xp_ref[1:H + 1, W + 1:W + 2, :] = jnp.zeros((H, 1, P), xp_ref.dtype)

    # ---- conv1 (1x1, BN scale folded into w1) + bias + relu ----------------
    y1 = jnp.dot(x_ref[0].reshape(H * W, Cin), w1_ref[...],
                 preferred_element_type=jnp.float32)
    t1 = jnp.maximum(y1 + b1_ref[...], 0.0)                  # f32 (HW, P)

    # interior of halo slab, stored in bf16 (lane-dense last dim)
    xp_ref[1:H + 1, 1:W + 1, :] = t1.reshape(H, W, P).astype(xp_ref.dtype)

    # ---- conv2 (3x3, stride 1, pad 1): 9 (HW,P)x(P,P) MXU matmuls ----------
    # Per-tap ref loads bound live ranges; f32 accumulation in VMEM scratch.
    acc_ref[...] = jnp.zeros_like(acc_ref)
    for ky in range(3):
        for kx in range(3):
            tap = xp_ref[ky:ky + H, kx:kx + W, :].reshape(H * W, P)   # bf16
            acc_ref[...] += jnp.dot(tap, w2_ref[ky, kx],
                                    preferred_element_type=jnp.float32)
    t2 = jnp.maximum(acc_ref[...] + b2_ref[...], 0.0)         # f32 (HW, P)

    # ---- conv3 (1x1) + bias + identity residual + relu ---------------------
    y3 = jnp.dot(t2.astype(jnp.bfloat16), w3_ref[...],
                 preferred_element_type=jnp.float32)
    res = x_ref[0].reshape(H * W, Cin).astype(jnp.float32)    # re-read here
    out = jnp.maximum(y3 + b3_ref[...] + res, 0.0)
    o_ref[0] = out.reshape(H, W, Cout).astype(o_ref.dtype)    # unmasked vst


# ---------------------------------------------------------------------------
# Wrapper: layout conversion, channel padding, BN folding, BlockSpecs.
# ---------------------------------------------------------------------------

def _round_up(c, m=128):
    return ((c + m - 1) // m) * m


def _bn_fold(bn, eps=1e-5):
    gamma, beta, mean, var = bn
    scale = gamma / jnp.sqrt(var + eps)
    bias = beta - mean * scale
    return scale.astype(jnp.float32), bias.astype(jnp.float32)


def bottleneck_forward(x_nchw, params):
    """Bottleneck.forward defaults: stride=1, cardinality=1, no SE/downsample."""
    n, cin, h, w = x_nchw.shape
    planes = params["w1"].shape[0]
    cout = params["w3"].shape[0]
    assert cin == cout, "identity residual requires inplanes == planes*expansion"

    cin_p, p_p, cout_p = _round_up(cin), _round_up(planes), _round_up(cout)
    assert cin_p == cout_p

    s1, b1 = _bn_fold(params["bn1"])
    s2, b2 = _bn_fold(params["bn2"])
    s3, b3 = _bn_fold(params["bn3"])

    # NCHW -> NHWC, pad channels to a lane-dense multiple of 128, bf16.
    x = jnp.transpose(x_nchw, (0, 2, 3, 1))
    x = jnp.pad(x, ((0, 0), (0, 0), (0, 0), (0, cin_p - cin))).astype(jnp.bfloat16)

    # PyTorch OIHW -> matmul layouts; BN scale folded in; zero-padded; bf16.
    w1 = jnp.transpose(params["w1"][:, :, 0, 0], (1, 0)) * s1[None, :]      # (cin, planes)
    w1 = jnp.pad(w1, ((0, cin_p - cin), (0, p_p - planes))).astype(jnp.bfloat16)
    w2 = jnp.transpose(params["w2"], (2, 3, 1, 0)) * s2[None, None, None, :]  # (3,3,in,out)
    w2 = jnp.pad(w2, ((0, 0), (0, 0), (0, p_p - planes),
                      (0, p_p - planes))).astype(jnp.bfloat16)
    w3 = jnp.transpose(params["w3"][:, :, 0, 0], (1, 0)) * s3[None, :]      # (planes, cout)
    w3 = jnp.pad(w3, ((0, p_p - planes), (0, cout_p - cout))).astype(jnp.bfloat16)

    b1p = jnp.pad(b1, (0, p_p - planes)).reshape(1, p_p)
    b2p = jnp.pad(b2, (0, p_p - planes)).reshape(1, p_p)
    b3p = jnp.pad(b3, (0, cout_p - cout)).reshape(1, cout_p)

    out_p = pl.pallas_call(
        _bottleneck_fused_kernel,
        out_shape=jax.ShapeDtypeStruct((n, h, w, cout_p), jnp.bfloat16),
        grid=(n,),
        in_specs=[
            pl.BlockSpec((1, h, w, cin_p), lambda i: (i, 0, 0, 0)),        # x
            pl.BlockSpec((cin_p, p_p), lambda i: (0, 0)),                  # w1*s1
            pl.BlockSpec((1, p_p), lambda i: (0, 0)),                      # b1
            pl.BlockSpec((3, 3, p_p, p_p), lambda i: (0, 0, 0, 0)),        # w2*s2
            pl.BlockSpec((1, p_p), lambda i: (0, 0)),                      # b2
            pl.BlockSpec((p_p, cout_p), lambda i: (0, 0)),                 # w3*s3
            pl.BlockSpec((1, cout_p), lambda i: (0, 0)),                   # b3
        ],
        out_specs=pl.BlockSpec((1, h, w, cout_p), lambda i: (i, 0, 0, 0)),
        scratch_shapes=[
            pltpu.VMEM((h + 2, w + 2, p_p), jnp.bfloat16),   # 1-pixel halo slab
            pltpu.VMEM((h * w, p_p), jnp.float32),           # conv2 accumulator
        ],
        compiler_params=pltpu.CompilerParams(
            dimension_semantics=("parallel",)),
    )(x, w1, b1p, w2, b2p, w3, b3p)

    # Drop channel padding, NHWC -> NCHW, back to the module's f32 I/O dtype.
    return jnp.transpose(out_p[..., :cout], (0, 3, 1, 2)).astype(jnp.float32)


# ---------------------------------------------------------------------------
# Pure-JAX f32 reference (independent: lax.conv_general_dilated)
# ---------------------------------------------------------------------------

def bottleneck_reference(x_nchw, params, eps=1e-5):
    x = jnp.transpose(x_nchw, (0, 2, 3, 1)).astype(jnp.float32)

    def conv(a, w_oihw, padding):
        w_hwio = jnp.transpose(w_oihw, (2, 3, 1, 0)).astype(jnp.float32)
        return jax.lax.conv_general_dilated(
            a, w_hwio, window_strides=(1, 1), padding=padding,
            dimension_numbers=("NHWC", "HWIO", "NHWC"))

    def bn(a, p):
        g, b, m, v = p
        return (a - m) * (g / jnp.sqrt(v + eps)) + b

    out = jax.nn.relu(bn(conv(x, params["w1"], "VALID"), params["bn1"]))
    out = jax.nn.relu(bn(conv(out, params["w2"], ((1, 1), (1, 1))), params["bn2"]))
    out = bn(conv(out, params["w3"], "VALID"), params["bn3"]) + x
    return jnp.transpose(jax.nn.relu(out), (0, 3, 1, 2))


# ---------------------------------------------------------------------------
# Deterministic synthetic parameters (PyTorch layouts: OIHW + BN tuples)
# ---------------------------------------------------------------------------

def init_params(key, inplanes, planes, expansion):
    ks = jax.random.split(key, 6)
    outp = planes * expansion
    w1 = jax.random.normal(ks[0], (planes, inplanes, 1, 1), jnp.float32) * 0.1
    w2 = jax.random.normal(ks[1], (planes, planes, 3, 3), jnp.float32) * 0.1
    w3 = jax.random.normal(ks[2], (outp, planes, 1, 1), jnp.float32) * 0.1

    def bn(k, c):
        k1, k2, k3, k4 = jax.random.split(k, 4)
        gamma = 1.0 + 0.1 * jax.random.normal(k1, (c,), jnp.float32)
        beta = 0.1 * jax.random.normal(k2, (c,), jnp.float32)
        mean = 0.1 * jax.random.normal(k3, (c,), jnp.float32)
        var = 1.0 + 0.1 * jnp.abs(jax.random.normal(k4, (c,), jnp.float32))
        return (gamma, beta, mean, var)

    return dict(w1=w1, bn1=bn(ks[3], planes),
                w2=w2, bn2=bn(ks[4], planes),
                w3=w3, bn3=bn(ks[5], outp))


if __name__ == "__main__":
    key = jax.random.PRNGKey(0)
    kx, kp = jax.random.split(key)

    inplanes, planes, expansion = 32, 8, 4   # inplanes == planes * expansion
    batch, spatial = 2, 16

    x = jax.random.normal(kx, (batch, inplanes, spatial, spatial), jnp.float32)
    params = init_params(kp, inplanes, planes, expansion)

    out = jax.jit(bottleneck_forward)(x, params)
    jax.block_until_ready(out)

    assert out.shape == (batch, inplanes, spatial, spatial)
    assert bool(jnp.all(out >= 0.0))                     # final ReLU

    ref = bottleneck_reference(x, params)                # f32 reference
    max_err = float(jnp.max(jnp.abs(out - ref)))
    assert max_err < 0.2, f"mismatch vs f32 reference: max_err={max_err}"

    print("KERNEL_OK")
</pallas_src>

<mosaic_0001>
module attributes {stable_mosaic.version = 11 : i64} {
  func.func @_bottleneck_fused_kernel(%arg0: i32, %arg1: memref<1x16x16x128xbf16, #tpu.memory_space<vmem>>, %arg2: memref<128x128xbf16, #tpu.memory_space<vmem>>, %arg3: memref<1x128xf32, #tpu.memory_space<vmem>>, %arg4: memref<3x3x128x128xbf16, #tpu.memory_space<vmem>>, %arg5: memref<1x128xf32, #tpu.memory_space<vmem>>, %arg6: memref<128x128xbf16, #tpu.memory_space<vmem>>, %arg7: memref<1x128xf32, #tpu.memory_space<vmem>>, %arg8: memref<1x16x16x128xbf16, #tpu.memory_space<vmem>>, %arg9: memref<18x18x128xbf16, #tpu.memory_space<vmem>>, %arg10: memref<256x128xf32, #tpu.memory_space<vmem>>) attributes {dimension_semantics = [#tpu.dimension_semantics<parallel>], iteration_bounds = array<i64: 2>, scalar_prefetch = 0 : i64, scratch_operands = 2 : i64, tpu.core_type = #tpu.core_type<tc>, window_params = [{transform_indices = @transform_0, window_bounds = array<i64: 1, 16, 16, 128>}, {pipeline_mode = #tpu.pipeline_mode<synchronous>, transform_indices = @transform_1, window_bounds = array<i64: 128, 128>}, {pipeline_mode = #tpu.pipeline_mode<synchronous>, transform_indices = @transform_2, window_bounds = array<i64: 1, 128>}, {pipeline_mode = #tpu.pipeline_mode<synchronous>, transform_indices = @transform_3, window_bounds = array<i64: 3, 3, 128, 128>}, {pipeline_mode = #tpu.pipeline_mode<synchronous>, transform_indices = @transform_4, window_bounds = array<i64: 1, 128>}, {pipeline_mode = #tpu.pipeline_mode<synchronous>, transform_indices = @transform_5, window_bounds = array<i64: 128, 128>}, {pipeline_mode = #tpu.pipeline_mode<synchronous>, transform_indices = @transform_6, window_bounds = array<i64: 1, 128>}, {transform_indices = @transform_7, window_bounds = array<i64: 1, 16, 16, 128>}]} {
    %cst = arith.constant 0.000000e+00 : bf16
    %0 = vector.broadcast %cst : bf16 to vector<1x18x128xbf16>
    %c0 = arith.constant 0 : index
    %c0_0 = arith.constant 0 : index
    %c0_1 = arith.constant 0 : index
    %1 = vector.load %arg9[%c0, %c0_0, %c0_1] : memref<18x18x128xbf16, #tpu.memory_space<vmem>>, vector<1x18x128xbf16>
    tpu.vector_store %arg9[%c0, %c0_0, %c0_1], %0 {strides = array<i32>} : memref<18x18x128xbf16, #tpu.memory_space<vmem>>, vector<1x18x128xbf16>,
    %cst_2 = arith.constant 0.000000e+00 : bf16
    %2 = vector.broadcast %cst_2 : bf16 to vector<1x18x128xbf16>
    %c17 = arith.constant 17 : index
    %c0_3 = arith.constant 0 : index
    %c0_4 = arith.constant 0 : index
    %3 = vector.load %arg9[%c17, %c0_3, %c0_4] : memref<18x18x128xbf16, #tpu.memory_space<vmem>>, vector<1x18x128xbf16>
    tpu.vector_store %arg9[%c17, %c0_3, %c0_4], %2 {strides = array<i32>} : memref<18x18x128xbf16, #tpu.memory_space<vmem>>, vector<1x18x128xbf16>,
    %cst_5 = arith.constant 0.000000e+00 : bf16
    %4 = vector.broadcast %cst_5 : bf16 to vector<16x1x128xbf16>
    %c1 = arith.constant 1 : index
    %c0_6 = arith.constant 0 : index
    %c0_7 = arith.constant 0 : index
    %5 = vector.load %arg9[%c1, %c0_6, %c0_7] : memref<18x18x128xbf16, #tpu.memory_space<vmem>>, vector<16x1x128xbf16>
    tpu.vector_store %arg9[%c1, %c0_6, %c0_7], %4 {strides = array<i32>} : memref<18x18x128xbf16, #tpu.memory_space<vmem>>, vector<16x1x128xbf16>,
    %cst_8 = arith.constant 0.000000e+00 : bf16
    %6 = vector.broadcast %cst_8 : bf16 to vector<16x1x128xbf16>
    %c1_9 = arith.constant 1 : index
    %c17_10 = arith.constant 17 : index
    %c0_11 = arith.constant 0 : index
    %7 = vector.load %arg9[%c1_9, %c17_10, %c0_11] : memref<18x18x128xbf16, #tpu.memory_space<vmem>>, vector<16x1x128xbf16>
    tpu.vector_store %arg9[%c1_9, %c17_10, %c0_11], %6 {strides = array<i32>} : memref<18x18x128xbf16, #tpu.memory_space<vmem>>, vector<16x1x128xbf16>,
    %c0_12 = arith.constant 0 : index
    %c0_13 = arith.constant 0 : index
    %c0_14 = arith.constant 0 : index
    %c0_15 = arith.constant 0 : index
    %8 = vector.load %arg1[%c0_12, %c0_13, %c0_14, %c0_15] : memref<1x16x16x128xbf16, #tpu.memory_space<vmem>>, vector<1x16x16x128xbf16>
    %9 = vector.shape_cast %8 : vector<1x16x16x128xbf16> to vector<16x16x128xbf16>
    %10 = vector.shape_cast %9 : vector<16x16x128xbf16> to vector<256x128xbf16>
    %c0_16 = arith.constant 0 : index
    %c0_17 = arith.constant 0 : index
    %11 = vector.load %arg2[%c0_16, %c0_17] : memref<128x128xbf16, #tpu.memory_space<vmem>>, vector<128x128xbf16>
    %cst_18 = arith.constant dense<0.000000e+00> : vector<256x128xf32>
    %12 = tpu.matmul %10, %11, %cst_18 {dimension_numbers = #tpu.dot_dimension_numbers<[1], [0], [0], [1], [0, 0, 1, 1], [], []>} : vector<256x128xbf16>, vector<128x128xbf16>, vector<256x128xf32> -> vector<256x128xf32>
    %c0_19 = arith.constant 0 : index
    %c0_20 = arith.constant 0 : index
    %13 = vector.load %arg3[%c0_19, %c0_20] : memref<1x128xf32, #tpu.memory_space<vmem>>, vector<1x128xf32>
    %14 = vector.broadcast %13 : vector<1x128xf32> to vector<256x128xf32>
    %15 = arith.addf %12, %14 : vector<256x128xf32>
    %cst_21 = arith.constant 0.000000e+00 : f32
    %16 = vector.broadcast %cst_21 : f32 to vector<256x128xf32>
    %17 = arith.maximumf %15, %16 : vector<256x128xf32>
    %18 = vector.shape_cast %17 : vector<256x128xf32> to vector<16x16x128xf32>
    %19 = arith.truncf %18 : vector<16x16x128xf32> to vector<16x16x128xbf16>
    %c1_22 = arith.constant 1 : index
    %c1_23 = arith.constant 1 : index
    %c0_24 = arith.constant 0 : index
    %20 = vector.load %arg9[%c1_22, %c1_23, %c0_24] : memref<18x18x128xbf16, #tpu.memory_space<vmem>>, vector<16x16x128xbf16>
    tpu.vector_store %arg9[%c1_22, %c1_23, %c0_24], %19 {strides = array<i32>} : memref<18x18x128xbf16, #tpu.memory_space<vmem>>, vector<16x16x128xbf16>,
    %cst_25 = arith.constant 0.000000e+00 : f32
    %21 = vector.broadcast %cst_25 : f32 to vector<256x128xf32>
    %c0_26 = arith.constant 0 : index
    %c0_27 = arith.constant 0 : index
    %22 = vector.load %arg10[%c0_26, %c0_27] : memref<256x128xf32, #tpu.memory_space<vmem>>, vector<256x128xf32>
    tpu.vector_store %arg10[%c0_26, %c0_27], %21 {strides = array<i32>} : memref<256x128xf32, #tpu.memory_space<vmem>>, vector<256x128xf32>,
    %c0_28 = arith.constant 0 : index
    %c0_29 = arith.constant 0 : index
    %c0_30 = arith.constant 0 : index
    %23 = vector.load %arg9[%c0_28, %c0_29, %c0_30] : memref<18x18x128xbf16, #tpu.memory_space<vmem>>, vector<16x16x128xbf16>
    %24 = vector.shape_cast %23 : vector<16x16x128xbf16> to vector<256x128xbf16>
    %c0_31 = arith.constant 0 : index
    %c0_32 = arith.constant 0 : index
    %25 = vector.load %arg10[%c0_31, %c0_32] : memref<256x128xf32, #tpu.memory_space<vmem>>, vector<256x128xf32>
    %c0_33 = arith.constant 0 : index
    %c0_34 = arith.constant 0 : index
    %c0_35 = arith.constant 0 : index
    %c0_36 = arith.constant 0 : index
    %26 = vector.load %arg4[%c0_33, %c0_34, %c0_35, %c0_36] : memref<3x3x128x128xbf16, #tpu.memory_space<vmem>>, vector<1x1x128x128xbf16>
    %27 = vector.shape_cast %26 : vector<1x1x128x128xbf16> to vector<128x128xbf16>
    %cst_37 = arith.constant dense<0.000000e+00> : vector<256x128xf32>
    %28 = tpu.matmul %24, %27, %cst_37 {dimension_numbers = #tpu.dot_dimension_numbers<[1], [0], [0], [1], [0, 0, 1, 1], [], []>} : vector<256x128xbf16>, vector<128x128xbf16>, vector<256x128xf32> -> vector<256x128xf32>
    %29 = arith.addf %25, %28 : vector<256x128xf32>
    %c0_38 = arith.constant 0 : index
    %c0_39 = arith.constant 0 : index
    %30 = vector.load %arg10[%c0_38, %c0_39] : memref<256x128xf32, #tpu.memory_space<vmem>>, vector<256x128xf32>
    tpu.vector_store %arg10[%c0_38, %c0_39], %29 {strides = array<i32>} : memref<256x128xf32, #tpu.memory_space<vmem>>, vector<256x128xf32>,
    %c0_40 = arith.constant 0 : index
    %c1_41 = arith.constant 1 : index
    %c0_42 = arith.constant 0 : index
    %31 = vector.load %arg9[%c0_40, %c1_41, %c0_42] : memref<18x18x128xbf16, #tpu.memory_space<vmem>>, vector<16x16x128xbf16>
    %32 = vector.shape_cast %31 : vector<16x16x128xbf16> to vector<256x128xbf16>
    %c0_43 = arith.constant 0 : index
    %c0_44 = arith.constant 0 : index
    %33 = vector.load %arg10[%c0_43, %c0_44] : memref<256x128xf32, #tpu.memory_space<vmem>>, vector<256x128xf32>
    %c0_45 = arith.constant 0 : index
    %c1_46 = arith.constant 1 : index
    %c0_47 = arith.constant 0 : index
    %c0_48 = arith.constant 0 : index
    %34 = vector.load %arg4[%c0_45, %c1_46, %c0_47, %c0_48] : memref<3x3x128x128xbf16, #tpu.memory_space<vmem>>, vector<1x1x128x128xbf16>
    %35 = vector.shape_cast %34 : vector<1x1x128x128xbf16> to vector<128x128xbf16>
    %cst_49 = arith.constant dense<0.000000e+00> : vector<256x128xf32>
    %36 = tpu.matmul %32, %35, %cst_49 {dimension_numbers = #tpu.dot_dimension_numbers<[1], [0], [0], [1], [0, 0, 1, 1], [], []>} : vector<256x128xbf16>, vector<128x128xbf16>, vector<256x128xf32> -> vector<256x128xf32>
    %37 = arith.addf %33, %36 : vector<256x128xf32>
    %c0_50 = arith.constant 0 : index
    %c0_51 = arith.constant 0 : index
    %38 = vector.load %arg10[%c0_50, %c0_51] : memref<256x128xf32, #tpu.memory_space<vmem>>, vector<256x128xf32>
    tpu.vector_store %arg10[%c0_50, %c0_51], %37 {strides = array<i32>} : memref<256x128xf32, #tpu.memory_space<vmem>>, vector<256x128xf32>,
    %c0_52 = arith.constant 0 : index
    %c2 = arith.constant 2 : index
    %c0_53 = arith.constant 0 : index
    %39 = vector.load %arg9[%c0_52, %c2, %c0_53] : memref<18x18x128xbf16, #tpu.memory_space<vmem>>, vector<16x16x128xbf16>
    %40 = vector.shape_cast %39 : vector<16x16x128xbf16> to vector<256x128xbf16>
    %c0_54 = arith.constant 0 : index
    %c0_55 = arith.constant 0 : index
    %41 = vector.load %arg10[%c0_54, %c0_55] : memref<256x128xf32, #tpu.memory_space<vmem>>, vector<256x128xf32>
    %c0_56 = arith.constant 0 : index
    %c2_57 = arith.constant 2 : index
    %c0_58 = arith.constant 0 : index
    %c0_59 = arith.constant 0 : index
    %42 = vector.load %arg4[%c0_56, %c2_57, %c0_58, %c0_59] : memref<3x3x128x128xbf16, #tpu.memory_space<vmem>>, vector<1x1x128x128xbf16>
    %43 = vector.shape_cast %42 : vector<1x1x128x128xbf16> to vector<128x128xbf16>
    %cst_60 = arith.constant dense<0.000000e+00> : vector<256x128xf32>
    %44 = tpu.matmul %40, %43, %cst_60 {dimension_numbers = #tpu.dot_dimension_numbers<[1], [0], [0], [1], [0, 0, 1, 1], [], []>} : vector<256x128xbf16>, vector<128x128xbf16>, vector<256x128xf32> -> vector<256x128xf32>
    %45 = arith.addf %41, %44 : vector<256x128xf32>
    %c0_61 = arith.constant 0 : index
    %c0_62 = arith.constant 0 : index
    %46 = vector.load %arg10[%c0_61, %c0_62] : memref<256x128xf32, #tpu.memory_space<vmem>>, vector<256x128xf32>
    tpu.vector_store %arg10[%c0_61, %c0_62], %45 {strides = array<i32>} : memref<256x128xf32, #tpu.memory_space<vmem>>, vector<256x128xf32>,
    %c1_63 = arith.constant 1 : index
    %c0_64 = arith.constant 0 : index
    %c0_65 = arith.constant 0 : index
    %47 = vector.load %arg9[%c1_63, %c0_64, %c0_65] : memref<18x18x128xbf16, #tpu.memory_space<vmem>>, vector<16x16x128xbf16>
    %48 = vector.shape_cast %47 : vector<16x16x128xbf16> to vector<256x128xbf16>
    %c0_66 = arith.constant 0 : index
    %c0_67 = arith.constant 0 : index
    %49 = vector.load %arg10[%c0_66, %c0_67] : memref<256x128xf32, #tpu.memory_space<vmem>>, vector<256x128xf32>
    %c1_68 = arith.constant 1 : index
    %c0_69 = arith.constant 0 : index
    %c0_70 = arith.constant 0 : index
    %c0_71 = arith.constant 0 : index
    %50 = vector.load %arg4[%c1_68, %c0_69, %c0_70, %c0_71] : memref<3x3x128x128xbf16, #tpu.memory_space<vmem>>, vector<1x1x128x128xbf16>
    %51 = vector.shape_cast %50 : vector<1x1x128x128xbf16> to vector<128x128xbf16>
    %cst_72 = arith.constant dense<0.000000e+00> : vector<256x128xf32>
    %52 = tpu.matmul %48, %51, %cst_72 {dimension_numbers = #tpu.dot_dimension_numbers<[1], [0], [0], [1], [0, 0, 1, 1], [], []>} : vector<256x128xbf16>, vector<128x128xbf16>, vector<256x128xf32> -> vector<256x128xf32>
    %53 = arith.addf %49, %52 : vector<256x128xf32>
    %c0_73 = arith.constant 0 : index
    %c0_74 = arith.constant 0 : index
    %54 = vector.load %arg10[%c0_73, %c0_74] : memref<256x128xf32, #tpu.memory_space<vmem>>, vector<256x128xf32>
    tpu.vector_store %arg10[%c0_73, %c0_74], %53 {strides = array<i32>} : memref<256x128xf32, #tpu.memory_space<vmem>>, vector<256x128xf32>,
    %c1_75 = arith.constant 1 : index
    %c1_76 = arith.constant 1 : index
    %c0_77 = arith.constant 0 : index
    %55 = vector.load %arg9[%c1_75, %c1_76, %c0_77] : memref<18x18x128xbf16, #tpu.memory_space<vmem>>, vector<16x16x128xbf16>
    %56 = vector.shape_cast %55 : vector<16x16x128xbf16> to vector<256x128xbf16>
    %c0_78 = arith.constant 0 : index
    %c0_79 = arith.constant 0 : index
    %57 = vector.load %arg10[%c0_78, %c0_79] : memref<256x128xf32, #tpu.memory_space<vmem>>, vector<256x128xf32>
    %c1_80 = arith.constant 1 : index
    %c1_81 = arith.constant 1 : index
    %c0_82 = arith.constant 0 : index
    %c0_83 = arith.constant 0 : index
    %58 = vector.load %arg4[%c1_80, %c1_81, %c0_82, %c0_83] : memref<3x3x128x128xbf16, #tpu.memory_space<vmem>>, vector<1x1x128x128xbf16>
    %59 = vector.shape_cast %58 : vector<1x1x128x128xbf16> to vector<128x128xbf16>
    %cst_84 = arith.constant dense<0.000000e+00> : vector<256x128xf32>
    %60 = tpu.matmul %56, %59, %cst_84 {dimension_numbers = #tpu.dot_dimension_numbers<[1], [0], [0], [1], [0, 0, 1, 1], [], []>} : vector<256x128xbf16>, vector<128x128xbf16>, vector<256x128xf32> -> vector<256x128xf32>
    %61 = arith.addf %57, %60 : vector<256x128xf32>
    %c0_85 = arith.constant 0 : index
    %c0_86 = arith.constant 0 : index
    %62 = vector.load %arg10[%c0_85, %c0_86] : memref<256x128xf32, #tpu.memory_space<vmem>>, vector<256x128xf32>
    tpu.vector_store %arg10[%c0_85, %c0_86], %61 {strides = array<i32>} : memref<256x128xf32, #tpu.memory_space<vmem>>, vector<256x128xf32>,
    %c1_87 = arith.constant 1 : index
    %c2_88 = arith.constant 2 : index
    %c0_89 = arith.constant 0 : index
    %63 = vector.load %arg9[%c1_87, %c2_88, %c0_89] : memref<18x18x128xbf16, #tpu.memory_space<vmem>>, vector<16x16x128xbf16>
    %64 = vector.shape_cast %63 : vector<16x16x128xbf16> to vector<256x128xbf16>
    %c0_90 = arith.constant 0 : index
    %c0_91 = arith.constant 0 : index
    %65 = vector.load %arg10[%c0_90, %c0_91] : memref<256x128xf32, #tpu.memory_space<vmem>>, vector<256x128xf32>
    %c1_92 = arith.constant 1 : index
    %c2_93 = arith.constant 2 : index
    %c0_94 = arith.constant 0 : index
    %c0_95 = arith.constant 0 : index
    %66 = vector.load %arg4[%c1_92, %c2_93, %c0_94, %c0_95] : memref<3x3x128x128xbf16, #tpu.memory_space<vmem>>, vector<1x1x128x128xbf16>
    %67 = vector.shape_cast %66 : vector<1x1x128x128xbf16> to vector<128x128xbf16>
    %cst_96 = arith.constant dense<0.000000e+00> : vector<256x128xf32>
    %68 = tpu.matmul %64, %67, %cst_96 {dimension_numbers = #tpu.dot_dimension_numbers<[1], [0], [0], [1], [0, 0, 1, 1], [], []>} : vector<256x128xbf16>, vector<128x128xbf16>, vector<256x128xf32> -> vector<256x128xf32>
    %69 = arith.addf %65, %68 : vector<256x128xf32>
    %c0_97 = arith.constant 0 : index
    %c0_98 = arith.constant 0 : index
    %70 = vector.load %arg10[%c0_97, %c0_98] : memref<256x128xf32, #tpu.memory_space<vmem>>, vector<256x128xf32>
    tpu.vector_store %arg10[%c0_97, %c0_98], %69 {strides = array<i32>} : memref<256x128xf32, #tpu.memory_space<vmem>>, vector<256x128xf32>,
    %c2_99 = arith.constant 2 : index
    %c0_100 = arith.constant 0 : index
    %c0_101 = arith.constant 0 : index
    %71 = vector.load %arg9[%c2_99, %c0_100, %c0_101] : memref<18x18x128xbf16, #tpu.memory_space<vmem>>, vector<16x16x128xbf16>
    %72 = vector.shape_cast %71 : vector<16x16x128xbf16> to vector<256x128xbf16>
    %c0_102 = arith.constant 0 : index
    %c0_103 = arith.constant 0 : index
    %73 = vector.load %arg10[%c0_102, %c0_103] : memref<256x128xf32, #tpu.memory_space<vmem>>, vector<256x128xf32>
    %c2_104 = arith.constant 2 : index
    %c0_105 = arith.constant 0 : index
    %c0_106 = arith.constant 0 : index
    %c0_107 = arith.constant 0 : index
    %74 = vector.load %arg4[%c2_104, %c0_105, %c0_106, %c0_107] : memref<3x3x128x128xbf16, #tpu.memory_space<vmem>>, vector<1x1x128x128xbf16>
    %75 = vector.shape_cast %74 : vector<1x1x128x128xbf16> to vector<128x128xbf16>
    %cst_108 = arith.constant dense<0.000000e+00> : vector<256x128xf32>
    %76 = tpu.matmul %72, %75, %cst_108 {dimension_numbers = #tpu.dot_dimension_numbers<[1], [0], [0], [1], [0, 0, 1, 1], [], []>} : vector<256x128xbf16>, vector<128x128xbf16>, vector<256x128xf32> -> vector<256x128xf32>
    %77 = arith.addf %73, %76 : vector<256x128xf32>
    %c0_109 = arith.constant 0 : index
    %c0_110 = arith.constant 0 : index
    %78 = vector.load %arg10[%c0_109, %c0_110] : memref<256x128xf32, #tpu.memory_space<vmem>>, vector<256x128xf32>
    tpu.vector_store %arg10[%c0_109, %c0_110], %77 {strides = array<i32>} : memref<256x128xf32, #tpu.memory_space<vmem>>, vector<256x128xf32>,
    %c2_111 = arith.constant 2 : index
    %c1_112 = arith.constant 1 : index
    %c0_113 = arith.constant 0 : index
    %79 = vector.load %arg9[%c2_111, %c1_112, %c0_113] : memref<18x18x128xbf16, #tpu.memory_space<vmem>>, vector<16x16x128xbf16>
    %80 = vector.shape_cast %79 : vector<16x16x128xbf16> to vector<256x128xbf16>
    %c0_114 = arith.constant 0 : index
    %c0_115 = arith.constant 0 : index
    %81 = vector.load %arg10[%c0_114, %c0_115] : memref<256x128xf32, #tpu.memory_space<vmem>>, vector<256x128xf32>
    %c2_116 = arith.constant 2 : index
    %c1_117 = arith.constant 1 : index
    %c0_118 = arith.constant 0 : index
    %c0_119 = arith.constant 0 : index
    %82 = vector.load %arg4[%c2_116, %c1_117, %c0_118, %c0_119] : memref<3x3x128x128xbf16, #tpu.memory_space<vmem>>, vector<1x1x128x128xbf16>
    %83 = vector.shape_cast %82 : vector<1x1x128x128xbf16> to vector<128x128xbf16>
    %cst_120 = arith.constant dense<0.000000e+00> : vector<256x128xf32>
    %84 = tpu.matmul %80, %83, %cst_120 {dimension_numbers = #tpu.dot_dimension_numbers<[1], [0], [0], [1], [0, 0, 1, 1], [], []>} : vector<256x128xbf16>, vector<128x128xbf16>, vector<256x128xf32> -> vector<256x128xf32>
    %85 = arith.addf %81, %84 : vector<256x128xf32>
    %c0_121 = arith.constant 0 : index
    %c0_122 = arith.constant 0 : index
    %86 = vector.load %arg10[%c0_121, %c0_122] : memref<256x128xf32, #tpu.memory_space<vmem>>, vector<256x128xf32>
    tpu.vector_store %arg10[%c0_121, %c0_122], %85 {strides = array<i32>} : memref<256x128xf32, #tpu.memory_space<vmem>>, vector<256x128xf32>,
    %c2_123 = arith.constant 2 : index
    %c2_124 = arith.constant 2 : index
    %c0_125 = arith.constant 0 : index
    %87 = vector.load %arg9[%c2_123, %c2_124, %c0_125] : memref<18x18x128xbf16, #tpu.memory_space<vmem>>, vector<16x16x128xbf16>
    %88 = vector.shape_cast %87 : vector<16x16x128xbf16> to vector<256x128xbf16>
    %c0_126 = arith.constant 0 : index
    %c0_127 = arith.constant 0 : index
    %89 = vector.load %arg10[%c0_126, %c0_127] : memref<256x128xf32, #tpu.memory_space<vmem>>, vector<256x128xf32>
    %c2_128 = arith.constant 2 : index
    %c2_129 = arith.constant 2 : index
    %c0_130 = arith.constant 0 : index
    %c0_131 = arith.constant 0 : index
    %90 = vector.load %arg4[%c2_128, %c2_129, %c0_130, %c0_131] : memref<3x3x128x128xbf16, #tpu.memory_space<vmem>>, vector<1x1x128x128xbf16>
    %91 = vector.shape_cast %90 : vector<1x1x128x128xbf16> to vector<128x128xbf16>
    %cst_132 = arith.constant dense<0.000000e+00> : vector<256x128xf32>
    %92 = tpu.matmul %88, %91, %cst_132 {dimension_numbers = #tpu.dot_dimension_numbers<[1], [0], [0], [1], [0, 0, 1, 1], [], []>} : vector<256x128xbf16>, vector<128x128xbf16>, vector<256x128xf32> -> vector<256x128xf32>
    %93 = arith.addf %89, %92 : vector<256x128xf32>
    %c0_133 = arith.constant 0 : index
    %c0_134 = arith.constant 0 : index
    %94 = vector.load %arg10[%c0_133, %c0_134] : memref<256x128xf32, #tpu.memory_space<vmem>>, vector<256x128xf32>
    tpu.vector_store %arg10[%c0_133, %c0_134], %93 {strides = array<i32>} : memref<256x128xf32, #tpu.memory_space<vmem>>, vector<256x128xf32>,
    %c0_135 = arith.constant 0 : index
    %c0_136 = arith.constant 0 : index
    %95 = vector.load %arg10[%c0_135, %c0_136] : memref<256x128xf32, #tpu.memory_space<vmem>>, vector<256x128xf32>
    %c0_137 = arith.constant 0 : index
    %c0_138 = arith.constant 0 : index
    %96 = vector.load %arg5[%c0_137, %c0_138] : memref<1x128xf32, #tpu.memory_space<vmem>>, vector<1x128xf32>
    %97 = vector.broadcast %96 : vector<1x128xf32> to vector<256x128xf32>
    %98 = arith.addf %95, %97 : vector<256x128xf32>
    %cst_139 = arith.constant 0.000000e+00 : f32
    %99 = vector.broadcast %cst_139 : f32 to vector<256x128xf32>
    %100 = arith.maximumf %98, %99 : vector<256x128xf32>
    %101 = arith.truncf %100 : vector<256x128xf32> to vector<256x128xbf16>
    %c0_140 = arith.constant 0 : index
    %c0_141 = arith.constant 0 : index
    %102 = vector.load %arg6[%c0_140, %c0_141] : memref<128x128xbf16, #tpu.memory_space<vmem>>, vector<128x128xbf16>
    %cst_142 = arith.constant dense<0.000000e+00> : vector<256x128xf32>
    %103 = tpu.matmul %101, %102, %cst_142 {dimension_numbers = #tpu.dot_dimension_numbers<[1], [0], [0], [1], [0, 0, 1, 1], [], []>} : vector<256x128xbf16>, vector<128x128xbf16>, vector<256x128xf32> -> vector<256x128xf32>
    %c0_143 = arith.constant 0 : index
    %c0_144 = arith.constant 0 : index
    %c0_145 = arith.constant 0 : index
    %c0_146 = arith.constant 0 : index
    %104 = vector.load %arg1[%c0_143, %c0_144, %c0_145, %c0_146] : memref<1x16x16x128xbf16, #tpu.memory_space<vmem>>, vector<1x16x16x128xbf16>
    %105 = vector.shape_cast %104 : vector<1x16x16x128xbf16> to vector<16x16x128xbf16>
    %106 = vector.shape_cast %105 : vector<16x16x128xbf16> to vector<256x128xbf16>
    %107 = arith.extf %106 : vector<256x128xbf16> to vector<256x128xf32>
    %c0_147 = arith.constant 0 : index
    %c0_148 = arith.constant 0 : index
    %108 = vector.load %arg7[%c0_147, %c0_148] : memref<1x128xf32, #tpu.memory_space<vmem>>, vector<1x128xf32>
    %109 = vector.broadcast %108 : vector<1x128xf32> to vector<256x128xf32>
    %110 = arith.addf %103, %109 : vector<256x128xf32>
    %111 = arith.addf %110, %107 : vector<256x128xf32>
    %cst_149 = arith.constant 0.000000e+00 : f32
    %112 = vector.broadcast %cst_149 : f32 to vector<256x128xf32>
    %113 = arith.maximumf %111, %112 : vector<256x128xf32>
    %114 = vector.shape_cast %113 : vector<256x128xf32> to vector<16x16x128xf32>
    %115 = arith.truncf %114 : vector<16x16x128xf32> to vector<16x16x128xbf16>
    %c0_150 = arith.constant 0 : index
    %c0_151 = arith.constant 0 : index
    %c0_152 = arith.constant 0 : index
    %c0_153 = arith.constant 0 : index
    %116 = vector.load %arg8[%c0_150, %c0_151, %c0_152, %c0_153] : memref<1x16x16x128xbf16, #tpu.memory_space<vmem>>, vector<1x16x16x128xbf16>
    %117 = vector.shape_cast %116 : vector<1x16x16x128xbf16> to vector<16x16x128xbf16>
    %118 = vector.shape_cast %115 : vector<16x16x128xbf16> to vector<1x16x16x128xbf16>
    tpu.vector_store %arg8[%c0_150, %c0_151, %c0_152, %c0_153], %118 {strides = array<i32>} : memref<1x16x16x128xbf16, #tpu.memory_space<vmem>>, vector<1x16x16x128xbf16>,
    return
  }
  func.func @transform_0(%arg0: i32) -> (i32, i32, i32, i32) {
    %c0_i32 = arith.constant 0 : i32
    %c0_i32_0 = arith.constant 0 : i32
    %c0_i32_1 = arith.constant 0 : i32
    %c0_i32_2 = arith.constant 0 : i32
    return %arg0, %c0_i32, %c0_i32_0, %c0_i32_1 : i32, i32, i32, i32
  }
  func.func @transform_1(%arg0: i32) -> (i32, i32) {
    %c0_i32 = arith.constant 0 : i32
    %c0_i32_0 = arith.constant 0 : i32
    %c0_i32_1 = arith.constant 0 : i32
    return %c0_i32, %c0_i32_0 : i32, i32
  }
  func.func @transform_2(%arg0: i32) -> (i32, i32) {
    %c0_i32 = arith.constant 0 : i32
    %c0_i32_0 = arith.constant 0 : i32
    %c0_i32_1 = arith.constant 0 : i32
    return %c0_i32, %c0_i32_0 : i32, i32
  }
  func.func @transform_3(%arg0: i32) -> (i32, i32, i32, i32) {
    %c0_i32 = arith.constant 0 : i32
    %c0_i32_0 = arith.constant 0 : i32
    %c0_i32_1 = arith.constant 0 : i32
    %c0_i32_2 = arith.constant 0 : i32
    %c0_i32_3 = arith.constant 0 : i32
    return %c0_i32, %c0_i32_0, %c0_i32_1, %c0_i32_2 : i32, i32, i32, i32
  }
  func.func @transform_4(%arg0: i32) -> (i32, i32) {
    %c0_i32 = arith.constant 0 : i32
    %c0_i32_0 = arith.constant 0 : i32
    %c0_i32_1 = arith.constant 0 : i32
    return %c0_i32, %c0_i32_0 : i32, i32
  }
  func.func @transform_5(%arg0: i32) -> (i32, i32) {
    %c0_i32 = arith.constant 0 : i32
    %c0_i32_0 = arith.constant 0 : i32
    %c0_i32_1 = arith.constant 0 : i32
    return %c0_i32, %c0_i32_0 : i32, i32
  }
  func.func @transform_6(%arg0: i32) -> (i32, i32) {
    %c0_i32 = arith.constant 0 : i32
    %c0_i32_0 = arith.constant 0 : i32
    %c0_i32_1 = arith.constant 0 : i32
    return %c0_i32, %c0_i32_0 : i32, i32
  }
  func.func @transform_7(%arg0: i32) -> (i32, i32, i32, i32) {
    %c0_i32 = arith.constant 0 : i32
    %c0_i32_0 = arith.constant 0 : i32
    %c0_i32_1 = arith.constant 0 : i32
    %c0_i32_2 = arith.constant 0 : i32
    return %arg0, %c0_i32, %c0_i32_0, %c0_i32_1 : i32, i32, i32, i32
  }
}

</mosaic_0001>

<bundles_post_ra>
// kernel: bottleneck_forward.1
= control target key start
LH: loop header
LB: loop body
LE: loop exit
PB: predicated region body
PF: predicated region fallthrough
CT: control target
= control target key end

     0   :  { %s9656_s24 = smov 0   ;;  %s10985_s0 = inlined_call_operand.vmem [shape: bf16[2,16,16,128], index: 0, kind: input, shape index: {}]   ;;  %s10986_s1 = inlined_call_operand.vmem [shape: bf16[128,128], index: 1, kind: input, shape index: {}]   ;;  %s10987_s2 = inlined_call_operand.vmem [shape: f32[1,128], index: 2, kind: input, shape index: {}]   ;;  %s10988_s3 = inlined_call_operand.vmem [shape: bf16[3,3,128,128], index: 3, kind: input, shape index: {}]   ;;  %s10989_s4 = inlined_call_operand.vmem [shape: f32[1,128], index: 4, kind: input, shape index: {}]   ;;  %s10990_s5 = inlined_call_operand.vmem [shape: bf16[128,128], index: 5, kind: input, shape index: {}]   ;;  %s10991_s6 = inlined_call_operand.vmem [shape: f32[1,128], index: 6, kind: input, shape index: {}]   ;;  %s10992_s7 = inlined_call_operand.vmem [shape: bf16[2,16,16,128], index: 7, kind: output, shape index: {}]  }
   0x1 LB: > { %s7631_s25 = sadd.s32 4294967295, %s9613_s24   ;;  %p7635_p0 = scmp.ge.s32.totalorder %s9613_s24, 1  ;;  %s9613_s24 = sphi %s9656_s24, %s17_s24  }
   0x2   : > { %p237_p1 = scmp.lt.s32.totalorder %s9613_s24, 3 }
   0x4   : > { %p238_p2 = pnand %p7635_p0, %p237_p1 }
   0x5   : > { %v9446_v0 = vld [vmem:[%s10986_s1] sm:$0xff] (!%p238_p2)   ;;  %p269_p3 = scmp.lt.s32.totalorder (!%p238_p2), %s7631_s25, 1  ;;  %v9447_v1 = vld [vmem:[%s10986_s1 + $0x8] sm:$0xff] (!%p238_p2)   ;;  %v9448_v2 = vld [vmem:[%s10986_s1 + $0x10] sm:$0xff] (!%p238_p2)   ;;  %vm288_vm0 = vcmask (!%p238_p2), 1040384   ;;  %v9615_v49 = vmov (!%p238_p2), 0  }
   0x6   : > { %241 = sbr.rel (%p238_p2) target bundleno = 1176 (0x498), region = 48  ;;  %8637 = vmatprep.subr.bf16.mxu0 (!%p238_p2), %v9446_v0  ;;  %v9449_v3 = vld [vmem:[%s10986_s1 + $0x18] sm:$0xff] (!%p238_p2)   ;;  %v9450_v5 = vld [vmem:[%s10986_s1 + $0x20] sm:$0xff] (!%p238_p2)   ;;  %v9451_v6 = vld [vmem:[%s10986_s1 + $0x28] sm:$0xff] (!%p238_p2)   ;;  %vm289_vm1 = vsmask.f32 (!%p238_p2), 256 }
   0x7   : > { %8638 = vmatpush3.bf16.msra.mxu0 (!%p238_p2), %v9446_v0  ;;  %v9452_v7 = vld [vmem:[%s10986_s1 + $0x30] sm:$0xff] (!%p238_p2)   ;;  %v9453_v8 = vld [vmem:[%s10986_s1 + $0x38] sm:$0xff] (!%p238_p2)   ;;  %vm9701_vm2 = vmand (!%p238_p2), %vm288_vm0, %vm289_vm1  ;;  %vm339_vm3 = vsmask.f32 (!%p238_p2), 7938  ;;  %280 = vst [vmem:[#allocation2] sm:$0xf] (!%p238_p2), %v9615_v49 }
   0x8   : > { %8639 = vmatprep.subr.bf16.mxu0 (!%p238_p2), %v9447_v1  ;;  %v294_v9 = vld [vmem:[#allocation2 + $0x18] sm:$0x1] (!%p238_p2)  ;;  %v9470_v12 = vld [vmem:[%s10988_s3] sm:$0xff] (!%p238_p2)   ;;  %v9471_v15 = vld [vmem:[%s10988_s3 + $0x8] sm:$0xff] (!%p238_p2)   ;;  %281 = vst [vmem:[#allocation2 + $0x4] sm:$0xf] (!%p238_p2), %v9615_v49 }
   0x9   : > { %v295_v13 = vsel (!%p238_p2), %vm9701_vm2, 0, %v294_v9  ;;  %v9472_v29 = vld [vmem:[%s10988_s3 + $0x10] sm:$0xff] (!%p238_p2)   ;;  %vm9733_vm4 = vmand (!%p238_p2), %vm288_vm0, %vm339_vm3  ;;  %v291_v31 = vld [vmem:[#allocation2 + $0xc] sm:$0x1] (!%p238_p2)  ;;  %282 = vst [vmem:[#allocation2 + $0x8] sm:$0x1] (!%p238_p2), %v9615_v49 }
   0xa   : > { %296 = vst [vmem:[#allocation2 + $0x18] sm:$0x1] (!%p238_p2), %v295_v13  ;;  %v9473_v32 = vld [vmem:[%s10988_s3 + $0x18] sm:$0xff] (!%p238_p2)   ;;  %v292_v33 = vsel (!%p238_p2), %vm9701_vm2, 0, %v291_v31  ;;  %v344_v34 = vld [vmem:[#allocation2 + $0x20] sm:$0x1] (!%p238_p2) }
   0xb   : > { %8640 = vmatpush3.bf16.msra.mxu0 (!%p238_p2), %v9447_v1  ;;  %293 = vst [vmem:[#allocation2 + $0xc] sm:$0x1] (!%p238_p2), %v292_v33  ;;  %v345_v35 = vsel (!%p238_p2), %vm9733_vm4, 0, %v344_v34  ;;  %v341_v36 = vld [vmem:[#allocation2 + $0x14] sm:$0x1] (!%p238_p2)  ;;  %v9474_v44 = vld [vmem:[%s10988_s3 + $0x20] sm:$0xff] (!%p238_p2)  }
   0xc   : > { %8641 = vmatprep.subr.bf16.mxu0 (!%p238_p2), %v9448_v2  ;;  %346 = vst [vmem:[#allocation2 + $0x20] sm:$0x1] (!%p238_p2), %v345_v35  ;;  %v342_v37 = vsel (!%p238_p2), %vm9733_vm4, 0, %v341_v36  ;;  %v300_v38 = vld [vmem:[#allocation2 + $0x30] sm:$0x1] (!%p238_p2)  ;;  %v9475_v45 = vld [vmem:[%s10988_s3 + $0x28] sm:$0xff] (!%p238_p2)  }
   0xd   : > { %s11006_s25 = smov (!%p269_p3, %s7631_s25), 1  ;;  %343 = vst [vmem:[#allocation2 + $0x14] sm:$0x1] %v342_v37  ;;  %v301_v39 = vsel %vm9701_vm2, 0, %v300_v38  ;;  %v297_v40 = vld [vmem:[#allocation2 + $0x24] sm:$0x1] }
   0xe   : > { %s8133_s9 = sshll.u32 %s11006_s25, 7  ;;  %302 = vst [vmem:[#allocation2 + $0x30] sm:$0x1] %v301_v39  ;;  %v298_v41 = vsel %vm9701_vm2, 0, %v297_v40  ;;  %v350_v42 = vld [vmem:[#allocation2 + $0x38] sm:$0x1] }
   0xf   : > { %s9681_s12 = scalar_lea.vmem %s10985_s0, %s8133_s9  ;;  %8642 = vmatpush3.bf16.msra.mxu0 %v9448_v2  ;;  %299 = vst [vmem:[#allocation2 + $0x24] sm:$0x1] %v298_v41  ;;  %v351_v43 = vsel %vm9733_vm4, 0, %v350_v42  ;;  %v347_v46 = vld [vmem:[#allocation2 + $0x2c] sm:$0x1]  ;;  %v9476_v48 = vld [vmem:[%s10988_s3 + $0x30] sm:$0xff]   ;;  %s10924_s19 = scalar_lea.vmem %s10992_s7, %s8133_s9 }
  0x10   : > { %v9454_v4 = vld [vmem:[%s9681_s12] sm:$0xff]   ;;  %8643 = vmatprep.subr.bf16.mxu0 %v9449_v3  ;;  %v9455_v11 = vld [vmem:[%s9681_s12 + $0x8] sm:$0xff]   ;;  %v9456_v14 = vld [vmem:[%s9681_s12 + $0x10] sm:$0xff]   ;;  %352 = vst [vmem:[#allocation2 + $0x38] sm:$0x1] %v351_v43  ;;  %v348_v47 = vsel %vm9733_vm4, 0, %v347_v46 }
  0x11   : > { %8653 = vmatprep.mubr.bf16.mxu0 %v9454_v4  ;;  %v9457_v16 = vld [vmem:[%s9681_s12 + $0x18] sm:$0xff]   ;;  %v9458_v17 = vld [vmem:[%s9681_s12 + $0x20] sm:$0xff]   ;;  %v9459_v18 = vld [vmem:[%s9681_s12 + $0x28] sm:$0xff]   ;;  %349 = vst [vmem:[#allocation2 + $0x2c] sm:$0x1] %v348_v47  ;;  %vm1199_vm5 = vcmask 1043456  }
  0x12   : > { %v9460_v19 = vld [vmem:[%s9681_s12 + $0x30] sm:$0xff]   ;;  %v9461_v20 = vld [vmem:[%s9681_s12 + $0x38] sm:$0xff]   ;;  %v9462_v21 = vld [vmem:[%s9681_s12 + $0x40] sm:$0xff]   ;;  %284 = vst [vmem:[#allocation2 + $0xcc] sm:$0xf] %v9615_v49  ;;  %vm2711_vm12 = vcmask 1042432  }
  0x13   : > { %8644 = vmatpush3.bf16.msra.mxu0 %v9449_v3  ;;  %v9463_v22 = vld [vmem:[%s9681_s12 + $0x48] sm:$0xff]   ;;  %v9464_v23 = vld [vmem:[%s9681_s12 + $0x50] sm:$0xff]   ;;  %v9465_v24 = vld [vmem:[%s9681_s12 + $0x58] sm:$0xff]   ;;  %285 = vst [vmem:[#allocation2 + $0xd0] sm:$0xf] %v9615_v49  ;;  %vm2712_vm13 = vcmask 1046532  }
  0x14   : > { %8645 = vmatprep.subr.bf16.mxu0 %v9450_v5  ;;  %v9466_v25 = vld [vmem:[%s9681_s12 + $0x60] sm:$0xff]   ;;  %v9467_v26 = vld [vmem:[%s9681_s12 + $0x68] sm:$0xff]   ;;  %v9468_v27 = vld [vmem:[%s9681_s12 + $0x70] sm:$0xff]   ;;  %286 = vst [vmem:[#allocation2 + $0xd4] sm:$0x1] %v9615_v49 }
  0x15   : > { %v9469_v28 = vld [vmem:[%s9681_s12 + $0x78] sm:$0xff]   ;;  %v306_v50 = vld [vmem:[#allocation2 + $0x48] sm:$0x1]  ;;  %v356_v54 = vld [vmem:[#allocation2 + $0x50] sm:$0x1] }
  0x16   : > { %v307_v51 = vsel %vm9701_vm2, 0, %v306_v50  ;;  %v303_v52 = vld [vmem:[#allocation2 + $0x3c] sm:$0x1]  ;;  %v357_v56 = vsel %vm9733_vm4, 0, %v356_v54  ;;  %v353_v57 = vld [vmem:[#allocation2 + $0x44] sm:$0x1]  ;;  %vm9874_vm7 = vmand %vm1199_vm5, %vm339_vm3 }
  0x17   : > { %8646 = vmatpush3.bf16.msra.mxu0 %v9450_v5  ;;  %308 = vst [vmem:[#allocation2 + $0x48] sm:$0x1] %v307_v51  ;;  %v304_v53 = vsel %vm9701_vm2, 0, %v303_v52  ;;  %v9477_v55 = vld [vmem:[%s10988_s3 + $0x38] sm:$0xff]   ;;  %358 = vst [vmem:[#allocation2 + $0x50] sm:$0x1] %v357_v56 }
  0x18   : > { %8647 = vmatprep.subr.bf16.mxu0 %v9451_v6  ;;  %305 = vst [vmem:[#allocation2 + $0x3c] sm:$0x1] %v304_v53  ;;  %v354_v58 = vsel %vm9733_vm4, 0, %v353_v57  ;;  %v9478_v59 = vld [vmem:[#allocation2] sm:$0xff]   ;;  %v309_v63 = vld [vmem:[#allocation2 + $0x54] sm:$0x1]  ;;  %vm10322_vm14 = vmor %vm2711_vm12, %vm2712_vm13 }
  0x19   : > { %355 = vst [vmem:[#allocation2 + $0x44] sm:$0x1] %v354_v58  ;;  %v9480_v60 = vld [vmem:[%s10988_s3 + $0xc0] sm:$0xff]   ;;  %v310_v0 = vsel %vm9701_vm2, 0, %v309_v63  ;;  %v362_v1 = vld [vmem:[#allocation2 + $0x68] sm:$0x1] }
  0x1a   : > { %v312_v61 = vld [vmem:[#allocation2 + $0x60] sm:$0x1]  ;;  %9165 = vmatprep.subr.bf16.mxu1 %v9480_v60  ;;  %v9482_v2 = vld [vmem:[%s10988_s3 + $0xc8] sm:$0xff]   ;;  %311 = vst [vmem:[#allocation2 + $0x54] sm:$0x1] %v310_v0  ;;  %v363_v3 = vsel %vm9733_vm4, 0, %v362_v1 }
  0x1b   : > { %8648 = vmatpush3.bf16.msra.mxu0 %v9451_v6  ;;  %v313_v62 = vsel %vm9701_vm2, 0, %v312_v61  ;;  %9173 = vmatpush3.bf16.msra.mxu1 %v9480_v60  ;;  %v359_v4 = vld [vmem:[#allocation2 + $0x5c] sm:$0x1]  ;;  %364 = vst [vmem:[#allocation2 + $0x68] sm:$0x1] %v363_v3  ;;  %v9833_v38 = vld [vmem:[%s10988_s3 + $0x40] sm:$0xff]  }
  0x1c   : > { %8649 = vmatprep.subr.bf16.mxu0 %v9452_v7  ;;  %314 = vst [vmem:[#allocation2 + $0x60] sm:$0x1] %v313_v62  ;;  %v360_v5 = vsel %vm9733_vm4, 0, %v359_v4  ;;  %9166 = vmatprep.subr.bf16.mxu1 %v9482_v2  ;;  %v318_v6 = vld [vmem:[#allocation2 + $0x78] sm:$0x1]  ;;  %v9838_v40 = vld [vmem:[%s10988_s3 + $0x100] sm:$0xff]  }
  0x1d   : > { %361 = vst [vmem:[#allocation2 + $0x5c] sm:$0x1] %v360_v5  ;;  %v327_v31 = vld [vmem:[#allocation2 + $0x9c] sm:$0x1]  ;;  %v380_v33 = vld [vmem:[#allocation2 + $0xb0] sm:$0x1] }
  0x1e   : > { %v9494_v34 = vld [vmem:[%s10988_s3 + $0xf8] sm:$0xff]   ;;  %v381_v35 = vsel %vm9733_vm4, 0, %v380_v33  ;;  %v377_v36 = vld [vmem:[#allocation2 + $0xa4] sm:$0x1]  ;;  %v336_v39 = vld [vmem:[#allocation2 + $0xc0] sm:$0x1] }
  0x1f   : > { %8650 = vmatpush3.bf16.msra.mxu0 %v9452_v7  ;;  %9174 = vmatpush3.bf16.msra.mxu1 %v9482_v2  ;;  %v319_v7 = vsel %vm9701_vm2, 0, %v318_v6  ;;  %382 = vst [vmem:[#allocation2 + $0xb0] sm:$0x1] %v381_v35  ;;  %v378_v37 = vsel %vm9733_vm4, 0, %v377_v36  ;;  %v337_v41 = vsel %vm9701_vm2, 0, %v336_v39 }
  0x20   : > { %8651 = vmatprep.subr.bf16.mxu0 %v9453_v8  ;;  %320 = vst [vmem:[#allocation2 + $0x78] sm:$0x1] %v319_v7  ;;  %379 = vst [vmem:[#allocation2 + $0xa4] sm:$0x1] %v378_v37  ;;  %v333_v42 = vld [vmem:[#allocation2 + $0xb4] sm:$0x1] }
  0x21   : > { %338 = vst [vmem:[#allocation2 + $0xc0] sm:$0x1] %v337_v41  ;;  %v334_v43 = vsel %vm9701_vm2, 0, %v333_v42  ;;  %v383_v46 = vld [vmem:[#allocation2 + $0xbc] sm:$0x1] }
  0x22   : > { %335 = vst [vmem:[#allocation2 + $0xb4] sm:$0x1] %v334_v43  ;;  %v384_v47 = vsel %vm9733_vm4, 0, %v383_v46  ;;  %v9853_v49 = vld [vmem:[%s10987_s2] ss:$0 sm:$0xff] }
  0x23   : > { %8652 = vmatpush3.bf16.msra.mxu0 %v9453_v8  ;;  %v315_v8 = vld [vmem:[#allocation2 + $0x6c] sm:$0x1]  ;;  %385 = vst [vmem:[#allocation2 + $0xbc] sm:$0x1] %v384_v47  ;;  %v1795_v50 = vld [vmem:[#allocation2 + $0x4] sm:$0xf] }
  0x24   : > { %8685 = vmatprep.subr.bf16.mxu0 %v9470_v12  ;;  %v316_v9 = vsel %vm9701_vm2, 0, %v315_v8  ;;  %v1796_v51 = vld [vmem:[#allocation2 + $0x8] sm:$0x1]  ;;  %v1855_v30 = vshll.u32 %v1795_v50, 16  ;;  %vm877_vm6 = vsmask.f32 4368 }
  0x25   : > { %317 = vst [vmem:[#allocation2 + $0x6c] sm:$0x1] %v316_v9  ;;  %v1865_v60 = vshll.u32 %v1796_v51, 16  ;;  %v1201_v35 = vld [vmem:[#allocation2 + $0xc] sm:$0xf]  ;;  %vm9881_vm8 = vmor %vm289_vm1, %vm877_vm6 }
  0x26   : > { %8654 = vmatmul.mubr.bf16.vlgmr.msra.gmra.mrb[0].mxu0 %v9455_v11  ;;  %v368_v11 = vld [vmem:[#allocation2 + $0x80] sm:$0x1]  ;;  %v9863_v8 = vrot.slane %v1855_v30, 5  ;;  %v1205_v51 = vld [vmem:[#allocation2 + $0x14] sm:$0x1] }
  0x27   : > { %8657 = vmatprep.mubr.bf16.mxu0 %v9456_v14  ;;  %8686 = vmatpush3.bf16.msra.mxu0 %v9470_v12  ;;  %v9484_v12 = vld [vmem:[%s10988_s3 + $0xd0] sm:$0xff]   ;;  %v369_v13 = vsel %vm9733_vm4, 0, %v368_v11  ;;  %v9486_v14 = vld [vmem:[%s10988_s3 + $0xd8] sm:$0xff]   ;;  %vm1842_vm9 = vsmask.f32 3328 }
  0x28   : > { %8687 = vmatprep.subr.bf16.mxu0 %v9471_v15  ;;  %370 = vst [vmem:[#allocation2 + $0x80] sm:$0x1] %v369_v13  ;;  %9167 = vmatprep.subr.bf16.mxu1 %v9484_v12  ;;  %vm1843_vm10 = vsmask.f32 7440 }
  0x29   : > { %9175 = vmatpush3.bf16.msra.mxu1 %v9484_v12  ;;  %vm10112_vm11 = vmor %vm1842_vm9, %vm1843_vm10 }
  0x2a   : > { %9168 = vmatprep.subr.bf16.mxu1 %v9486_v14 }
  0x2b   : > { %8688 = vmatpush3.bf16.msra.mxu0 %v9471_v15  ;;  %v365_v15 = vld [vmem:[#allocation2 + $0x74] sm:$0x1] }
  0x2c   : > { %8689 = vmatprep.subr.bf16.mxu0 %v9472_v29 }
  0x2d   : > { %9176 = vmatpush3.bf16.msra.mxu1 %v9486_v14  ;;  %v9869_v14 = vrot.slane %v1865_v60, 5 }
  0x2e   : > { %8658 = vmatmul.mubr.bf16.gmra.mrb[4].mxu0 %v9457_v16  ;;  %v366_v16 = vsel %vm9733_vm4, 0, %v365_v15 }
  0x2f   : > { %8661 = vmatprep.mubr.bf16.mxu0 %v9458_v17  ;;  %8690 = vmatpush3.bf16.msra.mxu0 %v9472_v29  ;;  %367 = vst [vmem:[#allocation2 + $0x74] sm:$0x1] %v366_v16  ;;  %v9488_v17 = vld [vmem:[%s10988_s3 + $0xe0] sm:$0xff]  }
  0x30   : > { %8691 = vmatprep.subr.bf16.mxu0 %v9473_v32  ;;  %9169 = vmatprep.subr.bf16.mxu1 %v9488_v17 }
  0x31   : > { %9177 = vmatpush3.bf16.msra.mxu1 %v9488_v17 }
  0x33   : > { %8692 = vmatpush3.bf16.msra.mxu0 %v9473_v32  ;;  %v328_v32 = vsel %vm9701_vm2, 0, %v327_v31 }
  0x34   : > { %8693 = vmatprep.subr.bf16.mxu0 %v9474_v44  ;;  %329 = vst [vmem:[#allocation2 + $0x9c] sm:$0x1] %v328_v32 }
  0x36   : > { %8662 = vmatmul.mubr.bf16.gmra.mrb[8].mxu0 %v9459_v18  ;;  %v324_v18 = vld [vmem:[#allocation2 + $0x90] sm:$0x1] }
  0x37   : > { %8665 = vmatprep.mubr.bf16.mxu0 %v9460_v19  ;;  %8694 = vmatpush3.bf16.msra.mxu0 %v9474_v44  ;;  %v325_v19 = vsel %vm9701_vm2, 0, %v324_v18  ;;  %v386_v44 = vld [vmem:[#allocation2 + $0xc8] sm:$0x1] }
  0x38   : > { %8695 = vmatprep.subr.bf16.mxu0 %v9475_v45  ;;  %326 = vst [vmem:[#allocation2 + $0x90] sm:$0x1] %v325_v19 }
  0x3b   : > { %8696 = vmatpush3.bf16.msra.mxu0 %v9475_v45  ;;  %v387_v45 = vsel %vm9733_vm4, 0, %v386_v44  ;;  %v1212_v44 = vld [vmem:[#allocation2 + $0x20] sm:$0x1] }
  0x3c   : > { %8697 = vmatprep.subr.bf16.mxu0 %v9476_v48  ;;  %388 = vst [vmem:[#allocation2 + $0xc8] sm:$0x1] %v387_v45 }
  0x3e   : > { %8666 = vmatmul.mubr.bf16.gmra.mrb[12].mxu0 %v9461_v20  ;;  %v321_v20 = vld [vmem:[#allocation2 + $0x84] sm:$0x1] }
  0x3f   : > { %8669 = vmatprep.mubr.bf16.mxu0 %v9462_v21  ;;  %8698 = vmatpush3.bf16.msra.mxu0 %v9476_v48  ;;  %v322_v21 = vsel %vm9701_vm2, 0, %v321_v20  ;;  %v1794_v48 = vld [vmem:[#allocation2] sm:$0xf] }
  0x40   : > { %8699 = vmatprep.subr.bf16.mxu0 %v9477_v55  ;;  %323 = vst [vmem:[#allocation2 + $0x84] sm:$0x1] %v322_v21  ;;  %v1846_v52 = vshrl.u32 %v1794_v48, 16  ;;  %v1849_v53 = vshll.u32 %v1794_v48, 16 }
  0x42   : > { %v9858_v0 = vrot.slane %v1846_v52, 4  ;;  %v9860_v1 = vrot.slane %v1849_v53, 5 }
  0x43   : > { %8700 = vmatpush3.bf16.msra.mxu0 %v9477_v55 }
  0x44   : > { %8733 = vmatprep.subr.bf16.mxu0 %v9833_v38  ;;  %v1852_v13 = vor.u32 %v9860_v1, %v9858_v0 }
  0x46   : > { %8670 = vmatmul.mubr.bf16.gmra.mrb[16].mxu0 %v9463_v22  ;;  %v374_v22 = vld [vmem:[#allocation2 + $0x98] sm:$0x1] }
  0x47   : > { %8673 = vmatprep.mubr.bf16.mxu0 %v9464_v23  ;;  %v9490_v23 = vld [vmem:[%s10988_s3 + $0xe8] sm:$0xff]  }
  0x48   : > { %9170 = vmatprep.subr.bf16.mxu1 %v9490_v23 }
  0x49   : > { %9178 = vmatpush3.bf16.msra.mxu1 %v9490_v23 }
  0x4e   : > { %8674 = vmatmul.mubr.bf16.gmra.mrb[20].mxu0 %v9465_v24  ;;  %v375_v24 = vsel %vm9733_vm4, 0, %v374_v22 }
  0x4f   : > { %8677 = vmatprep.mubr.bf16.mxu0 %v9466_v25  ;;  %v371_v25 = vld [vmem:[#allocation2 + $0x8c] sm:$0x1]  ;;  %376 = vst [vmem:[#allocation2 + $0x98] sm:$0x1] %v375_v24 }
  0x56   : > { %8678 = vmatmul.mubr.bf16.gmra.mrb[24].mxu0 %v9467_v26  ;;  %v372_v26 = vsel %vm9733_vm4, 0, %v371_v25 }
  0x57   : > { %8681 = vmatprep.mubr.bf16.mxu0 %v9468_v27  ;;  %373 = vst [vmem:[#allocation2 + $0x8c] sm:$0x1] %v372_v26  ;;  %v9492_v27 = vld [vmem:[%s10988_s3 + $0xf0] sm:$0xff]   ;;  %v1208_v26 = vld [vmem:[#allocation2 + $0x18] sm:$0xf] }
  0x58   : > { %9171 = vmatprep.subr.bf16.mxu1 %v9492_v27 }
  0x59   : > { %9179 = vmatpush3.bf16.msra.mxu1 %v9492_v27 }
  0x5a   : > { %9172 = vmatprep.subr.bf16.mxu1 %v9494_v34 }
  0x5d   : > { %9180 = vmatpush3.bf16.msra.mxu1 %v9494_v34 }
  0x5e   : > { %8682 = vmatmul.mubr.bf16.gmra.mrb[28].mxu0 %v9469_v28  ;;  %v330_v28 = vld [vmem:[#allocation2 + $0xa8] sm:$0x1]  ;;  %8877 = vmatprep.subr.bf16.mxu1 %v9838_v40 }
  0x5f   : > { %8701 = vmatprep.mubr.bf16.mxu0 %v9478_v59  ;;  %v331_v29 = vsel %vm9701_vm2, 0, %v330_v28  ;;  %v1859_v59 = vshrl.u32 %v1795_v50, 16 }
  0x60   : > { %332 = vst [vmem:[#allocation2 + $0xa8] sm:$0x1] %v331_v29 }
  0x61   : > { %v9865_v9 = vrot.slane %v1859_v59, 4 }
  0x63   : > { %v1862_v59 = vor.u32 %v9865_v9, %v9863_v8 }
  0xf9   : > { %v8655_v54 = vpop.f32.mrb[0].mxu0 }
  0xfa   : > { %v631_v55 = vadd.f32 %v8655_v54, %v9853_v49  ;;  %v622_v56 = vpop.f32.mrb[1].mxu0 }
  0xfb   : > { %v623_v57 = vadd.f32 %v9853_v49, %v622_v56  ;;  %v8656_v58 = vpop.f32.mrb[2].mxu0 }
  0xfc   : > { %v751_v61 = vmax.f32 %v631_v55, 0.0  ;;  %v634_v62 = vadd.f32 %v8656_v58, %v9853_v49  ;;  %v625_v63 = vpop.f32.mrb[3].mxu0 }
  0xfd   : > { %v749_v2 = vmax.f32 %v623_v57, 0.0  ;;  %v626_v3 = vadd.f32 %v9853_v49, %v625_v63 }
  0xfe   : > { %v8137_v4 = vpack.c.bf16 %v751_v61, %v751_v61  ;;  %v752_v5 = vmax.f32 %v634_v62, 0.0 }
  0xff   : > { %v8135_v6 = vpack.c.bf16 %v749_v2, %v749_v2  ;;  %v750_v7 = vmax.f32 %v626_v3, 0.0 }
 0x100   : > { %v897_v11 = vshrl.u32 %v8137_v4, 16  ;;  %v8138_v12 = vpack.c.bf16 %v752_v5, %v752_v5  ;;  %v900_v15 = vshll.u32 %v8137_v4, 16 }
 0x101   : > { %v880_v16 = vshrl.u32 %v8135_v6, 16  ;;  %v883_v17 = vshll.u32 %v8135_v6, 16  ;;  %v8136_v18 = vpack.c.bf16 %v750_v7, %v750_v7  ;;  %v8659_v19 = vpop.f32.mrb[4].mxu0 }
 0x102   : > { %v899_v20 = vrot.slane %v897_v11, 7  ;;  %v905_v21 = vshrl.u32 %v8138_v12, 16  ;;  %v908_v22 = vshll.u32 %v8138_v12, 16  ;;  %v647_v23 = vadd.f32 %v8659_v19, %v9853_v49  ;;  %v638_v24 = vpop.f32.mrb[5].mxu0  ;;  %v1222_v11 = vld [vmem:[#allocation2 + $0x30] sm:$0xf] }
 0x103   : > { %v882_v27 = vrot.slane %v880_v16, 7  ;;  %v888_v28 = vshrl.u32 %v8136_v18, 16  ;;  %v891_v29 = vshll.u32 %v8136_v18, 16  ;;  %v639_v31 = vadd.f32 %v9853_v49, %v638_v24  ;;  %v8660_v32 = vpop.f32.mrb[6].mxu0 }
 0x104   : > { %v902_v33 = vor.u32 %v900_v15, %v899_v20  ;;  %v903_v34 = vrot.slane %v899_v20, 4  ;;  %v907_v36 = vrot.slane %v905_v21, 7  ;;  %v755_v37 = vmax.f32 %v647_v23, 0.0  ;;  %v641_v39 = vpop.f32.mrb[7].mxu0  ;;  %v1215_v21 = vld [vmem:[#allocation2 + $0x24] sm:$0xf] }
 0x105   : > { %v885_v41 = vor.u32 %v883_v17, %v882_v27  ;;  %v886_v42 = vrot.slane %v882_v27, 4  ;;  %v890_v45 = vrot.slane %v888_v28, 7  ;;  %v753_v46 = vmax.f32 %v639_v31, 0.0 }
 0x106   : > { %v1209_v47 = vsel %vm9874_vm7, %v902_v33, %v1208_v26  ;;  %v910_v48 = vor.u32 %v908_v22, %v907_v36  ;;  %v912_v50 = vrot.slane %v907_v36, 4  ;;  %v8141_v52 = vpack.c.bf16 %v755_v37, %v755_v37  ;;  %v9501_v36 = vld [vmem:[%s10988_s3 + $0x48] sm:$0xff]  }
 0x107   : > { %1210 = vst [vmem:[#allocation2 + $0x18] sm:$0xf] %v1209_v47  ;;  %v1202_v53 = vsel %vm9874_vm7, %v885_v41, %v1201_v35  ;;  %v893_v54 = vor.u32 %v891_v29, %v890_v45  ;;  %v895_v55 = vrot.slane %v890_v45, 4  ;;  %v8139_v56 = vpack.c.bf16 %v753_v46, %v753_v46  ;;  %v1219_v45 = vld [vmem:[#allocation2 + $0x2c] sm:$0x1] }
 0x108   : > { %1203 = vst [vmem:[#allocation2 + $0xc] sm:$0xf] %v1202_v53  ;;  %v911_v57 = vsel %vm9881_vm8, %v903_v34, %v910_v48  ;;  %v1213_v58 = vsel %vm9701_vm2, %v912_v50, %v1212_v44  ;;  %v931_v30 = vshrl.u32 %v8141_v52, 16  ;;  %v934_v62 = vshll.u32 %v8141_v52, 16  ;;  %v1226_v44 = vld [vmem:[#allocation2 + $0x38] sm:$0x1] }
 0x109   : > { %1211 = vst [vmem:[#allocation2 + $0x1c] sm:$0xf] %v911_v57  ;;  %1214 = vst [vmem:[#allocation2 + $0x20] sm:$0x1] %v1213_v58  ;;  %v894_v60 = vsel %vm9881_vm8, %v886_v42, %v893_v54  ;;  %v1206_v61 = vsel %vm9701_vm2, %v895_v55, %v1205_v51  ;;  %v914_v63 = vshrl.u32 %v8139_v56, 16  ;;  %v8663_v2 = vpop.f32.mrb[8].mxu0  ;;  %v650_v4 = vadd.f32 %v8660_v32, %v9853_v49 }
 0x10a   : > { %1204 = vst [vmem:[#allocation2 + $0x10] sm:$0xf] %v894_v60  ;;  %1207 = vst [vmem:[#allocation2 + $0x14] sm:$0x1] %v1206_v61  ;;  %v9899_v3 = vrot.slane %v931_v30, 7  ;;  %v642_v5 = vadd.f32 %v9853_v49, %v641_v39  ;;  %v663_v6 = vadd.f32 %v8663_v2, %v9853_v49  ;;  %v654_v7 = vpop.f32.mrb[9].mxu0 }
 0x10b   : > { %v9904_v12 = vrot.slane %v914_v63, 7  ;;  %v917_v15 = vshll.u32 %v8139_v56, 16  ;;  %v655_v16 = vadd.f32 %v9853_v49, %v654_v7  ;;  %v8664_v17 = vpop.f32.mrb[10].mxu0  ;;  %v9910_v18 = vrot.slane %v1852_v13, 4  ;;  %v1236_v55 = vld [vmem:[#allocation2 + $0x48] sm:$0xf] }
 0x10c   : > { %v936_v19 = vor.u32 %v934_v62, %v9899_v3  ;;  %v937_v20 = vrot.slane %v9899_v3, 4  ;;  %v756_v22 = vmax.f32 %v650_v4, 0.0  ;;  %v754_v23 = vmax.f32 %v642_v5, 0.0  ;;  %v657_v24 = vpop.f32.mrb[11].mxu0  ;;  %v1229_v7 = vld [vmem:[#allocation2 + $0x3c] sm:$0xf] }
 0x10d   : > { %v919_v26 = vor.u32 %v917_v15, %v9904_v12  ;;  %v920_v27 = vrot.slane %v9904_v12, 4  ;;  %v759_v28 = vmax.f32 %v663_v6, 0.0  ;;  %v757_v29 = vmax.f32 %v655_v16, 0.0 }
 0x10e   : > { %v1223_v31 = vsel %vm9874_vm7, %v936_v19, %v1222_v11  ;;  %v8142_v0 = vpack.c.bf16 %v756_v22, %v756_v22  ;;  %v8140_v1 = vpack.c.bf16 %v754_v23, %v754_v23  ;;  %v666_v13 = vadd.f32 %v8664_v17, %v9853_v49  ;;  %v9504_v19 = vld [vmem:[%s10988_s3 + $0x50] sm:$0xff]  }
 0x10f   : > { %1224 = vst [vmem:[#allocation2 + $0x30] sm:$0xf] %v1223_v31  ;;  %v1216_v32 = vsel %vm9874_vm7, %v919_v26, %v1215_v21  ;;  %v8145_v33 = vpack.c.bf16 %v759_v28, %v759_v28  ;;  %v8143_v34 = vpack.c.bf16 %v757_v29, %v757_v29  ;;  %v658_v35 = vadd.f32 %v9853_v49, %v657_v24 }
 0x110   : > { %1217 = vst [vmem:[#allocation2 + $0x24] sm:$0xf] %v1216_v32  ;;  %v939_v37 = vshrl.u32 %v8142_v0, 16  ;;  %v942_v39 = vshll.u32 %v8142_v0, 16  ;;  %v922_v41 = vshrl.u32 %v8140_v1, 16  ;;  %v925_v42 = vshll.u32 %v8140_v1, 16 }
 0x111   : > { %v965_v46 = vshrl.u32 %v8145_v33, 16  ;;  %v968_v47 = vshll.u32 %v8145_v33, 16  ;;  %v948_v48 = vshrl.u32 %v8143_v34, 16  ;;  %v951_v50 = vshll.u32 %v8143_v34, 16  ;;  %v8667_v51 = vpop.f32.mrb[12].mxu0  ;;  %v9479_v52 = vld [vmem:[#allocation2 + $0xc] sm:$0xff]  }
 0x112   : > { %v941_v53 = vrot.slane %v939_v37, 7  ;;  %v924_v54 = vrot.slane %v922_v41, 7  ;;  %v760_v56 = vmax.f32 %v666_v13, 0.0  ;;  %v758_v57 = vmax.f32 %v658_v35, 0.0  ;;  %v670_v58 = vpop.f32.mrb[13].mxu0  ;;  %v9481_v30 = vld [vmem:[#allocation2 + $0x18] sm:$0xff]   ;;  %8702 = vmatmul.mubr.bf16.vlgmr.msra.gmra.mrb[32].mxu0 %v9479_v52 }
 0x113   : > { %v9925_v60 = vrot.slane %v965_v46, 7  ;;  %v9927_v61 = vrot.slane %v948_v48, 7  ;;  %v679_v62 = vadd.f32 %v8667_v51, %v9853_v49  ;;  %v671_v63 = vadd.f32 %v9853_v49, %v670_v58  ;;  %v8668_v2 = vpop.f32.mrb[14].mxu0  ;;  %8705 = vmatprep.mubr.bf16.mxu0 %v9481_v30  ;;  %8734 = vmatpush3.bf16.msra.mxu0 %v9833_v38  ;;  %v9509_v35 = vld [vmem:[%s10988_s3 + $0x58] sm:$0xff]   ;;  %v1240_v37 = vld [vmem:[#allocation2 + $0x50] sm:$0x1] }
 0x114   : > { %v944_v3 = vor.u32 %v942_v39, %v941_v53  ;;  %v946_v4 = vrot.slane %v941_v53, 4  ;;  %v927_v5 = vor.u32 %v925_v42, %v924_v54  ;;  %v929_v6 = vrot.slane %v924_v54, 4  ;;  %v673_v11 = vpop.f32.mrb[15].mxu0  ;;  %8735 = vmatprep.subr.bf16.mxu0 %v9501_v36  ;;  %v1233_v48 = vld [vmem:[#allocation2 + $0x44] sm:$0x1] }
 0x115   : > { %v970_v12 = vor.u32 %v968_v47, %v9925_v60  ;;  %v971_v15 = vrot.slane %v9925_v60, 4  ;;  %v953_v16 = vor.u32 %v951_v50, %v9927_v61  ;;  %v954_v17 = vrot.slane %v9927_v61, 4 }
 0x116   : > { %v945_v21 = vsel %vm9881_vm8, %v937_v20, %v944_v3  ;;  %v1227_v22 = vsel %vm9701_vm2, %v946_v4, %v1226_v44  ;;  %v928_v38 = vsel %vm9881_vm8, %v920_v27, %v927_v5  ;;  %v1220_v23 = vsel %vm9701_vm2, %v929_v6, %v1219_v45  ;;  %v9512_v3 = vld [vmem:[%s10988_s3 + $0x60] sm:$0xff]  }
 0x117   : > { %1225 = vst [vmem:[#allocation2 + $0x34] sm:$0xf] %v945_v21  ;;  %1228 = vst [vmem:[#allocation2 + $0x38] sm:$0x1] %v1227_v22  ;;  %v1237_v24 = vsel %vm9874_vm7, %v970_v12, %v1236_v55  ;;  %v1230_v26 = vsel %vm9874_vm7, %v953_v16, %v1229_v7  ;;  %v8146_v20 = vpack.c.bf16 %v760_v56, %v760_v56  ;;  %v763_v29 = vmax.f32 %v679_v62, 0.0 }
 0x118   : > { %1218 = vst [vmem:[#allocation2 + $0x28] sm:$0xf] %v928_v38  ;;  %1221 = vst [vmem:[#allocation2 + $0x2c] sm:$0x1] %v1220_v23  ;;  %v8144_v28 = vpack.c.bf16 %v758_v57, %v758_v57  ;;  %v761_v31 = vmax.f32 %v671_v63, 0.0  ;;  %v682_v27 = vadd.f32 %v8668_v2, %v9853_v49  ;;  %v674_v0 = vadd.f32 %v9853_v49, %v673_v11 }
 0x119   : > { %1238 = vst [vmem:[#allocation2 + $0x48] sm:$0xf] %v1237_v24  ;;  %1231 = vst [vmem:[#allocation2 + $0x3c] sm:$0xf] %v1230_v26  ;;  %8736 = vmatpush3.bf16.msra.mxu0 %v9501_v36  ;;  %v973_v1 = vshrl.u32 %v8146_v20, 16  ;;  %v976_v13 = vshll.u32 %v8146_v20, 16  ;;  %v8149_v39 = vpack.c.bf16 %v763_v29, %v763_v29 }
 0x11a   : > { %v956_v32 = vshrl.u32 %v8144_v28, 16  ;;  %v959_v33 = vshll.u32 %v8144_v28, 16  ;;  %v8671_v34 = vpop.f32.mrb[16].mxu0  ;;  %8737 = vmatprep.subr.bf16.mxu0 %v9504_v19  ;;  %v8147_v41 = vpack.c.bf16 %v761_v31, %v761_v31  ;;  %v764_v42 = vmax.f32 %v682_v27, 0.0  ;;  %v1250_v63 = vld [vmem:[#allocation2 + $0x60] sm:$0xf] }
 0x11b   : > { %v762_v44 = vmax.f32 %v674_v0, 0.0  ;;  %v686_v45 = vpop.f32.mrb[17].mxu0  ;;  %v975_v46 = vrot.slane %v973_v1, 7  ;;  %v695_v36 = vadd.f32 %v8671_v34, %v9853_v49  ;;  %v999_v52 = vshrl.u32 %v8149_v39, 16  ;;  %v1243_v2 = vld [vmem:[#allocation2 + $0x54] sm:$0xf] }
 0x11c   : > { %v958_v47 = vrot.slane %v956_v32, 7  ;;  %v687_v50 = vadd.f32 %v9853_v49, %v686_v45  ;;  %v8672_v51 = vpop.f32.mrb[18].mxu0  ;;  %v1002_v53 = vshll.u32 %v8149_v39, 16  ;;  %v982_v54 = vshrl.u32 %v8147_v41, 16  ;;  %v9517_v1 = vld [vmem:[%s10988_s3 + $0x68] sm:$0xff]  }
 0x11d   : > { %v985_v55 = vshll.u32 %v8147_v41, 16  ;;  %v689_v56 = vpop.f32.mrb[19].mxu0  ;;  %8738 = vmatpush3.bf16.msra.mxu0 %v9504_v19  ;;  %v978_v57 = vor.u32 %v976_v13, %v975_v46  ;;  %v980_v58 = vrot.slane %v975_v46, 4  ;;  %v1001_v4 = vrot.slane %v999_v52, 7  ;;  %v1247_v39 = vld [vmem:[#allocation2 + $0x5c] sm:$0x1] }
 0x11e   : > { %v961_v30 = vor.u32 %v959_v33, %v958_v47  ;;  %v963_v62 = vrot.slane %v958_v47, 4  ;;  %8739 = vmatprep.subr.bf16.mxu0 %v9509_v35  ;;  %v984_v5 = vrot.slane %v982_v54, 7  ;;  %v8150_v6 = vpack.c.bf16 %v764_v42, %v764_v42  ;;  %v9485_v12 = vld [vmem:[#allocation2 + $0x30] sm:$0xff]  }
 0x11f   : > { %v8148_v7 = vpack.c.bf16 %v762_v44, %v762_v44  ;;  %v9483_v11 = vld [vmem:[#allocation2 + $0x24] sm:$0xff]   ;;  %v979_v16 = vsel %vm9881_vm8, %v971_v15, %v978_v57  ;;  %v1241_v19 = vsel %vm9701_vm2, %v980_v58, %v1240_v37  ;;  %v1004_v38 = vor.u32 %v1002_v53, %v1001_v4 }
 0x120   : > { %v962_v21 = vsel %vm9881_vm8, %v954_v17, %v961_v30  ;;  %v1234_v22 = vsel %vm9701_vm2, %v963_v62, %v1233_v48  ;;  %1239 = vst [vmem:[#allocation2 + $0x4c] sm:$0xf] %v979_v16  ;;  %1242 = vst [vmem:[#allocation2 + $0x50] sm:$0x1] %v1241_v19  ;;  %v1005_v60 = vrot.slane %v1001_v4, 4  ;;  %v987_v23 = vor.u32 %v985_v55, %v984_v5  ;;  %v9520_v55 = vld [vmem:[%s10988_s3 + $0x70] sm:$0xff]  }
 0x121   : > { %1232 = vst [vmem:[#allocation2 + $0x40] sm:$0xf] %v962_v21  ;;  %1235 = vst [vmem:[#allocation2 + $0x44] sm:$0x1] %v1234_v22  ;;  %v988_v24 = vrot.slane %v984_v5, 4  ;;  %8706 = vmatmul.mubr.bf16.gmra.mrb[36].mxu0 %v9483_v11  ;;  %v1007_v15 = vshrl.u32 %v8150_v6, 16  ;;  %v1251_v17 = vsel %vm9874_vm7, %v1004_v38, %v1250_v63  ;;  %v698_v33 = vadd.f32 %v8672_v51, %v9853_v49 }
 0x122   : > { %v1010_v26 = vshll.u32 %v8150_v6, 16  ;;  %v990_v20 = vshrl.u32 %v8148_v7, 16  ;;  %v993_v28 = vshll.u32 %v8148_v7, 16  ;;  %8709 = vmatprep.mubr.bf16.mxu0 %v9485_v12  ;;  %v8675_v61 = vpop.f32.mrb[20].mxu0  ;;  %8740 = vmatpush3.bf16.msra.mxu0 %v9509_v35  ;;  %v1244_v29 = vsel %vm9874_vm7, %v987_v23, %v1243_v2  ;;  %1252 = vst [vmem:[#allocation2 + $0x60] sm:$0xf] %v1251_v17 }
 0x123   : > { %v767_v31 = vmax.f32 %v695_v36, 0.0  ;;  %v765_v27 = vmax.f32 %v687_v50, 0.0  ;;  %v702_v0 = vpop.f32.mrb[21].mxu0  ;;  %8741 = vmatprep.subr.bf16.mxu0 %v9512_v3  ;;  %1245 = vst [vmem:[#allocation2 + $0x54] sm:$0xf] %v1244_v29  ;;  %v1009_v13 = vrot.slane %v1007_v15, 7  ;;  %v690_v34 = vadd.f32 %v9853_v49, %v689_v56 }
 0x124   : > { %v992_v32 = vrot.slane %v990_v20, 7  ;;  %v8676_v35 = vpop.f32.mrb[22].mxu0  ;;  %v1254_v37 = vld [vmem:[#allocation2 + $0x68] sm:$0x1]  ;;  %v711_v44 = vadd.f32 %v8675_v61, %v9853_v49  ;;  %v703_v45 = vadd.f32 %v9853_v49, %v702_v0  ;;  %v1264_v62 = vld [vmem:[#allocation2 + $0x78] sm:$0xf] }
 0x125   : > { %v8153_v41 = vpack.c.bf16 %v767_v31, %v767_v31  ;;  %v8151_v42 = vpack.c.bf16 %v765_v27, %v765_v27  ;;  %v705_v46 = vpop.f32.mrb[23].mxu0  ;;  %v1012_v47 = vor.u32 %v1010_v26, %v1009_v13  ;;  %v1014_v48 = vrot.slane %v1009_v13, 4  ;;  %v1257_v7 = vld [vmem:[#allocation2 + $0x6c] sm:$0xf]  ;;  %v9524_v17 = vld [vmem:[%s10988_s3 + $0x78] sm:$0xff]  }
 0x126   : > { %v995_v36 = vor.u32 %v993_v28, %v992_v32  ;;  %v997_v50 = vrot.slane %v992_v32, 4  ;;  %8742 = vmatpush3.bf16.msra.mxu0 %v9512_v3  ;;  %v768_v4 = vmax.f32 %v698_v33, 0.0  ;;  %v766_v5 = vmax.f32 %v690_v34, 0.0 }
 0x127   : > { %v1033_v52 = vshrl.u32 %v8153_v41, 16  ;;  %v1036_v53 = vshll.u32 %v8153_v41, 16  ;;  %v1016_v51 = vshrl.u32 %v8151_v42, 16  ;;  %v1019_v54 = vshll.u32 %v8151_v42, 16  ;;  %8743 = vmatprep.subr.bf16.mxu0 %v9517_v1  ;;  %v9489_v6 = vld [vmem:[#allocation2 + $0x48] sm:$0xff]  }
 0x128   : > { %v1013_v56 = vsel %vm9881_vm8, %v1005_v60, %v1012_v47  ;;  %v1255_v57 = vsel %vm9701_vm2, %v1014_v48, %v1254_v37  ;;  %v996_v58 = vsel %vm9881_vm8, %v988_v24, %v995_v36  ;;  %v1248_v30 = vsel %vm9701_vm2, %v997_v50, %v1247_v39  ;;  %v9487_v63 = vld [vmem:[#allocation2 + $0x3c] sm:$0xff]   ;;  %v1261_v37 = vld [vmem:[#allocation2 + $0x74] sm:$0x1]  ;;  %v1278_v47 = vld [vmem:[#allocation2 + $0x90] sm:$0xf] }
 0x129   : > { %1253 = vst [vmem:[#allocation2 + $0x64] sm:$0xf] %v1013_v56  ;;  %1256 = vst [vmem:[#allocation2 + $0x68] sm:$0x1] %v1255_v57  ;;  %v9995_v2 = vrot.slane %v1033_v52, 7  ;;  %v9997_v3 = vrot.slane %v1016_v51, 7  ;;  %v714_v16 = vadd.f32 %v8676_v35, %v9853_v49  ;;  %v706_v19 = vadd.f32 %v9853_v49, %v705_v46  ;;  %8710 = vmatmul.mubr.bf16.gmra.mrb[40].mxu0 %v9487_v63 }
 0x12a   : > { %1246 = vst [vmem:[#allocation2 + $0x58] sm:$0xf] %v996_v58  ;;  %1249 = vst [vmem:[#allocation2 + $0x5c] sm:$0x1] %v1248_v30  ;;  %v771_v11 = vmax.f32 %v711_v44, 0.0  ;;  %v769_v12 = vmax.f32 %v703_v45, 0.0  ;;  %8713 = vmatprep.mubr.bf16.mxu0 %v9489_v6  ;;  %8744 = vmatpush3.bf16.msra.mxu0 %v9517_v1  ;;  %v8154_v15 = vpack.c.bf16 %v768_v4, %v768_v4 }
 0x12b   : > { %v8679_v21 = vpop.f32.mrb[24].mxu0  ;;  %v1038_v22 = vor.u32 %v1036_v53, %v9995_v2  ;;  %v1039_v38 = vrot.slane %v9995_v2, 4  ;;  %v1021_v60 = vor.u32 %v1019_v54, %v9997_v3  ;;  %v1022_v23 = vrot.slane %v9997_v3, 4  ;;  %8745 = vmatprep.subr.bf16.mxu0 %v9520_v55  ;;  %v1268_v35 = vld [vmem:[#allocation2 + $0x80] sm:$0x1] }
 0x12c   : > { %v718_v24 = vpop.f32.mrb[25].mxu0  ;;  %v8152_v26 = vpack.c.bf16 %v766_v5, %v766_v5  ;;  %v8157_v20 = vpack.c.bf16 %v771_v11, %v771_v11  ;;  %v8155_v28 = vpack.c.bf16 %v769_v12, %v769_v12  ;;  %v772_v27 = vmax.f32 %v714_v16, 0.0  ;;  %v10019_v52 = vld [vmem:[%s10988_s3 + $0x80] sm:$0xff]  }
 0x12d   : > { %v10005_v61 = vpop.f32.mrb[26].mxu0  ;;  %v1265_v29 = vsel %vm9874_vm7, %v1038_v22, %v1264_v62  ;;  %v1258_v31 = vsel %vm9874_vm7, %v1021_v60, %v1257_v7  ;;  %v770_v0 = vmax.f32 %v706_v19, 0.0  ;;  %v1041_v13 = vshrl.u32 %v8154_v15, 16  ;;  %v1271_v63 = vld [vmem:[#allocation2 + $0x84] sm:$0xf] }
 0x12e   : > { %v10014_v1 = vpop.f32.mrb[27].mxu0  ;;  %1266 = vst [vmem:[#allocation2 + $0x78] sm:$0xf] %v1265_v29  ;;  %1259 = vst [vmem:[#allocation2 + $0x6c] sm:$0xf] %v1258_v31  ;;  %v1044_v32 = vshll.u32 %v8154_v15, 16  ;;  %8746 = vmatpush3.bf16.msra.mxu0 %v9520_v55  ;;  %v8158_v48 = vpack.c.bf16 %v772_v27, %v772_v27  ;;  %v727_v54 = vadd.f32 %v8679_v21, %v9853_v49 }
 0x12f   : > { %v1024_v33 = vshrl.u32 %v8152_v26, 16  ;;  %v1027_v34 = vshll.u32 %v8152_v26, 16  ;;  %v1067_v39 = vshrl.u32 %v8157_v20, 16  ;;  %v1070_v41 = vshll.u32 %v8157_v20, 16  ;;  %8747 = vmatprep.subr.bf16.mxu0 %v9524_v17 }
 0x130   : > { %v1050_v42 = vshrl.u32 %v8155_v28, 16  ;;  %v1053_v44 = vshll.u32 %v8155_v28, 16  ;;  %v1043_v45 = vrot.slane %v1041_v13, 7  ;;  %v8156_v36 = vpack.c.bf16 %v770_v0, %v770_v0  ;;  %v9493_v55 = vld [vmem:[#allocation2 + $0x60] sm:$0xff]   ;;  %v1282_v0 = vld [vmem:[#allocation2 + $0x98] sm:$0x1] }
 0x131   : > { %v1026_v46 = vrot.slane %v1024_v33, 7  ;;  %v9491_v50 = vld [vmem:[#allocation2 + $0x54] sm:$0xff]   ;;  %v1069_v53 = vrot.slane %v1067_v39, 7  ;;  %v719_v56 = vadd.f32 %v9853_v49, %v718_v24  ;;  %v8683_v2 = vpop.f32.mrb[28].mxu0  ;;  %v1075_v60 = vshrl.u32 %v8158_v48, 16 }
 0x132   : > { %v10021_v51 = vrot.slane %v1050_v42, 7  ;;  %v1046_v57 = vor.u32 %v1044_v32, %v1043_v45  ;;  %v1048_v58 = vrot.slane %v1043_v45, 4  ;;  %8714 = vmatmul.mubr.bf16.gmra.mrb[44].mxu0 %v9491_v50  ;;  %v734_v7 = vpop.f32.mrb[29].mxu0  ;;  %v1078_v24 = vshll.u32 %v8158_v48, 16  ;;  %v1275_v39 = vld [vmem:[#allocation2 + $0x8c] sm:$0x1] }
 0x133   : > { %v1029_v30 = vor.u32 %v1027_v34, %v1026_v46  ;;  %v1031_v62 = vrot.slane %v1026_v46, 4  ;;  %v1072_v3 = vor.u32 %v1070_v41, %v1069_v53  ;;  %v1073_v4 = vrot.slane %v1069_v53, 4  ;;  %8717 = vmatprep.mubr.bf16.mxu0 %v9493_v55  ;;  %8748 = vmatpush3.bf16.msra.mxu0 %v9524_v17  ;;  %v10035_v21 = vpop.f32.mrb[30].mxu0  ;;  %v1292_v48 = vld [vmem:[#allocation2 + $0xa8] sm:$0xf] }
 0x134   : > { %v1055_v5 = vor.u32 %v1053_v44, %v10021_v51  ;;  %v1056_v6 = vrot.slane %v10021_v51, 4  ;;  %v1047_v11 = vsel %vm9881_vm8, %v1039_v38, %v1046_v57  ;;  %v1269_v12 = vsel %vm9701_vm2, %v1048_v58, %v1268_v35  ;;  %8781 = vmatprep.subr.bf16.mxu0 %v10019_v52 }
 0x135   : > { %v1030_v16 = vsel %vm9881_vm8, %v1022_v23, %v1029_v30  ;;  %v1262_v19 = vsel %vm9701_vm2, %v1031_v62, %v1261_v37  ;;  %1267 = vst [vmem:[#allocation2 + $0x7c] sm:$0xf] %v1047_v11  ;;  %1270 = vst [vmem:[#allocation2 + $0x80] sm:$0x1] %v1269_v12  ;;  %v1279_v22 = vsel %vm9874_vm7, %v1072_v3, %v1278_v47  ;;  %v10042_v23 = vpop.f32.mrb[31].mxu0  ;;  %v1058_v15 = vshrl.u32 %v8156_v36, 16 }
 0x136   : > { %1260 = vst [vmem:[#allocation2 + $0x70] sm:$0xf] %v1030_v16  ;;  %1263 = vst [vmem:[#allocation2 + $0x74] sm:$0x1] %v1262_v19  ;;  %v1272_v38 = vsel %vm9874_vm7, %v1055_v5, %v1271_v63  ;;  %v1061_v26 = vshll.u32 %v8156_v36, 16  ;;  %v775_v20 = vmax.f32 %v727_v54, 0.0  ;;  %v730_v29 = vadd.f32 %v10005_v61, %v9853_v49 }
 0x137   : > { %1280 = vst [vmem:[#allocation2 + $0x90] sm:$0xf] %v1279_v22  ;;  %1273 = vst [vmem:[#allocation2 + $0x84] sm:$0xf] %v1272_v38  ;;  %v773_v28 = vmax.f32 %v719_v56, 0.0  ;;  %v1077_v17 = vrot.slane %v1075_v60, 7  ;;  %v722_v31 = vadd.f32 %v9853_v49, %v10014_v1  ;;  %v743_v27 = vadd.f32 %v8683_v2, %v9853_v49 }
 0x138   : > { %v1060_v13 = vrot.slane %v1058_v15, 7  ;;  %v8161_v32 = vpack.c.bf16 %v775_v20, %v775_v20  ;;  %v735_v34 = vadd.f32 %v9853_v49, %v734_v7  ;;  %v776_v41 = vmax.f32 %v730_v29, 0.0  ;;  %v1285_v56 = vld [vmem:[#allocation2 + $0x9c] sm:$0xf]  ;;  %v9502_v3 = vld [vmem:[%s10988_s3 + $0x108] sm:$0xff]  }
 0x139   : > { %v8159_v33 = vpack.c.bf16 %v773_v28, %v773_v28  ;;  %v1080_v35 = vor.u32 %v1078_v24, %v1077_v17  ;;  %v1082_v37 = vrot.slane %v1077_v17, 4  ;;  %v774_v42 = vmax.f32 %v722_v31, 0.0  ;;  %v1296_v19 = vld [vmem:[#allocation2 + $0xb0] sm:$0x1]  ;;  %v1289_v29 = vld [vmem:[#allocation2 + $0xa4] sm:$0x1] }
 0x13a   : > { %v1063_v44 = vor.u32 %v1061_v26, %v1060_v13  ;;  %v1065_v45 = vrot.slane %v1060_v13, 4  ;;  %v1101_v46 = vshrl.u32 %v8161_v32, 16  ;;  %v1104_v61 = vshll.u32 %v8161_v32, 16 }
 0x13b   : > { %v1081_v1 = vsel %vm9881_vm8, %v1073_v4, %v1080_v35  ;;  %v1283_v47 = vsel %vm9701_vm2, %v1082_v37, %v1282_v0  ;;  %v1084_v36 = vshrl.u32 %v8159_v33, 16  ;;  %v1087_v50 = vshll.u32 %v8159_v33, 16 }
 0x13c   : > { %1281 = vst [vmem:[#allocation2 + $0x94] sm:$0xf] %v1081_v1  ;;  %1284 = vst [vmem:[#allocation2 + $0x98] sm:$0x1] %v1283_v47  ;;  %v1064_v53 = vsel %vm9881_vm8, %v1056_v6, %v1063_v44  ;;  %v1276_v51 = vsel %vm9701_vm2, %v1065_v45, %v1275_v39  ;;  %v1103_v54 = vrot.slane %v1101_v46, 7  ;;  %v8162_v55 = vpack.c.bf16 %v776_v41, %v776_v41  ;;  %v9499_v11 = vld [vmem:[#allocation2 + $0x78] sm:$0xff]  }
 0x13d   : > { %v9495_v57 = vld [vmem:[#allocation2 + $0x6c] sm:$0xff]   ;;  %1274 = vst [vmem:[#allocation2 + $0x88] sm:$0xf] %v1064_v53  ;;  %1277 = vst [vmem:[#allocation2 + $0x8c] sm:$0x1] %v1276_v51  ;;  %v1086_v58 = vrot.slane %v1084_v36, 7  ;;  %v8160_v30 = vpack.c.bf16 %v774_v42, %v774_v42  ;;  %v746_v31 = vadd.f32 %v10035_v21, %v9853_v49 }
 0x13e   : > { %v779_v62 = vmax.f32 %v743_v27, 0.0  ;;  %v777_v63 = vmax.f32 %v735_v34, 0.0  ;;  %v9497_v2 = vld [vmem:[#allocation2 + $0x6c] sm:$0xff]   ;;  %v1106_v4 = vor.u32 %v1104_v61, %v1103_v54  ;;  %v1107_v5 = vrot.slane %v1103_v54, 4  ;;  %8718 = vmatmul.mubr.bf16.gmra.mrb[48].mxu0 %v9495_v57  ;;  %v9500_v60 = vld [vmem:[#allocation2 + $0x78] sm:$0xff]  }
 0x13f   : > { %v1109_v6 = vshrl.u32 %v8162_v55, 16  ;;  %v1112_v7 = vshll.u32 %v8162_v55, 16  ;;  %v1089_v12 = vor.u32 %v1087_v50, %v1086_v58  ;;  %v1090_v16 = vrot.slane %v1086_v58, 4  ;;  %8861 = vmatprep.mubr.bf16.mxu1 %v9497_v2  ;;  %8721 = vmatprep.mubr.bf16.mxu0 %v9499_v11  ;;  %v3662_v34 = vld [vmem:[#allocation2 + $0xc] sm:$0xf] }
 0x140   : > { %v1092_v22 = vshrl.u32 %v8160_v30, 16  ;;  %v1095_v38 = vshll.u32 %v8160_v30, 16  ;;  %v1293_v24 = vsel %vm9874_vm7, %v1106_v4, %v1292_v48  ;;  %v8165_v26 = vpack.c.bf16 %v779_v62, %v779_v62  ;;  %8862 = vmatmul.mubr.bf16.vlgmr.msra.gmra.mrb[0].mxu1 %v9500_v60  ;;  %v1306_v39 = vld [vmem:[#allocation2 + $0xc0] sm:$0xf]  ;;  %v10086_v54 = vld [vmem:[#allocation2 + $0x10] sm:$0xf] }
 0x141   : > { %v1111_v15 = vrot.slane %v1109_v6, 7  ;;  %v8163_v20 = vpack.c.bf16 %v777_v63, %v777_v63  ;;  %1294 = vst [vmem:[#allocation2 + $0xa8] sm:$0xf] %v1293_v24  ;;  %v1286_v28 = vsel %vm9874_vm7, %v1089_v12, %v1285_v56  ;;  %v738_v27 = vadd.f32 %v9853_v49, %v10042_v23  ;;  %8878 = vmatpush3.bf16.msra.mxu1 %v9838_v40  ;;  %v9506_v49 = vld [vmem:[%s10988_s3 + $0x110] sm:$0xff]   ;;  %v9510_v63 = vld [vmem:[%s10988_s3 + $0x118] sm:$0xff]  }
 0x142   : > { %v1094_v17 = vrot.slane %v1092_v22, 7  ;;  %1287 = vst [vmem:[#allocation2 + $0x9c] sm:$0xf] %v1286_v28  ;;  %v1135_v32 = vshrl.u32 %v8165_v26, 16  ;;  %v1138_v33 = vshll.u32 %v8165_v26, 16  ;;  %8879 = vmatprep.subr.bf16.mxu1 %v9502_v3  ;;  %v780_v45 = vmax.f32 %v746_v31, 0.0 }
 0x143   : > { %v1114_v0 = vor.u32 %v1112_v7, %v1111_v15  ;;  %v1116_v13 = vrot.slane %v1111_v15, 4  ;;  %v1118_v41 = vshrl.u32 %v8163_v20, 16  ;;  %v1121_v42 = vshll.u32 %v8163_v20, 16  ;;  %v1299_v40 = vld [vmem:[#allocation2 + $0xb4] sm:$0xf]  ;;  %v9514_v22 = vld [vmem:[%s10988_s3 + $0x120] sm:$0xff]  }
 0x144   : > { %v1097_v35 = vor.u32 %v1095_v38, %v1094_v17  ;;  %v1099_v37 = vrot.slane %v1094_v17, 4  ;;  %v10077_v44 = vrot.slane %v1135_v32, 7  ;;  %v9503_v46 = vld [vmem:[#allocation2 + $0x84] sm:$0xff]   ;;  %v778_v36 = vmax.f32 %v738_v27, 0.0  ;;  %v9507_v51 = vld [vmem:[#allocation2 + $0x90] sm:$0xff]  }
 0x145   : > { %v1115_v21 = vsel %vm9881_vm8, %v1107_v5, %v1114_v0  ;;  %v1297_v23 = vsel %vm9701_vm2, %v1116_v13, %v1296_v19  ;;  %v9505_v61 = vld [vmem:[#allocation2 + $0x84] sm:$0xff]   ;;  %v10083_v48 = vrot.slane %v1118_v41, 7  ;;  %v8166_v53 = vpack.c.bf16 %v780_v45, %v780_v45  ;;  %8880 = vmatpush3.bf16.msra.mxu1 %v9502_v3  ;;  %v9508_v62 = vld [vmem:[#allocation2 + $0x90] sm:$0xff]   ;;  %v10098_v4 = vld [vmem:[#allocation2 + $0xc] sm:$0xf] }
 0x146   : > { %1295 = vst [vmem:[#allocation2 + $0xac] sm:$0xf] %v1115_v21  ;;  %1298 = vst [vmem:[#allocation2 + $0xb0] sm:$0x1] %v1297_v23  ;;  %v1098_v1 = vsel %vm9881_vm8, %v1090_v16, %v1097_v35  ;;  %v1290_v47 = vsel %vm9701_vm2, %v1099_v37, %v1289_v29  ;;  %v1140_v50 = vor.u32 %v1138_v33, %v10077_v44  ;;  %8722 = vmatmul.mubr.bf16.gmra.mrb[52].mxu0 %v9503_v46  ;;  %v3664_v2 = vld [vmem:[#allocation2 + $0x14] sm:$0x1] }
 0x147   : > { %1288 = vst [vmem:[#allocation2 + $0xa0] sm:$0xf] %v1098_v1  ;;  %1291 = vst [vmem:[#allocation2 + $0xa4] sm:$0x1] %v1290_v47  ;;  %v3711_v56 = vshrl.u32 %v3662_v34, 16  ;;  %v10091_v55 = vrot.slane %v1862_v59, 4  ;;  %v1123_v58 = vor.u32 %v1121_v42, %v10083_v48  ;;  %v8164_v30 = vpack.c.bf16 %v778_v36, %v778_v36  ;;  %8865 = vmatprep.mubr.bf16.mxu1 %v9505_v61 }
 0x148   : > { %v1141_v57 = vrot.slane %v10077_v44, 4  ;;  %8881 = vmatprep.subr.bf16.mxu1 %v9506_v49  ;;  %v3714_v3 = vshll.u32 %v3662_v34, 16  ;;  %v1307_v9 = vsel %vm9874_vm7, %v1140_v50, %v1306_v39  ;;  %v1124_v59 = vrot.slane %v10083_v48, 4  ;;  %8725 = vmatprep.mubr.bf16.mxu0 %v9507_v51  ;;  %v1310_v11 = vld [vmem:[#allocation2 + $0xc8] sm:$0x1]  ;;  %v9594_v31 = vld [vmem:[%s10990_s5 + $0x20] sm:$0xff]  }
 0x149   : > { %v1143_v5 = vshrl.u32 %v8166_v53, 16  ;;  %1308 = vst [vmem:[#allocation2 + $0xc0] sm:$0xf] %v1307_v9  ;;  %v1300_v6 = vsel %vm9874_vm7, %v1123_v58, %v1299_v40  ;;  %v1146_v7 = vshll.u32 %v8166_v53, 16  ;;  %v1126_v12 = vshrl.u32 %v8164_v30, 16  ;;  %8866 = vmatmul.mubr.bf16.gmra.mrb[4].mxu1 %v9508_v62  ;;  %v9518_v45 = vld [vmem:[%s10988_s3 + $0x128] sm:$0xff]  }
 0x14a   : > { %1301 = vst [vmem:[#allocation2 + $0xb4] sm:$0xf] %v1300_v6  ;;  %v1303_v19 = vld [vmem:[#allocation2 + $0xbc] sm:$0x1]  ;;  %8882 = vmatpush3.bf16.msra.mxu1 %v9506_v49  ;;  %v3713_v38 = vrot.slane %v3711_v56, 4  ;;  %v3716_v60 = vrot.slane %v3714_v3, 5  ;;  %v1858_v49 = vsel %vm10112_vm11, %v9910_v18, %v9863_v8  ;;  %v1868_v48 = vsel %vm10112_vm11, %v10091_v55, %v9869_v14 }
 0x14b   : > { %v1145_v16 = vrot.slane %v1143_v5, 7  ;;  %v3720_v24 = vshll.u32 %v10086_v54, 16  ;;  %v1128_v15 = vrot.slane %v1126_v12, 7  ;;  %v1129_v26 = vshll.u32 %v8164_v30, 16  ;;  %8883 = vmatprep.subr.bf16.mxu1 %v9510_v63  ;;  %v1798_v28 = vld [vmem:[#allocation2 + $0x10] sm:$0xf] }
 0x14c   : > { %v3724_v25 = vshrl.u32 %v10086_v54, 16  ;;  %v3730_v20 = vshll.u32 %v3664_v2, 16  ;;  %v3717_v27 = vor.u32 %v3716_v60, %v3713_v38  ;;  %v1870_v0 = vshrl.u32 %v10098_v4, 16  ;;  %v1800_v34 = vld [vmem:[#allocation2 + $0x18] sm:$0xf]  ;;  %v9522_v58 = vld [vmem:[%s10988_s3 + $0x130] sm:$0xff]  }
 0x14d   : > { %v1148_v17 = vor.u32 %v1146_v7, %v1145_v16  ;;  %v1150_v29 = vrot.slane %v1145_v16, 4  ;;  %v1131_v13 = vor.u32 %v1129_v26, %v1128_v15  ;;  %v1133_v32 = vrot.slane %v1128_v15, 4  ;;  %v9515_v41 = vld [vmem:[#allocation2 + $0xa8] sm:$0xff]   ;;  %v1799_v21 = vld [vmem:[#allocation2 + $0x14] sm:$0x1]  ;;  %v9525_v12 = vld [vmem:[%s10988_s3 + $0x138] sm:$0xff]  }
 0x14e   : > { %v9511_v33 = vld [vmem:[#allocation2 + $0x9c] sm:$0xff]   ;;  %8884 = vmatpush3.bf16.msra.mxu1 %v9510_v63  ;;  %v3722_v42 = vrot.slane %v3720_v24, 5  ;;  %v9516_v40 = vld [vmem:[#allocation2 + $0xa8] sm:$0xff]   ;;  %v3718_v46 = vrot.slane %v3717_v27, 4  ;;  %v3726_v61 = vrot.slane %v3724_v25, 4  ;;  %v3732_v8 = vrot.slane %v3730_v20, 5 }
 0x14f   : > { %v1149_v35 = vsel %vm9881_vm8, %v1141_v57, %v1148_v17  ;;  %v1311_v37 = vsel %vm9701_vm2, %v1150_v29, %v1310_v11  ;;  %v9513_v39 = vld [vmem:[#allocation2 + $0x9c] sm:$0xff]   ;;  %v1132_v23 = vsel %vm9881_vm8, %v1124_v59, %v1131_v13  ;;  %v1304_v44 = vsel %vm9701_vm2, %v1133_v32, %v1303_v19  ;;  %8726 = vmatmul.mubr.bf16.gmra.mrb[56].mxu0 %v9511_v33  ;;  %v3665_v7 = vld [vmem:[#allocation2 + $0x18] sm:$0xf] }
 0x150   : > { %1309 = vst [vmem:[#allocation2 + $0xc4] sm:$0xf] %v1149_v35  ;;  %1312 = vst [vmem:[#allocation2 + $0xc8] sm:$0x1] %v1311_v37  ;;  %8885 = vmatprep.subr.bf16.mxu1 %v9514_v22  ;;  %v1801_v1 = vld [vmem:[#allocation2 + $0x1c] sm:$0xf]  ;;  %8869 = vmatprep.mubr.bf16.mxu1 %v9513_v39  ;;  %v3727_v47 = vor.u32 %v3726_v61, %v3722_v42  ;;  %v3723_v30 = vsel %vm10112_vm11, %v3718_v46, %v3722_v42 }
 0x151   : > { %1302 = vst [vmem:[#allocation2 + $0xb8] sm:$0xf] %v1132_v23  ;;  %1305 = vst [vmem:[#allocation2 + $0xbc] sm:$0x1] %v1304_v44  ;;  %8729 = vmatprep.mubr.bf16.mxu0 %v9515_v41  ;;  %v1872_v43 = vrot.slane %v1870_v0, 4  ;;  %v1873_v18 = vshll.u32 %v10098_v4, 16  ;;  %8870 = vmatmul.mubr.bf16.gmra.mrb[8].mxu1 %v9516_v40  ;;  %v7737_v15 = vcombine.low %v1858_v49, %v1868_v48 }
 0x152   : > { %v1879_v10 = vshll.u32 %v1798_v28, 16  ;;  %v1883_v36 = vshrl.u32 %v1798_v28, 16  ;;  %v1889_v50 = vshll.u32 %v1799_v21, 16  ;;  %8886 = vmatpush3.bf16.msra.mxu1 %v9514_v22  ;;  %v1802_v54 = vld [vmem:[#allocation2 + $0x20] sm:$0x1]  ;;  %v1894_v56 = vshrl.u32 %v1800_v34, 16 }
 0x153   : > { %v1875_v53 = vrot.slane %v1873_v18, 5  ;;  %v1897_v57 = vshll.u32 %v1800_v34, 16  ;;  %8887 = vmatprep.subr.bf16.mxu1 %v9518_v45  ;;  %v3728_v62 = vrot.slane %v3727_v47, 4  ;;  %v1903_v2 = vshll.u32 %v1801_v1, 16  ;;  %v3666_v11 = vld [vmem:[#allocation2 + $0x1c] sm:$0xf] }
 0x154   : > { %v1881_v51 = vrot.slane %v1879_v10, 5  ;;  %v1885_v63 = vrot.slane %v1883_v36, 4  ;;  %v1896_v55 = vrot.slane %v1894_v56, 4  ;;  %v1907_v4 = vshrl.u32 %v1801_v1, 16  ;;  %v3667_v27 = vld [vmem:[#allocation2 + $0x20] sm:$0x1] }
 0x155   : > { %v1876_v14 = vor.u32 %v1875_v53, %v1872_v43  ;;  %v1899_v3 = vrot.slane %v1897_v57, 5  ;;  %v3733_v9 = vsel %vm10112_vm11, %v3728_v62, %v3732_v8  ;;  %v1905_v5 = vrot.slane %v1903_v2, 5  ;;  %v3668_v35 = vld [vmem:[#allocation2 + $0x24] sm:$0xf]  ;;  %v3669_v21 = vld [vmem:[#allocation2 + $0x28] sm:$0xf] }
 0x156   : > { %v1886_v59 = vor.u32 %v1885_v63, %v1881_v51  ;;  %v1913_v6 = vshll.u32 %v1802_v54, 16  ;;  %8888 = vmatpush3.bf16.msra.mxu1 %v9518_v45  ;;  %v1891_v19 = vrot.slane %v1889_v50, 5  ;;  %v1909_v38 = vrot.slane %v1907_v4, 4  ;;  %v10154_v39 = vld [vmem:[%s10988_s3 + $0x140] sm:$0xff]   ;;  %v3670_v8 = vld [vmem:[#allocation2 + $0x2c] sm:$0x1] }
 0x157   : > { %v1877_v16 = vrot.slane %v1876_v14, 4  ;;  %v1900_v22 = vor.u32 %v1899_v3, %v1896_v55  ;;  %8889 = vmatprep.subr.bf16.mxu1 %v9522_v58  ;;  %v7873_v24 = vcombine.low %v3723_v30, %v3733_v9  ;;  %v9523_v0 = vld [vmem:[#allocation2 + $0xc0] sm:$0xff]   ;;  %v3735_v32 = vshrl.u32 %v3665_v7, 16  ;;  %v1804_v56 = vld [vmem:[#allocation2 + $0x28] sm:$0xf] }
 0x158   : > { %v9519_v60 = vld [vmem:[#allocation2 + $0xb4] sm:$0xff]   ;;  %v1887_v26 = vrot.slane %v1886_v59, 4  ;;  %v1910_v17 = vor.u32 %v1909_v38, %v1905_v5  ;;  %v1915_v29 = vrot.slane %v1913_v6, 5  ;;  %v3738_v33 = vshll.u32 %v3665_v7, 16  ;;  %v1803_v46 = vld [vmem:[#allocation2 + $0x24] sm:$0xf] }
 0x159   : > { %v9521_v25 = vld [vmem:[#allocation2 + $0xb4] sm:$0xff]   ;;  %v1882_v20 = vsel %vm10112_vm11, %v1877_v16, %v1881_v51  ;;  %v1901_v28 = vrot.slane %v1900_v22, 4  ;;  %8730 = vmatmul.mubr.bf16.gmra.mrb[60].mxu0 %v9519_v60  ;;  %v3744_v34 = vshll.u32 %v3666_v11, 16  ;;  %v3748_v49 = vshrl.u32 %v3666_v11, 16  ;;  %v9532_v63 = vld [vmem:[%s10988_s3 + $0x88] sm:$0xff]  }
 0x15a   : > { %v1892_v13 = vsel %vm10112_vm11, %v1887_v26, %v1891_v19  ;;  %8873 = vmatprep.mubr.bf16.mxu1 %v9521_v25  ;;  %8890 = vmatpush3.bf16.msra.mxu1 %v9522_v58  ;;  %v1911_v42 = vrot.slane %v1910_v17, 4  ;;  %v3737_v23 = vrot.slane %v3735_v32, 4  ;;  %v3740_v44 = vrot.slane %v3738_v33, 5  ;;  %v1805_v3 = vld [vmem:[#allocation2 + $0x2c] sm:$0x1]  ;;  %v9533_v25 = vld [vmem:[%s10988_s3 + $0x90] sm:$0xff]  }
 0x15b   : > { %v7738_v37 = vcombine.low %v1882_v20, %v1892_v13  ;;  %v1906_v41 = vsel %vm10112_vm11, %v1901_v28, %v1905_v5  ;;  %8874 = vmatmul.mubr.bf16.gmra.mrb[12].mxu1 %v9523_v0  ;;  %8891 = vmatprep.subr.bf16.mxu1 %v9525_v12  ;;  %v3746_v40 = vrot.slane %v3744_v34, 5  ;;  %v3754_v45 = vshll.u32 %v3667_v27, 16  ;;  %v1806_v7 = vld [vmem:[#allocation2 + $0x30] sm:$0xf]  ;;  %v1807_v22 = vld [vmem:[#allocation2 + $0x34] sm:$0xf] }
 0x15c   : > { %8893 = vmatprep.mubr.bf16.mxu1 %v7873_v24  ;;  %8749 = vmatprep.mubr.bf16.mxu0 %v7737_v15  ;;  %v1916_v61 = vsel %vm10112_vm11, %v1911_v42, %v1915_v29  ;;  %v3750_v1 = vrot.slane %v3748_v49, 4  ;;  %v3759_v43 = vshrl.u32 %v3668_v35, 16  ;;  %v3762_v18 = vshll.u32 %v3668_v35, 16  ;;  %v9527_v26 = vld [vmem:[%s10988_s3 + $0x148] sm:$0xff]   ;;  %v1808_v13 = vld [vmem:[#allocation2 + $0x38] sm:$0x1] }
 0x15d   : > { %v7739_v10 = vcombine.low %v1906_v41, %v1916_v61  ;;  %v3741_v47 = vor.u32 %v3740_v44, %v3737_v23  ;;  %v3756_v48 = vrot.slane %v3754_v45, 5  ;;  %v3768_v36 = vshll.u32 %v3669_v21, 16  ;;  %v3672_v42 = vld [vmem:[#allocation2 + $0x34] sm:$0xf] }
 0x15e   : > { %8892 = vmatpush3.bf16.msra.mxu1 %v9525_v12  ;;  %v3751_v50 = vor.u32 %v3750_v1, %v3746_v40  ;;  %v3761_v53 = vrot.slane %v3759_v43, 4  ;;  %v3764_v51 = vrot.slane %v3762_v18, 5  ;;  %v3772_v54 = vshrl.u32 %v3669_v21, 16  ;;  %v3673_v18 = vld [vmem:[#allocation2 + $0x38] sm:$0x1] }
 0x15f   : > { %8925 = vmatprep.subr.bf16.mxu1 %v10154_v39  ;;  %v3742_v57 = vrot.slane %v3741_v47, 4  ;;  %v3770_v58 = vrot.slane %v3768_v36, 5  ;;  %v3778_v30 = vshll.u32 %v3670_v8, 16  ;;  %v1918_v62 = vshrl.u32 %v1803_v46, 16 }
 0x160   : > { %v3752_v2 = vrot.slane %v3751_v50, 4  ;;  %v3765_v14 = vor.u32 %v3764_v51, %v3761_v53  ;;  %v3774_v55 = vrot.slane %v3772_v54, 4  ;;  %v1921_v4 = vshll.u32 %v1803_v46, 16  ;;  %v3674_v51 = vld [vmem:[#allocation2 + $0x3c] sm:$0xf] }
 0x161   : > { %8750 = vmatmul.mubr.bf16.vlgmr.msra.gmra.mrb[32].mxu0 %v7738_v37  ;;  %v3747_v9 = vsel %vm10112_vm11, %v3742_v57, %v3746_v40  ;;  %v3780_v59 = vrot.slane %v3778_v30, 5  ;;  %v1920_v5 = vrot.slane %v1918_v62, 4  ;;  %v1927_v6 = vshll.u32 %v1804_v56, 16  ;;  %v9528_v40 = vld [vmem:[%s10988_s3 + $0x150] sm:$0xff]   ;;  %v3675_v30 = vld [vmem:[#allocation2 + $0x40] sm:$0xf] }
 0x162   : > { %8753 = vmatprep.mubr.bf16.mxu0 %v7739_v10  ;;  %v3757_v11 = vsel %vm10112_vm11, %v3752_v2, %v3756_v48  ;;  %v3766_v12 = vrot.slane %v3765_v14, 4  ;;  %v3775_v16 = vor.u32 %v3774_v55, %v3770_v58  ;;  %v1923_v19 = vrot.slane %v1921_v4, 5  ;;  %8782 = vmatpush3.bf16.msra.mxu0 %v10019_v52  ;;  %v3671_v52 = vld [vmem:[#allocation2 + $0x30] sm:$0xf]  ;;  %v9529_v62 = vld [vmem:[%s10988_s3 + $0x158] sm:$0xff]  }
 0x163   : > { %v7874_v38 = vcombine.low %v3747_v9, %v3757_v11  ;;  %v1929_v60 = vrot.slane %v1927_v6, 5  ;;  %v1931_v24 = vshrl.u32 %v1804_v56, 16  ;;  %v1937_v15 = vshll.u32 %v1805_v3, 16  ;;  %8783 = vmatprep.subr.bf16.mxu0 %v9532_v63  ;;  %v9536_v3 = vld [vmem:[%s10988_s3 + $0xa0] sm:$0xff]  }
 0x164   : > { %v3771_v20 = vsel %vm10112_vm11, %v3766_v12, %v3770_v58  ;;  %v3776_v28 = vrot.slane %v3775_v16, 4  ;;  %v1924_v17 = vor.u32 %v1923_v19, %v1920_v5  ;;  %v1942_v29 = vshrl.u32 %v1806_v7, 16  ;;  %v1809_v19 = vld [vmem:[#allocation2 + $0x3c] sm:$0xf] }
 0x165   : > { %8894 = vmatmul.mubr.bf16.vlgmr.msra.gmra.mrb[16].mxu1 %v7874_v38  ;;  %v1933_v27 = vrot.slane %v1931_v24, 4  ;;  %v1939_v0 = vrot.slane %v1937_v15, 5  ;;  %v1945_v32 = vshll.u32 %v1806_v7, 16  ;;  %v1951_v33 = vshll.u32 %v1807_v22, 16  ;;  %v1810_v15 = vld [vmem:[#allocation2 + $0x40] sm:$0xf] }
 0x166   : > { %8926 = vmatpush3.bf16.msra.mxu1 %v10154_v39  ;;  %v3781_v34 = vsel %vm10112_vm11, %v3776_v28, %v3780_v59  ;;  %v1925_v35 = vrot.slane %v1924_v17, 4  ;;  %v1944_v37 = vrot.slane %v1942_v29, 4  ;;  %v1955_v41 = vshrl.u32 %v1807_v22, 16  ;;  %8784 = vmatpush3.bf16.msra.mxu0 %v9532_v63  ;;  %v9535_v39 = vld [vmem:[%s10988_s3 + $0x98] sm:$0xff]   ;;  %v3676_v59 = vld [vmem:[#allocation2 + $0x44] sm:$0x1] }
 0x167   : > { %v7875_v49 = vcombine.low %v3771_v20, %v3781_v34  ;;  %v1934_v21 = vor.u32 %v1933_v27, %v1929_v60  ;;  %8927 = vmatprep.subr.bf16.mxu1 %v9527_v26  ;;  %v1947_v23 = vrot.slane %v1945_v32, 5  ;;  %v1953_v44 = vrot.slane %v1951_v33, 5  ;;  %8785 = vmatprep.subr.bf16.mxu0 %v9533_v25  ;;  %v9538_v29 = vld [vmem:[%s10988_s3 + $0xa8] sm:$0xff]  }
 0x168   : > { %v1930_v45 = vsel %vm10112_vm11, %v1925_v35, %v1929_v60  ;;  %v1957_v46 = vrot.slane %v1955_v41, 4  ;;  %v1961_v61 = vshll.u32 %v1808_v13, 16  ;;  %v3783_v1 = vshrl.u32 %v3671_v52, 16  ;;  %v1812_v41 = vld [vmem:[#allocation2 + $0x48] sm:$0xf] }
 0x169   : > { %8897 = vmatprep.mubr.bf16.mxu1 %v7875_v49  ;;  %v1935_v8 = vrot.slane %v1934_v21, 4  ;;  %v1948_v43 = vor.u32 %v1947_v23, %v1944_v37  ;;  %v3786_v10 = vshll.u32 %v3671_v52, 16  ;;  %v3792_v47 = vshll.u32 %v3672_v42, 16 }
 0x16a   : > { %v1958_v48 = vor.u32 %v1957_v46, %v1953_v44  ;;  %v1963_v36 = vrot.slane %v1961_v61, 5  ;;  %v3785_v50 = vrot.slane %v3783_v1, 4  ;;  %v3796_v53 = vshrl.u32 %v3672_v42, 16  ;;  %8928 = vmatpush3.bf16.msra.mxu1 %v9527_v26  ;;  %8786 = vmatpush3.bf16.msra.mxu0 %v9533_v25  ;;  %v9531_v26 = vld [vmem:[%s10988_s3 + $0x160] sm:$0xff]   ;;  %v9539_v1 = vld [vmem:[%s10988_s3 + $0xb0] sm:$0xff]  }
 0x16b   : > { %v1940_v54 = vsel %vm10112_vm11, %v1935_v8, %v1939_v0  ;;  %v1949_v56 = vrot.slane %v1948_v43, 4  ;;  %v3788_v57 = vrot.slane %v3786_v10, 5  ;;  %v3794_v58 = vrot.slane %v3792_v47, 5  ;;  %8929 = vmatprep.subr.bf16.mxu1 %v9528_v40  ;;  %8787 = vmatprep.subr.bf16.mxu0 %v9535_v39  ;;  %v1811_v0 = vld [vmem:[#allocation2 + $0x44] sm:$0x1] }
 0x16c   : > { %v7740_v63 = vcombine.low %v1930_v45, %v1940_v54  ;;  %v1959_v2 = vrot.slane %v1958_v48, 4  ;;  %v3798_v14 = vrot.slane %v3796_v53, 4  ;;  %v3802_v55 = vshll.u32 %v3673_v18, 16  ;;  %v1814_v18 = vld [vmem:[#allocation2 + $0x50] sm:$0x1] }
 0x16d   : > { %v1954_v4 = vsel %vm10112_vm11, %v1949_v56, %v1953_v44  ;;  %v3789_v9 = vor.u32 %v3788_v57, %v3785_v50  ;;  %v3807_v5 = vshrl.u32 %v3674_v51, 16  ;;  %v3810_v6 = vshll.u32 %v3674_v51, 16  ;;  %v1813_v44 = vld [vmem:[#allocation2 + $0x4c] sm:$0xf]  ;;  %v3677_v51 = vld [vmem:[#allocation2 + $0x48] sm:$0xf] }
 0x16e   : > { %8754 = vmatmul.mubr.bf16.gmra.mrb[36].mxu0 %v7740_v63  ;;  %v1964_v7 = vsel %vm10112_vm11, %v1959_v2, %v1963_v36  ;;  %v3799_v11 = vor.u32 %v3798_v14, %v3794_v58  ;;  %v3804_v12 = vrot.slane %v3802_v55, 5  ;;  %v3816_v16 = vshll.u32 %v3675_v30, 16  ;;  %8930 = vmatpush3.bf16.msra.mxu1 %v9528_v40  ;;  %v9534_v40 = vld [vmem:[%s10988_s3 + $0x168] sm:$0xff]  }
 0x16f   : > { %v7741_v22 = vcombine.low %v1954_v4, %v1964_v7  ;;  %v3790_v38 = vrot.slane %v3789_v9, 4  ;;  %v3809_v60 = vrot.slane %v3807_v5, 4  ;;  %v3812_v24 = vrot.slane %v3810_v6, 5  ;;  %8931 = vmatprep.subr.bf16.mxu1 %v9529_v62  ;;  %8788 = vmatpush3.bf16.msra.mxu0 %v9535_v39  ;;  %v3678_v55 = vld [vmem:[#allocation2 + $0x4c] sm:$0xf]  ;;  %v9541_v6 = vld [vmem:[%s10988_s3 + $0xb8] sm:$0xff]  }
 0x170   : > { %v3800_v25 = vrot.slane %v3799_v11, 4  ;;  %v3818_v20 = vrot.slane %v3816_v16, 5  ;;  %v3820_v28 = vshrl.u32 %v3675_v30, 16  ;;  %v3826_v17 = vshll.u32 %v3676_v59, 16  ;;  %8789 = vmatprep.subr.bf16.mxu0 %v9536_v3  ;;  %v9537_v30 = vld [vmem:[%s10988_s3 + $0x170] sm:$0xff]  }
 0x171   : > { %8757 = vmatprep.mubr.bf16.mxu0 %v7741_v22  ;;  %v3795_v52 = vsel %vm10112_vm11, %v3790_v38, %v3794_v58  ;;  %v3813_v27 = vor.u32 %v3812_v24, %v3809_v60  ;;  %v1966_v13 = vshrl.u32 %v1809_v19, 16  ;;  %v1969_v32 = vshll.u32 %v1809_v19, 16  ;;  %v3679_v5 = vld [vmem:[#allocation2 + $0x50] sm:$0x1]  ;;  %v3680_v24 = vld [vmem:[#allocation2 + $0x54] sm:$0xf] }
 0x172   : > { %v3805_v33 = vsel %vm10112_vm11, %v3800_v25, %v3804_v12  ;;  %v3822_v34 = vrot.slane %v3820_v28, 4  ;;  %v3828_v35 = vrot.slane %v3826_v17, 5  ;;  %v1975_v37 = vshll.u32 %v1810_v15, 16  ;;  %8932 = vmatpush3.bf16.msra.mxu1 %v9529_v62  ;;  %v3681_v17 = vld [vmem:[#allocation2 + $0x58] sm:$0xf] }
 0x173   : > { %v7876_v42 = vcombine.low %v3795_v52, %v3805_v33  ;;  %v3814_v49 = vrot.slane %v3813_v27, 4  ;;  %v1968_v21 = vrot.slane %v1966_v13, 4  ;;  %v1971_v23 = vrot.slane %v1969_v32, 5  ;;  %8933 = vmatprep.subr.bf16.mxu1 %v9531_v26  ;;  %8790 = vmatpush3.bf16.msra.mxu0 %v9536_v3 }
 0x174   : > { %v3823_v39 = vor.u32 %v3822_v34, %v3818_v20  ;;  %v1977_v45 = vrot.slane %v1975_v37, 5  ;;  %v1979_v46 = vshrl.u32 %v1810_v15, 16  ;;  %v1985_v61 = vshll.u32 %v1811_v0, 16  ;;  %8791 = vmatprep.subr.bf16.mxu0 %v9538_v29  ;;  %v9540_v15 = vld [vmem:[%s10988_s3 + $0x178] sm:$0xff]  }
 0x175   : > { %8898 = vmatmul.mubr.bf16.gmra.mrb[20].mxu1 %v7876_v42  ;;  %v3819_v8 = vsel %vm10112_vm11, %v3814_v49, %v3818_v20  ;;  %v1972_v43 = vor.u32 %v1971_v23, %v1968_v21  ;;  %v1990_v10 = vshrl.u32 %v1812_v41, 16  ;;  %v1993_v47 = vshll.u32 %v1812_v41, 16  ;;  %v3682_v34 = vld [vmem:[#allocation2 + $0x5c] sm:$0x1]  ;;  %v1815_v21 = vld [vmem:[#allocation2 + $0x54] sm:$0xf] }
 0x176   : > { %v3824_v48 = vrot.slane %v3823_v39, 4  ;;  %v1981_v36 = vrot.slane %v1979_v46, 4  ;;  %v1987_v50 = vrot.slane %v1985_v61, 5  ;;  %v1999_v53 = vshll.u32 %v1813_v44, 16  ;;  %8934 = vmatpush3.bf16.msra.mxu1 %v9531_v26  ;;  %v9542_v23 = vld [vmem:[%s10988_s3 + $0x180] sm:$0xff]  }
 0x177   : > { %v1973_v54 = vrot.slane %v1972_v43, 4  ;;  %v1992_v56 = vrot.slane %v1990_v10, 4  ;;  %v1995_v57 = vrot.slane %v1993_v47, 5  ;;  %v2003_v58 = vshrl.u32 %v1813_v44, 16  ;;  %8935 = vmatprep.subr.bf16.mxu1 %v9534_v40  ;;  %8792 = vmatpush3.bf16.msra.mxu0 %v9538_v29  ;;  %v1816_v46 = vld [vmem:[#allocation2 + $0x58] sm:$0xf] }
 0x178   : > { %v3829_v62 = vsel %vm10112_vm11, %v3824_v48, %v3828_v35  ;;  %v1982_v63 = vor.u32 %v1981_v36, %v1977_v45  ;;  %v2001_v2 = vrot.slane %v1999_v53, 5  ;;  %v2009_v14 = vshll.u32 %v1814_v18, 16  ;;  %8793 = vmatprep.subr.bf16.mxu0 %v9539_v1  ;;  %v10243_v18 = vld [vmem:[%s10988_s3 + $0xc0] sm:$0xff]  }
 0x179   : > { %v7877_v3 = vcombine.low %v3819_v8, %v3829_v62  ;;  %v1978_v4 = vsel %vm10112_vm11, %v1973_v54, %v1977_v45  ;;  %v1996_v9 = vor.u32 %v1995_v57, %v1992_v56  ;;  %v2005_v59 = vrot.slane %v2003_v58, 4  ;;  %v1817_v54 = vld [vmem:[#allocation2 + $0x5c] sm:$0x1]  ;;  %v1818_v57 = vld [vmem:[#allocation2 + $0x60] sm:$0xf] }
 0x17a   : > { %v1983_v7 = vrot.slane %v1982_v63, 4  ;;  %v2011_v11 = vrot.slane %v2009_v14, 5  ;;  %v3831_v12 = vshrl.u32 %v3677_v51, 16  ;;  %v3834_v16 = vshll.u32 %v3677_v51, 16  ;;  %8936 = vmatpush3.bf16.msra.mxu1 %v9534_v40 }
 0x17b   : > { %8901 = vmatprep.mubr.bf16.mxu1 %v7877_v3  ;;  %v1997_v19 = vrot.slane %v1996_v9, 4  ;;  %v2006_v22 = vor.u32 %v2005_v59, %v2001_v2  ;;  %v3840_v38 = vshll.u32 %v3678_v55, 16  ;;  %v3844_v60 = vshrl.u32 %v3678_v55, 16  ;;  %8937 = vmatprep.subr.bf16.mxu1 %v9537_v30 }
 0x17c   : > { %v1988_v26 = vsel %vm10112_vm11, %v1983_v7, %v1987_v50  ;;  %v3833_v25 = vrot.slane %v3831_v12, 4  ;;  %v3836_v20 = vrot.slane %v3834_v16, 5  ;;  %v3850_v28 = vshll.u32 %v3679_v5, 16  ;;  %8794 = vmatpush3.bf16.msra.mxu0 %v9539_v1  ;;  %v1820_v12 = vld [vmem:[#allocation2 + $0x68] sm:$0x1] }
 0x17d   : > { %v7742_v29 = vcombine.low %v1978_v4, %v1988_v26  ;;  %v2002_v52 = vsel %vm10112_vm11, %v1997_v19, %v2001_v2  ;;  %v2007_v27 = vrot.slane %v2006_v22, 4  ;;  %v3842_v0 = vrot.slane %v3840_v38, 5  ;;  %8795 = vmatprep.subr.bf16.mxu0 %v9541_v6  ;;  %v1819_v2 = vld [vmem:[#allocation2 + $0x64] sm:$0xf]  ;;  %v3683_v22 = vld [vmem:[#allocation2 + $0x60] sm:$0xf] }
 0x17e   : > { %v3837_v13 = vor.u32 %v3836_v20, %v3833_v25  ;;  %v3846_v32 = vrot.slane %v3844_v60, 4  ;;  %v3852_v33 = vrot.slane %v3850_v28, 5  ;;  %v3855_v35 = vshrl.u32 %v3680_v24, 16  ;;  %8938 = vmatpush3.bf16.msra.mxu1 %v9537_v30  ;;  %v3684_v26 = vld [vmem:[#allocation2 + $0x64] sm:$0xf] }
 0x17f   : > { %8758 = vmatmul.mubr.bf16.gmra.mrb[40].mxu0 %v7742_v29  ;;  %v2012_v37 = vsel %vm10112_vm11, %v2007_v27, %v2011_v11  ;;  %v3858_v41 = vshll.u32 %v3680_v24, 16  ;;  %v3864_v42 = vshll.u32 %v3681_v17, 16  ;;  %v3868_v49 = vshrl.u32 %v3681_v17, 16  ;;  %8939 = vmatprep.subr.bf16.mxu1 %v9540_v15 }
 0x180   : > { %v7743_v44 = vcombine.low %v2002_v52, %v2012_v37  ;;  %v3838_v40 = vrot.slane %v3837_v13, 4  ;;  %v3847_v39 = vor.u32 %v3846_v32, %v3842_v0  ;;  %v3857_v45 = vrot.slane %v3855_v35, 4  ;;  %8796 = vmatpush3.bf16.msra.mxu0 %v9541_v6  ;;  %v3686_v37 = vld [vmem:[#allocation2 + $0x6c] sm:$0xf] }
 0x181   : > { %v3860_v61 = vrot.slane %v3858_v41, 5  ;;  %v3866_v1 = vrot.slane %v3864_v42, 5  ;;  %v3870_v8 = vrot.slane %v3868_v49, 4  ;;  %v3874_v43 = vshll.u32 %v3682_v34, 16  ;;  %8829 = vmatprep.subr.bf16.mxu0 %v10243_v18 }
 0x182   : > { %8761 = vmatprep.mubr.bf16.mxu0 %v7743_v44  ;;  %v3843_v10 = vsel %vm10112_vm11, %v3838_v40, %v3842_v0  ;;  %v3848_v47 = vrot.slane %v3847_v39, 4  ;;  %v2014_v48 = vshrl.u32 %v1815_v21, 16  ;;  %v2017_v36 = vshll.u32 %v1815_v21, 16  ;;  %8940 = vmatpush3.bf16.msra.mxu1 %v9540_v15  ;;  %v3685_v0 = vld [vmem:[#allocation2 + $0x68] sm:$0x1] }
 0x183   : > { %v3861_v50 = vor.u32 %v3860_v61, %v3857_v45  ;;  %v3871_v53 = vor.u32 %v3870_v8, %v3866_v1  ;;  %v3876_v51 = vrot.slane %v3874_v43, 5  ;;  %v2023_v56 = vshll.u32 %v1816_v46, 16  ;;  %8973 = vmatprep.subr.bf16.mxu1 %v9542_v23  ;;  %v3687_v45 = vld [vmem:[#allocation2 + $0x70] sm:$0xf] }
 0x184   : > { %v3853_v58 = vsel %vm10112_vm11, %v3848_v47, %v3852_v33  ;;  %v2016_v30 = vrot.slane %v2014_v48, 4  ;;  %v2019_v62 = vrot.slane %v2017_v36, 5  ;;  %v2027_v63 = vshrl.u32 %v1816_v46, 16  ;;  %v3688_v48 = vld [vmem:[#allocation2 + $0x74] sm:$0x1] }
 0x185   : > { %v7878_v14 = vcombine.low %v3843_v10, %v3853_v58  ;;  %v3862_v55 = vrot.slane %v3861_v50, 4  ;;  %v3872_v3 = vrot.slane %v3871_v53, 4  ;;  %v2025_v4 = vrot.slane %v2023_v56, 5  ;;  %v1821_v56 = vld [vmem:[#allocation2 + $0x6c] sm:$0xf] }
 0x186   : > { %v2020_v9 = vor.u32 %v2019_v62, %v2016_v30  ;;  %v2029_v59 = vrot.slane %v2027_v63, 4  ;;  %v2033_v5 = vshll.u32 %v1817_v54, 16  ;;  %v2038_v6 = vshrl.u32 %v1818_v57, 16  ;;  %v1822_v63 = vld [vmem:[#allocation2 + $0x70] sm:$0xf] }
 0x187   : > { %8902 = vmatmul.mubr.bf16.gmra.mrb[24].mxu1 %v7878_v14  ;;  %v3867_v7 = vsel %vm10112_vm11, %v3862_v55, %v3866_v1  ;;  %v3877_v11 = vsel %vm10112_vm11, %v3872_v3, %v3876_v51  ;;  %v2041_v16 = vshll.u32 %v1818_v57, 16  ;;  %v2047_v19 = vshll.u32 %v1819_v2, 16 }
 0x188   : > { %v7879_v38 = vcombine.low %v3867_v7, %v3877_v11  ;;  %v2021_v60 = vrot.slane %v2020_v9, 4  ;;  %v2030_v24 = vor.u32 %v2029_v59, %v2025_v4  ;;  %v2035_v15 = vrot.slane %v2033_v5, 5  ;;  %v1823_v5 = vld [vmem:[#allocation2 + $0x74] sm:$0x1] }
 0x189   : > { %v2040_v25 = vrot.slane %v2038_v6, 4  ;;  %v2043_v20 = vrot.slane %v2041_v16, 5  ;;  %v2049_v28 = vrot.slane %v2047_v19, 5  ;;  %v2051_v17 = vshrl.u32 %v1819_v2, 16  ;;  %v1824_v19 = vld [vmem:[#allocation2 + $0x78] sm:$0xf] }
 0x18a   : > { %8905 = vmatprep.mubr.bf16.mxu1 %v7879_v38  ;;  %v2026_v29 = vsel %vm10112_vm11, %v2021_v60, %v2025_v4  ;;  %v2031_v52 = vrot.slane %v2030_v24, 4  ;;  %v2057_v27 = vshll.u32 %v1820_v12, 16  ;;  %v3879_v13 = vshrl.u32 %v3683_v22, 16 }
 0x18b   : > { %v2044_v32 = vor.u32 %v2043_v20, %v2040_v25  ;;  %v2053_v33 = vrot.slane %v2051_v17, 4  ;;  %v3882_v34 = vshll.u32 %v3683_v22, 16  ;;  %v3888_v35 = vshll.u32 %v3684_v26, 16 }
 0x18c   : > { %v2036_v41 = vsel %vm10112_vm11, %v2031_v52, %v2035_v15  ;;  %v2059_v42 = vrot.slane %v2057_v27, 5  ;;  %v3881_v49 = vrot.slane %v3879_v13, 4  ;;  %v3892_v21 = vshrl.u32 %v3684_v26, 16  ;;  %v1825_v15 = vld [vmem:[#allocation2 + $0x7c] sm:$0xf] }
 0x18d   : > { %v7744_v23 = vcombine.low %v2026_v29, %v2036_v41  ;;  %v2045_v44 = vrot.slane %v2044_v32, 4  ;;  %v2054_v40 = vor.u32 %v2053_v33, %v2049_v28  ;;  %v3884_v39 = vrot.slane %v3882_v34, 5  ;;  %v1826_v52 = vld [vmem:[#allocation2 + $0x80] sm:$0x1] }
 0x18e   : > { %v3890_v46 = vrot.slane %v3888_v35, 5  ;;  %v3894_v61 = vrot.slane %v3892_v21, 4  ;;  %v3898_v1 = vshll.u32 %v3685_v0, 16  ;;  %v3903_v8 = vshrl.u32 %v3686_v37, 16  ;;  %v3689_v35 = vld [vmem:[#allocation2 + $0x78] sm:$0xf] }
 0x18f   : > { %8762 = vmatmul.mubr.bf16.gmra.mrb[44].mxu0 %v7744_v23  ;;  %v2050_v43 = vsel %vm10112_vm11, %v2045_v44, %v2049_v28  ;;  %v2055_v10 = vrot.slane %v2054_v40, 4  ;;  %v3885_v47 = vor.u32 %v3884_v39, %v3881_v49  ;;  %v3906_v36 = vshll.u32 %v3686_v37, 16  ;;  %v3690_v21 = vld [vmem:[#allocation2 + $0x7c] sm:$0xf] }
 0x190   : > { %v3895_v50 = vor.u32 %v3894_v61, %v3890_v46  ;;  %v3900_v53 = vrot.slane %v3898_v1, 5  ;;  %v3905_v51 = vrot.slane %v3903_v8, 4  ;;  %v3912_v54 = vshll.u32 %v3687_v45, 16 }
 0x191   : > { %v2060_v57 = vsel %vm10112_vm11, %v2055_v10, %v2059_v42  ;;  %v3886_v58 = vrot.slane %v3885_v47, 4  ;;  %v3908_v30 = vrot.slane %v3906_v36, 5  ;;  %v3916_v62 = vshrl.u32 %v3687_v45, 16  ;;  %v3691_v10 = vld [vmem:[#allocation2 + $0x80] sm:$0x1] }
 0x192   : > { %v7745_v2 = vcombine.low %v2050_v43, %v2060_v57  ;;  %v3896_v14 = vrot.slane %v3895_v50, 4  ;;  %v3914_v55 = vrot.slane %v3912_v54, 5  ;;  %v3922_v3 = vshll.u32 %v3688_v48, 16  ;;  %v3692_v54 = vld [vmem:[#allocation2 + $0x84] sm:$0xf] }
 0x193   : > { %v3891_v4 = vsel %vm10112_vm11, %v3886_v58, %v3890_v46  ;;  %v3909_v9 = vor.u32 %v3908_v30, %v3905_v51  ;;  %v3918_v59 = vrot.slane %v3916_v62, 4  ;;  %v2062_v6 = vshrl.u32 %v1821_v56, 16  ;;  %v3693_v62 = vld [vmem:[#allocation2 + $0x88] sm:$0xf] }
 0x194   : > { %8765 = vmatprep.mubr.bf16.mxu0 %v7745_v2  ;;  %v3901_v7 = vsel %vm10112_vm11, %v3896_v14, %v3900_v53  ;;  %v3924_v11 = vrot.slane %v3922_v3, 5  ;;  %v2065_v12 = vshll.u32 %v1821_v56, 16  ;;  %v2071_v16 = vshll.u32 %v1822_v63, 16 }
 0x195   : > { %v7880_v22 = vcombine.low %v3891_v4, %v3901_v7  ;;  %v3910_v38 = vrot.slane %v3909_v9, 4  ;;  %v3919_v60 = vor.u32 %v3918_v59, %v3914_v55  ;;  %v2064_v24 = vrot.slane %v2062_v6, 4  ;;  %v3694_v9 = vld [vmem:[#allocation2 + $0x8c] sm:$0x1] }
 0x196   : > { %v2067_v26 = vrot.slane %v2065_v12, 5  ;;  %v2073_v25 = vrot.slane %v2071_v16, 5  ;;  %v2075_v20 = vshrl.u32 %v1822_v63, 16  ;;  %v2081_v28 = vshll.u32 %v1823_v5, 16  ;;  %v1827_v16 = vld [vmem:[#allocation2 + $0x84] sm:$0xf] }
 0x197   : > { %8906 = vmatmul.mubr.bf16.gmra.mrb[28].mxu1 %v7880_v22  ;;  %v3915_v17 = vsel %vm10112_vm11, %v3910_v38, %v3914_v55  ;;  %v3920_v29 = vrot.slane %v3919_v60, 4  ;;  %v2086_v27 = vshrl.u32 %v1824_v19, 16  ;;  %v2089_v0 = vshll.u32 %v1824_v19, 16 }
 0x198   : > { %v2068_v13 = vor.u32 %v2067_v26, %v2064_v24  ;;  %v2077_v32 = vrot.slane %v2075_v20, 4  ;;  %v2083_v33 = vrot.slane %v2081_v28, 5  ;;  %v2095_v34 = vshll.u32 %v1825_v15, 16  ;;  %v1828_v24 = vld [vmem:[#allocation2 + $0x88] sm:$0xf] }
 0x199   : > { %v3925_v37 = vsel %vm10112_vm11, %v3920_v29, %v3924_v11  ;;  %v2088_v41 = vrot.slane %v2086_v27, 4  ;;  %v2091_v42 = vrot.slane %v2089_v0, 5  ;;  %v2099_v49 = vshrl.u32 %v1825_v15, 16 }
 0x19a   : > { %v7881_v23 = vcombine.low %v3915_v17, %v3925_v37  ;;  %v2069_v44 = vrot.slane %v2068_v13, 4  ;;  %v2078_v40 = vor.u32 %v2077_v32, %v2073_v25  ;;  %v2097_v39 = vrot.slane %v2095_v34, 5  ;;  %v1829_v32 = vld [vmem:[#allocation2 + $0x8c] sm:$0x1]  ;;  %v1830_v34 = vld [vmem:[#allocation2 + $0x90] sm:$0xf] }
 0x19b   : > { %v2092_v45 = vor.u32 %v2091_v42, %v2088_v41  ;;  %v2101_v46 = vrot.slane %v2099_v49, 4  ;;  %v2105_v61 = vshll.u32 %v1826_v52, 16  ;;  %v3927_v1 = vshrl.u32 %v3689_v35, 16  ;;  %v1831_v49 = vld [vmem:[#allocation2 + $0x94] sm:$0xf] }
 0x19c   : > { %8909 = vmatprep.mubr.bf16.mxu1 %v7881_v23  ;;  %v2074_v8 = vsel %vm10112_vm11, %v2069_v44, %v2073_v25  ;;  %v2079_v43 = vrot.slane %v2078_v40, 4  ;;  %v3930_v47 = vshll.u32 %v3689_v35, 16  ;;  %v3936_v48 = vshll.u32 %v3690_v21, 16 }
 0x19d   : > { %v2093_v36 = vrot.slane %v2092_v45, 4  ;;  %v2102_v50 = vor.u32 %v2101_v46, %v2097_v39  ;;  %v2107_v53 = vrot.slane %v2105_v61, 5  ;;  %v3929_v51 = vrot.slane %v3927_v1, 4 }
 0x19e   : > { %v2084_v56 = vsel %vm10112_vm11, %v2079_v43, %v2083_v33  ;;  %v3932_v57 = vrot.slane %v3930_v47, 5  ;;  %v3938_v58 = vrot.slane %v3936_v48, 5  ;;  %v3940_v30 = vshrl.u32 %v3690_v21, 16  ;;  %v1832_v43 = vld [vmem:[#allocation2 + $0x98] sm:$0x1] }
 0x19f   : > { %v7746_v63 = vcombine.low %v2074_v8, %v2084_v56  ;;  %v2098_v2 = vsel %vm10112_vm11, %v2093_v36, %v2097_v39  ;;  %v2103_v14 = vrot.slane %v2102_v50, 4  ;;  %v3946_v55 = vshll.u32 %v3691_v10, 16  ;;  %v3695_v48 = vld [vmem:[#allocation2 + $0x90] sm:$0xf] }
 0x1a0   : > { %v3933_v3 = vor.u32 %v3932_v57, %v3929_v51  ;;  %v3942_v4 = vrot.slane %v3940_v30, 4  ;;  %v3951_v59 = vshrl.u32 %v3692_v54, 16  ;;  %v3954_v5 = vshll.u32 %v3692_v54, 16  ;;  %v3696_v54 = vld [vmem:[#allocation2 + $0x94] sm:$0xf] }
 0x1a1   : > { %8766 = vmatmul.mubr.bf16.gmra.mrb[48].mxu0 %v7746_v63  ;;  %v2108_v6 = vsel %vm10112_vm11, %v2103_v14, %v2107_v53  ;;  %v3948_v7 = vrot.slane %v3946_v55, 5  ;;  %v3960_v11 = vshll.u32 %v3693_v62, 16  ;;  %v3964_v12 = vshrl.u32 %v3693_v62, 16  ;;  %v3697_v14 = vld [vmem:[#allocation2 + $0x98] sm:$0x1] }
 0x1a2   : > { %v7747_v19 = vcombine.low %v2098_v2, %v2108_v6  ;;  %v3934_v22 = vrot.slane %v3933_v3, 4  ;;  %v3943_v38 = vor.u32 %v3942_v4, %v3938_v58  ;;  %v3953_v60 = vrot.slane %v3951_v59, 4 }
 0x1a3   : > { %v3956_v15 = vrot.slane %v3954_v5, 5  ;;  %v3962_v26 = vrot.slane %v3960_v11, 5  ;;  %v3966_v25 = vrot.slane %v3964_v12, 4  ;;  %v3970_v20 = vshll.u32 %v3694_v9, 16  ;;  %v3698_v5 = vld [vmem:[#allocation2 + $0x9c] sm:$0xf] }
 0x1a4   : > { %8769 = vmatprep.mubr.bf16.mxu0 %v7747_v19  ;;  %v3939_v28 = vsel %vm10112_vm11, %v3934_v22, %v3938_v58  ;;  %v3944_v17 = vrot.slane %v3943_v38, 4  ;;  %v2110_v29 = vshrl.u32 %v1827_v16, 16  ;;  %v2113_v52 = vshll.u32 %v1827_v16, 16 }
 0x1a5   : > { %v3957_v27 = vor.u32 %v3956_v15, %v3953_v60  ;;  %v3967_v0 = vor.u32 %v3966_v25, %v3962_v26  ;;  %v3972_v13 = vrot.slane %v3970_v20, 5  ;;  %v2119_v33 = vshll.u32 %v1828_v24, 16  ;;  %v3699_v60 = vld [vmem:[#allocation2 + $0xa0] sm:$0xf] }
 0x1a6   : > { %v3949_v35 = vsel %vm10112_vm11, %v3944_v17, %v3948_v7  ;;  %v2112_v37 = vrot.slane %v2110_v29, 4  ;;  %v2115_v41 = vrot.slane %v2113_v52, 5  ;;  %v2123_v42 = vshrl.u32 %v1828_v24, 16  ;;  %v3700_v29 = vld [vmem:[#allocation2 + $0xa4] sm:$0x1] }
 0x1a7   : > { %v7882_v21 = vcombine.low %v3939_v28, %v3949_v35  ;;  %v3958_v23 = vrot.slane %v3957_v27, 4  ;;  %v3968_v44 = vrot.slane %v3967_v0, 4  ;;  %v2121_v40 = vrot.slane %v2119_v33, 5  ;;  %v1833_v33 = vld [vmem:[#allocation2 + $0x9c] sm:$0xf] }
 0x1a8   : > { %v2116_v39 = vor.u32 %v2115_v41, %v2112_v37  ;;  %v2125_v45 = vrot.slane %v2123_v42, 4  ;;  %v2129_v46 = vshll.u32 %v1829_v32, 16  ;;  %v2134_v61 = vshrl.u32 %v1830_v34, 16  ;;  %v1834_v42 = vld [vmem:[#allocation2 + $0xa0] sm:$0xf] }
 0x1a9   : > { %8910 = vmatmul.mubr.bf16.gmra.mrb[0].mxu1 %v7882_v21  ;;  %v3963_v1 = vsel %vm10112_vm11, %v3958_v23, %v3962_v26  ;;  %v3973_v8 = vsel %vm10112_vm11, %v3968_v44, %v3972_v13  ;;  %v2137_v10 = vshll.u32 %v1830_v34, 16  ;;  %v2143_v47 = vshll.u32 %v1831_v49, 16 }
 0x1aa   : > { %v7883_v36 = vcombine.low %v3963_v1, %v3973_v8  ;;  %v2117_v50 = vrot.slane %v2116_v39, 4  ;;  %v2126_v53 = vor.u32 %v2125_v45, %v2121_v40  ;;  %v2131_v51 = vrot.slane %v2129_v46, 5  ;;  %v1835_v46 = vld [vmem:[#allocation2 + $0xa4] sm:$0x1] }
 0x1ab   : > { %v2136_v56 = vrot.slane %v2134_v61, 4  ;;  %v2139_v57 = vrot.slane %v2137_v10, 5  ;;  %v2145_v58 = vrot.slane %v2143_v47, 5  ;;  %v2147_v30 = vshrl.u32 %v1831_v49, 16  ;;  %v1836_v47 = vld [vmem:[#allocation2 + $0xa8] sm:$0xf] }
 0x1ac   : > { %8913 = vmatprep.mubr.bf16.mxu1 %v7883_v36  ;;  %v2122_v62 = vsel %vm10112_vm11, %v2117_v50, %v2121_v40  ;;  %v2127_v63 = vrot.slane %v2126_v53, 4  ;;  %v2153_v2 = vshll.u32 %v1832_v43, 16  ;;  %v3975_v55 = vshrl.u32 %v3695_v48, 16 }
 0x1ad   : > { %v2140_v3 = vor.u32 %v2139_v57, %v2136_v56  ;;  %v2149_v4 = vrot.slane %v2147_v30, 4  ;;  %v3978_v9 = vshll.u32 %v3695_v48, 16  ;;  %v3984_v59 = vshll.u32 %v3696_v54, 16 }
 0x1ae   : > { %v2132_v6 = vsel %vm10112_vm11, %v2127_v63, %v2131_v51  ;;  %v2155_v7 = vrot.slane %v2153_v2, 5  ;;  %v3977_v11 = vrot.slane %v3975_v55, 4  ;;  %v3988_v12 = vshrl.u32 %v3696_v54, 16  ;;  %v1837_v51 = vld [vmem:[#allocation2 + $0xac] sm:$0xf] }
 0x1af   : > { %v7748_v16 = vcombine.low %v2122_v62, %v2132_v6  ;;  %v2141_v19 = vrot.slane %v2140_v3, 4  ;;  %v2150_v22 = vor.u32 %v2149_v4, %v2145_v58  ;;  %v3980_v38 = vrot.slane %v3978_v9, 5  ;;  %v1838_v63 = vld [vmem:[#allocation2 + $0xb0] sm:$0x1] }
 0x1b0   : > { %v3986_v24 = vrot.slane %v3984_v59, 5  ;;  %v3990_v15 = vrot.slane %v3988_v12, 4  ;;  %v3994_v26 = vshll.u32 %v3697_v14, 16  ;;  %v3999_v25 = vshrl.u32 %v3698_v5, 16  ;;  %v3701_v59 = vld [vmem:[#allocation2 + $0xa8] sm:$0xf] }
 0x1b1   : > { %8770 = vmatmul.mubr.bf16.gmra.mrb[52].mxu0 %v7748_v16  ;;  %v2146_v20 = vsel %vm10112_vm11, %v2141_v19, %v2145_v58  ;;  %v2151_v28 = vrot.slane %v2150_v22, 4  ;;  %v3981_v17 = vor.u32 %v3980_v38, %v3977_v11  ;;  %v4002_v52 = vshll.u32 %v3698_v5, 16  ;;  %v3702_v12 = vld [vmem:[#allocation2 + $0xac] sm:$0xf] }
 0x1b2   : > { %v3991_v27 = vor.u32 %v3990_v15, %v3986_v24  ;;  %v3996_v0 = vrot.slane %v3994_v26, 5  ;;  %v4001_v13 = vrot.slane %v3999_v25, 4  ;;  %v4008_v32 = vshll.u32 %v3699_v60, 16 }
 0x1b3   : > { %v2156_v34 = vsel %vm10112_vm11, %v2151_v28, %v2155_v7  ;;  %v3982_v35 = vrot.slane %v3981_v17, 4  ;;  %v4004_v37 = vrot.slane %v4002_v52, 5  ;;  %v4012_v41 = vshrl.u32 %v3699_v60, 16  ;;  %v3703_v60 = vld [vmem:[#allocation2 + $0xb0] sm:$0x1] }
 0x1b4   : > { %v7749_v49 = vcombine.low %v2146_v20, %v2156_v34  ;;  %v3992_v21 = vrot.slane %v3991_v27, 4  ;;  %v4010_v23 = vrot.slane %v4008_v32, 5  ;;  %v4018_v44 = vshll.u32 %v3700_v29, 16  ;;  %v3704_v20 = vld [vmem:[#allocation2 + $0xb4] sm:$0xf] }
 0x1b5   : > { %v3987_v40 = vsel %vm10112_vm11, %v3982_v35, %v3986_v24  ;;  %v4005_v39 = vor.u32 %v4004_v37, %v4001_v13  ;;  %v4014_v45 = vrot.slane %v4012_v41, 4  ;;  %v2158_v61 = vshrl.u32 %v1833_v33, 16  ;;  %v3705_v27 = vld [vmem:[#allocation2 + $0xb8] sm:$0xf] }
 0x1b6   : > { %8773 = vmatprep.mubr.bf16.mxu0 %v7749_v49  ;;  %v3997_v1 = vsel %vm10112_vm11, %v3992_v21, %v3996_v0  ;;  %v4020_v8 = vrot.slane %v4018_v44, 5  ;;  %v2161_v43 = vshll.u32 %v1833_v33, 16  ;;  %v2167_v10 = vshll.u32 %v1834_v42, 16 }
 0x1b7   : > { %v7884_v48 = vcombine.low %v3987_v40, %v3997_v1  ;;  %v4006_v36 = vrot.slane %v4005_v39, 4  ;;  %v4015_v50 = vor.u32 %v4014_v45, %v4010_v23  ;;  %v2160_v53 = vrot.slane %v2158_v61, 4  ;;  %v1839_v40 = vld [vmem:[#allocation2 + $0xb4] sm:$0xf]  ;;  %v1840_v1 = vld [vmem:[#allocation2 + $0xb8] sm:$0xf] }
 0x1b8   : > { %v2163_v54 = vrot.slane %v2161_v43, 5  ;;  %v2169_v56 = vrot.slane %v2167_v10, 5  ;;  %v2171_v57 = vshrl.u32 %v1834_v42, 16  ;;  %v2177_v58 = vshll.u32 %v1835_v46, 16  ;;  %v3706_v42 = vld [vmem:[#allocation2 + $0xbc] sm:$0x1] }
 0x1b9   : > { %8914 = vmatmul.mubr.bf16.gmra.mrb[4].mxu1 %v7884_v48  ;;  %v4011_v30 = vsel %vm10112_vm11, %v4006_v36, %v4010_v23  ;;  %v4016_v62 = vrot.slane %v4015_v50, 4  ;;  %v2182_v2 = vshrl.u32 %v1836_v47, 16  ;;  %v2185_v14 = vshll.u32 %v1836_v47, 16 }
 0x1ba   : > { %v2164_v55 = vor.u32 %v2163_v54, %v2160_v53  ;;  %v2173_v3 = vrot.slane %v2171_v57, 4  ;;  %v2179_v4 = vrot.slane %v2177_v58, 5  ;;  %v2191_v9 = vshll.u32 %v1837_v51, 16  ;;  %v1841_v58 = vld [vmem:[#allocation2 + $0xbc] sm:$0x1] }
 0x1bb   : > { %v4021_v5 = vsel %vm10112_vm11, %v4016_v62, %v4020_v8  ;;  %v2184_v6 = vrot.slane %v2182_v2, 4  ;;  %v2187_v7 = vrot.slane %v2185_v14, 5  ;;  %v2195_v11 = vshrl.u32 %v1837_v51, 16 }
 0x1bc   : > { %v7885_v16 = vcombine.low %v4011_v30, %v4021_v5  ;;  %v2165_v19 = vrot.slane %v2164_v55, 4  ;;  %v2174_v22 = vor.u32 %v2173_v3, %v2169_v56  ;;  %v2193_v38 = vrot.slane %v2191_v9, 5  ;;  %v3707_v30 = vld [vmem:[#allocation2 + $0xc0] sm:$0xf]  ;;  %v3708_v55 = vld [vmem:[#allocation2 + $0xc4] sm:$0xf] }
 0x1bd   : > { %v2188_v24 = vor.u32 %v2187_v7, %v2184_v6  ;;  %v2197_v15 = vrot.slane %v2195_v11, 4  ;;  %v2201_v26 = vshll.u32 %v1838_v63, 16  ;;  %v4023_v25 = vshrl.u32 %v3701_v59, 16 }
 0x1be   : > { %8917 = vmatprep.mubr.bf16.mxu1 %v7885_v16  ;;  %v2170_v28 = vsel %vm10112_vm11, %v2165_v19, %v2169_v56  ;;  %v2175_v17 = vrot.slane %v2174_v22, 4  ;;  %v4026_v29 = vshll.u32 %v3701_v59, 16  ;;  %v4032_v52 = vshll.u32 %v3702_v12, 16 }
 0x1bf   : > { %v2189_v0 = vrot.slane %v2188_v24, 4  ;;  %v2198_v13 = vor.u32 %v2197_v15, %v2193_v38  ;;  %v2203_v32 = vrot.slane %v2201_v26, 5  ;;  %v4025_v33 = vrot.slane %v4023_v25, 4 }
 0x1c0   : > { %v2180_v34 = vsel %vm10112_vm11, %v2175_v17, %v2179_v4  ;;  %v4028_v35 = vrot.slane %v4026_v29, 5  ;;  %v4034_v37 = vrot.slane %v4032_v52, 5  ;;  %v4036_v41 = vshrl.u32 %v3702_v12, 16  ;;  %v4480_v29 = vld [vmem:[#allocation2 + $0xc] sm:$0xe] }
 0x1c1   : > { %v7750_v49 = vcombine.low %v2170_v28, %v2180_v34  ;;  %v2194_v21 = vsel %vm10112_vm11, %v2189_v0, %v2193_v38  ;;  %v2199_v23 = vrot.slane %v2198_v13, 4  ;;  %v4042_v44 = vshll.u32 %v3703_v60, 16  ;;  %v3709_v38 = vld [vmem:[#allocation2 + $0xc8] sm:$0x1]  ;;  %v4481_v52 = vld [vmem:[#allocation2 + $0x10] sm:$0xf] }
 0x1c2   : > { %v4029_v39 = vor.u32 %v4028_v35, %v4025_v33  ;;  %v4038_v45 = vrot.slane %v4036_v41, 4  ;;  %v4047_v46 = vshrl.u32 %v3704_v20, 16  ;;  %v4050_v61 = vshll.u32 %v3704_v20, 16  ;;  %v4482_v41 = vld [vmem:[#allocation2 + $0x14] sm:$0x1] }
 0x1c3   : > { %8774 = vmatmul.mubr.bf16.gmra.mrb[56].mxu0 %v7750_v49  ;;  %v2204_v8 = vsel %vm10112_vm11, %v2199_v23, %v2203_v32  ;;  %v4044_v43 = vrot.slane %v4042_v44, 5  ;;  %v4056_v10 = vshll.u32 %v3705_v27, 16  ;;  %v4060_v47 = vshrl.u32 %v3705_v27, 16  ;;  %v2615_v32 = vld [vmem:[#allocation2] sm:$0xe] }
 0x1c4   : > { %v7751_v48 = vcombine.low %v2194_v21, %v2204_v8  ;;  %v4030_v36 = vrot.slane %v4029_v39, 4  ;;  %v4039_v50 = vor.u32 %v4038_v45, %v4034_v37  ;;  %v4049_v53 = vrot.slane %v4047_v46, 4  ;;  %v2617_v49 = vld [vmem:[#allocation2 + $0x8] sm:$0x1]  ;;  %v2618_v46 = vld [vmem:[#allocation2 + $0xc] sm:$0xe] }
 0x1c5   : > { %v4052_v51 = vrot.slane %v4050_v61, 5  ;;  %v4058_v54 = vrot.slane %v4056_v10, 5  ;;  %v4062_v56 = vrot.slane %v4060_v47, 4  ;;  %v4066_v57 = vshll.u32 %v3706_v42, 16  ;;  %v2616_v42 = vld [vmem:[#allocation2 + $0x4] sm:$0xf] }
 0x1c6   : > { %8777 = vmatprep.mubr.bf16.mxu0 %v7751_v48  ;;  %v4035_v62 = vsel %vm10112_vm11, %v4030_v36, %v4034_v37  ;;  %v4040_v63 = vrot.slane %v4039_v50, 4  ;;  %v2206_v2 = vshrl.u32 %v1839_v40, 16  ;;  %v2209_v14 = vshll.u32 %v1839_v40, 16  ;;  %v2619_v61 = vld [vmem:[#allocation2 + $0x10] sm:$0xf] }
 0x1c7   : > { %v4053_v3 = vor.u32 %v4052_v51, %v4049_v53  ;;  %v4063_v4 = vor.u32 %v4062_v56, %v4058_v54  ;;  %v4068_v9 = vrot.slane %v4066_v57, 5  ;;  %v2215_v59 = vshll.u32 %v1840_v1, 16  ;;  %v2620_v48 = vld [vmem:[#allocation2 + $0x14] sm:$0x1]  ;;  %v2622_v56 = vld [vmem:[#allocation2 + $0x1c] sm:$0xf] }
 0x1c8   : > { %v4045_v5 = vsel %vm10112_vm11, %v4040_v63, %v4044_v43  ;;  %v2208_v6 = vrot.slane %v2206_v2, 4  ;;  %v2211_v7 = vrot.slane %v2209_v14, 5  ;;  %v2219_v11 = vshrl.u32 %v1840_v1, 16  ;;  %v2623_v63 = vld [vmem:[#allocation2 + $0x20] sm:$0x1] }
 0x1c9   : > { %v7886_v12 = vcombine.low %v4035_v62, %v4045_v5  ;;  %v4054_v16 = vrot.slane %v4053_v3, 4  ;;  %v4064_v19 = vrot.slane %v4063_v4, 4  ;;  %v2217_v22 = vrot.slane %v2215_v59, 5  ;;  %v4483_v2 = vld [vmem:[#allocation2 + $0x18] sm:$0xe] }
 0x1ca   : > { %v2212_v60 = vor.u32 %v2211_v7, %v2208_v6  ;;  %v2221_v24 = vrot.slane %v2219_v11, 4  ;;  %v2225_v15 = vshll.u32 %v1841_v58, 16  ;;  %v4071_v26 = vshrl.u32 %v3707_v30, 16  ;;  %v4485_v11 = vld [vmem:[#allocation2 + $0x20] sm:$0x1] }
 0x1cb   : > { %8918 = vmatmul.mubr.bf16.gmra.mrb[8].mxu1 %v7886_v12  ;;  %v4059_v25 = vsel %vm10112_vm11, %v4054_v16, %v4058_v54  ;;  %v4069_v20 = vsel %vm10112_vm11, %v4064_v19, %v4068_v9  ;;  %v4074_v28 = vshll.u32 %v3707_v30, 16  ;;  %v4080_v17 = vshll.u32 %v3708_v55, 16  ;;  %v2621_v54 = vld [vmem:[#allocation2 + $0x18] sm:$0xe]  ;;  %v4484_v9 = vld [vmem:[#allocation2 + $0x1c] sm:$0xf] }
 0x1cc   : > { %v7887_v27 = vcombine.low %v4059_v25, %v4069_v20  ;;  %v2213_v0 = vrot.slane %v2212_v60, 4  ;;  %v2222_v13 = vor.u32 %v2221_v24, %v2217_v22  ;;  %v4073_v33 = vrot.slane %v4071_v26, 4  ;;  %v4486_v12 = vld [vmem:[#allocation2 + $0x24] sm:$0xe]  ;;  %v4487_v16 = vld [vmem:[#allocation2 + $0x28] sm:$0xf] }
 0x1cd   : > { %v4076_v34 = vrot.slane %v4074_v28, 5  ;;  %v4082_v35 = vrot.slane %v4080_v17, 5  ;;  %v4084_v37 = vshrl.u32 %v3708_v55, 16  ;;  %v2227_v23 = vrot.slane %v2225_v15, 5  ;;  %v4488_v24 = vld [vmem:[#allocation2 + $0x2c] sm:$0x1] }
 0x1ce   : > { %8921 = vmatprep.mubr.bf16.mxu1 %v7887_v27  ;;  %v2223_v21 = vrot.slane %v2222_v13, 4  ;;  %v4090_v44 = vshll.u32 %v3709_v38, 16  ;;  %v2218_v40 = vsel %vm10112_vm11, %v2213_v0, %v2217_v22  ;;  %v7897_v10 = vrot.slane %v4480_v29, 9  ;;  %v2625_v28 = vld [vmem:[#allocation2 + $0x28] sm:$0xf] }
 0x1cf   : > { %v4077_v39 = vor.u32 %v4076_v34, %v4073_v33  ;;  %v4086_v45 = vrot.slane %v4084_v37, 4  ;;  %v4578_v47 = vrot.slane %v4481_v52, 5  ;;  %v7761_v51 = vrot.slane %v2615_v32, 9  ;;  %v2624_v0 = vld [vmem:[#allocation2 + $0x24] sm:$0xe] }
 0x1d0   : > { %v2228_v1 = vsel %vm10112_vm11, %v2223_v21, %v2227_v23  ;;  %v4092_v8 = vrot.slane %v4090_v44, 5  ;;  %v4581_v58 = vrot.slane %v4482_v41, 5  ;;  %v2716_v30 = vrot.slane %v2616_v42, 5  ;;  %v2628_v13 = vld [vmem:[#allocation2 + $0x34] sm:$0xf] }
 0x1d1   : > { %v7752_v36 = vcombine.low %v2218_v40, %v2228_v1  ;;  %v4078_v50 = vrot.slane %v4077_v39, 4  ;;  %v4087_v53 = vor.u32 %v4086_v45, %v4082_v35  ;;  %v4580_v57 = vrot.slane %v4578_v47, 4  ;;  %v2627_v21 = vld [vmem:[#allocation2 + $0x30] sm:$0xe]  ;;  %v2629_v23 = vld [vmem:[#allocation2 + $0x38] sm:$0x1] }
 0x1d2   : > { %v2719_v62 = vrot.slane %v2617_v49, 5  ;;  %v4579_v3 = vsel %vm10322_vm14, %v7897_v10, %v4578_v47  ;;  %v2723_v4 = vrot.slane %v2619_v61, 5  ;;  %v2717_v5 = vsel %vm10322_vm14, %v7761_v51, %v2716_v30 }
 0x1d3   : > { %8778 = vmatmul.mubr.bf16.gmra.mrb[60].mxu0 %v7752_v36  ;;  %v4083_v14 = vsel %vm10112_vm11, %v4078_v50, %v4082_v35  ;;  %v4088_v55 = vrot.slane %v4087_v53, 4  ;;  %v4582_v59 = vsel %vm10322_vm14, %v4580_v57, %v4581_v58  ;;  %v2718_v6 = vrot.slane %v2716_v30, 4  ;;  %v2626_v35 = vld [vmem:[#allocation2 + $0x2c] sm:$0x1]  ;;  %v4489_v50 = vld [vmem:[#allocation2 + $0x30] sm:$0xe] }
 0x1d4   : > { %v7762_v7 = vrot.slane %v2618_v46, 9  ;;  %v7929_v22 = vcombine.low %v4579_v3, %v4582_v59  ;;  %v2725_v38 = vrot.slane %v2723_v4, 4  ;;  %v2726_v60 = vrot.slane %v2620_v48, 5  ;;  %v10346_v46 = vld [vmem:[#allocation2 + $0x34] sm:$0xf]  ;;  %v9599_v30 = vld [vmem:[%s10988_s3 + $0xc8] sm:$0xff]  }
 0x1d5   : > { %v4093_v19 = vsel %vm10112_vm11, %v4088_v55, %v4092_v8  ;;  %v2720_v26 = vsel %vm10322_vm14, %v2718_v6, %v2719_v62  ;;  %v7763_v25 = vrot.slane %v2621_v54, 9  ;;  %v2730_v20 = vrot.slane %v2622_v56, 5  ;;  %v4491_v53 = vld [vmem:[#allocation2 + $0x38] sm:$0x1]  ;;  %v4493_v58 = vld [vmem:[#allocation2 + $0x40] sm:$0xf] }
 0x1d6   : > { %v7888_v15 = vcombine.low %v4083_v14, %v4093_v19  ;;  %v7793_v17 = vcombine.low %v2717_v5, %v2720_v26  ;;  %v2727_v29 = vsel %vm10322_vm14, %v2725_v38, %v2726_v60  ;;  %v2733_v52 = vrot.slane %v2623_v63, 5  ;;  %v4492_v55 = vld [vmem:[#allocation2 + $0x3c] sm:$0xe]  ;;  %v4494_v59 = vld [vmem:[#allocation2 + $0x44] sm:$0x1] }
 0x1d7   : > { %v7898_v27 = vrot.slane %v4483_v2, 9  ;;  %v2724_v32 = vsel %vm10322_vm14, %v7762_v7, %v2723_v4  ;;  %v2732_v33 = vrot.slane %v2730_v20, 4  ;;  %v4585_v34 = vrot.slane %v4484_v9, 5  ;;  %v2631_v5 = vld [vmem:[#allocation2 + $0x40] sm:$0xf] }
 0x1d8   : > { %8922 = vmatmul.mubr.bf16.gmra.mrb[12].mxu1 %v7888_v15  ;;  %8797 = vmatprep.mubr.bf16.mxu0 %v7793_v17  ;;  %v7794_v37 = vcombine.low %v2724_v32, %v2727_v29  ;;  %v4588_v41 = vrot.slane %v4485_v11, 5  ;;  %v7899_v42 = vrot.slane %v4486_v12, 9  ;;  %v4592_v49 = vrot.slane %v4487_v16, 5  ;;  %v2630_v16 = vld [vmem:[#allocation2 + $0x3c] sm:$0xe]  ;;  %v9544_v29 = vld [vmem:[%s10988_s3 + $0x190] sm:$0xff]  }
 0x1d9   : > { %8941 = vmatprep.mubr.bf16.mxu1 %v7929_v22  ;;  %v2731_v44 = vsel %vm10322_vm14, %v7763_v25, %v2730_v20  ;;  %v2734_v40 = vsel %vm10322_vm14, %v2732_v33, %v2733_v52  ;;  %v4587_v39 = vrot.slane %v4585_v34, 4  ;;  %v4595_v45 = vrot.slane %v4488_v24, 5  ;;  %v2634_v19 = vld [vmem:[#allocation2 + $0x4c] sm:$0xf]  ;;  %v9600_v22 = vld [vmem:[%s10988_s3 + $0x180] sm:$0xff]  }
 0x1da   : > { %v7795_v61 = vcombine.low %v2731_v44, %v2734_v40  ;;  %v4594_v1 = vrot.slane %v4592_v49, 4  ;;  %v2737_v8 = vrot.slane %v2625_v28, 5  ;;  %v4586_v10 = vsel %vm10322_vm14, %v7898_v27, %v4585_v34  ;;  %v2632_v26 = vld [vmem:[#allocation2 + $0x44] sm:$0x1]  ;;  %v2635_v52 = vld [vmem:[#allocation2 + $0x50] sm:$0x1] }
 0x1db   : > { %8798 = vmatmul.mubr.bf16.vlgmr.msra.gmra.mrb[32].mxu0 %v7794_v37  ;;  %v4589_v47 = vsel %vm10322_vm14, %v4587_v39, %v4588_v41  ;;  %v7764_v48 = vrot.slane %v2624_v0, 9  ;;  %v2744_v36 = vrot.slane %v2628_v13, 5  ;;  %v4593_v51 = vsel %vm10322_vm14, %v7899_v42, %v4592_v49  ;;  %v9601_v27 = vld [vmem:[%s10988_s3 + $0xd0] sm:$0xff]   ;;  %v2633_v32 = vld [vmem:[#allocation2 + $0x48] sm:$0xe]  ;;  %v9545_v39 = vld [vmem:[%s10988_s3 + $0x198] sm:$0xff]  }
 0x1dc   : > { %8830 = vmatpush3.bf16.msra.mxu0 %v10243_v18  ;;  %8801 = vmatprep.mubr.bf16.mxu0 %v7795_v61  ;;  %v4596_v54 = vsel %vm10322_vm14, %v4594_v1, %v4595_v45  ;;  %v2739_v56 = vrot.slane %v2737_v8, 4  ;;  %v2740_v57 = vrot.slane %v2626_v35, 5  ;;  %v7930_v62 = vcombine.low %v4586_v10, %v4589_v47  ;;  %v9543_v18 = vld [vmem:[%s10988_s3 + $0x188] sm:$0xff]   ;;  %v4499_v49 = vld [vmem:[#allocation2 + $0x58] sm:$0xf] }
 0x1dd   : > { %8831 = vmatprep.subr.bf16.mxu0 %v9599_v30  ;;  %v7765_v63 = vrot.slane %v2627_v21, 9  ;;  %v2746_v2 = vrot.slane %v2744_v36, 4  ;;  %v2747_v14 = vrot.slane %v2629_v23, 5  ;;  %v7931_v3 = vcombine.low %v4593_v51, %v4596_v54  ;;  %v10383_v34 = vld [vmem:[#allocation2 + $0x4c] sm:$0xf]  ;;  %v9602_v45 = vld [vmem:[%s10988_s3 + $0xd8] sm:$0xff]  }
 0x1de   : > { %v2741_v4 = vsel %vm10322_vm14, %v2739_v56, %v2740_v57  ;;  %v4599_v9 = vrot.slane %v10346_v46, 5  ;;  %v2738_v6 = vsel %vm10322_vm14, %v7764_v48, %v2737_v8  ;;  %v4606_v12 = vrot.slane %v4493_v58, 5  ;;  %v4497_v8 = vld [vmem:[#allocation2 + $0x50] sm:$0x1]  ;;  %v10400_v47 = vld [vmem:[#allocation2 + $0x58] sm:$0xf] }
 0x1df   : > { %v2745_v7 = vsel %vm10322_vm14, %v7765_v63, %v2744_v36  ;;  %v2748_v11 = vsel %vm10322_vm14, %v2746_v2, %v2747_v14  ;;  %v7796_v38 = vcombine.low %v2738_v6, %v2741_v4  ;;  %v7900_v60 = vrot.slane %v4489_v50, 9  ;;  %v4500_v50 = vld [vmem:[#allocation2 + $0x5c] sm:$0x1]  ;;  %v10404_v51 = vld [vmem:[#allocation2 + $0x64] sm:$0xf] }
 0x1e0   : > { %8942 = vmatmul.mubr.bf16.vlgmr.msra.gmra.mrb[16].mxu1 %v7930_v62  ;;  %8832 = vmatpush3.bf16.msra.mxu0 %v9599_v30  ;;  %v4601_v24 = vrot.slane %v4599_v9, 4  ;;  %v4602_v15 = vrot.slane %v4491_v53, 5  ;;  %v7797_v25 = vcombine.low %v2745_v7, %v2748_v11  ;;  %v4608_v20 = vrot.slane %v4606_v12, 4  ;;  %v4495_v57 = vld [vmem:[#allocation2 + $0x48] sm:$0xe]  ;;  %v9603_v7 = vld [vmem:[%s10988_s3 + $0xe0] sm:$0xff]  }
 0x1e1   : > { %8974 = vmatpush3.bf16.msra.mxu1 %v9600_v22  ;;  %8945 = vmatprep.mubr.bf16.mxu1 %v7931_v3  ;;  %v4609_v28 = vrot.slane %v4494_v59, 5  ;;  %v2751_v17 = vrot.slane %v2631_v5, 5  ;;  %v7901_v13 = vrot.slane %v4492_v55, 9  ;;  %v2758_v33 = vrot.slane %v2634_v19, 5  ;;  %v4498_v30 = vld [vmem:[#allocation2 + $0x54] sm:$0xe] }
 0x1e2   : > { %8975 = vmatprep.subr.bf16.mxu1 %v9543_v18  ;;  %8833 = vmatprep.subr.bf16.mxu0 %v9601_v27  ;;  %v4603_v0 = vsel %vm10322_vm14, %v4601_v24, %v4602_v15  ;;  %v4600_v35 = vsel %vm10322_vm14, %v7900_v60, %v4599_v9  ;;  %v2754_v42 = vrot.slane %v2632_v26, 5  ;;  %v7766_v23 = vrot.slane %v2630_v16, 9  ;;  %v2636_v2 = vld [vmem:[#allocation2 + $0x54] sm:$0xe]  ;;  %v2638_v14 = vld [vmem:[#allocation2 + $0x5c] sm:$0x1] }
 0x1e3   : > { %8802 = vmatmul.mubr.bf16.gmra.mrb[36].mxu0 %v7796_v38  ;;  %v4610_v37 = vsel %vm10322_vm14, %v4608_v20, %v4609_v28  ;;  %v2753_v41 = vrot.slane %v2751_v17, 4  ;;  %v4607_v21 = vsel %vm10322_vm14, %v7901_v13, %v4606_v12  ;;  %v2760_v44 = vrot.slane %v2758_v33, 4  ;;  %v9546_v3 = vld [vmem:[%s10988_s3 + $0x1a0] sm:$0xff]   ;;  %v2641_v59 = vld [vmem:[#allocation2 + $0x68] sm:$0x1] }
 0x1e4   : > { %8805 = vmatprep.mubr.bf16.mxu0 %v7797_v25  ;;  %8834 = vmatpush3.bf16.msra.mxu0 %v9601_v27  ;;  %v2761_v40 = vrot.slane %v2635_v52, 5  ;;  %v7932_v46 = vcombine.low %v4600_v35, %v4603_v0  ;;  %v7767_v1 = vrot.slane %v2633_v32, 9  ;;  %v4613_v10 = vrot.slane %v10383_v34, 5  ;;  %v10415_v6 = vld [vmem:[#allocation2 + $0x64] sm:$0xf]  ;;  %v9604_v52 = vld [vmem:[%s10988_s3 + $0xe8] sm:$0xff]  }
 0x1e5   : > { %8976 = vmatpush3.bf16.msra.mxu1 %v9543_v18  ;;  %8835 = vmatprep.subr.bf16.mxu0 %v9602_v45  ;;  %v2755_v61 = vsel %vm10322_vm14, %v2753_v41, %v2754_v42  ;;  %v7933_v48 = vcombine.low %v4607_v21, %v4610_v37  ;;  %v4620_v53 = vrot.slane %v4499_v49, 5  ;;  %v2752_v54 = vsel %vm10322_vm14, %v7766_v23, %v2751_v17  ;;  %v10422_v22 = vld [vmem:[#allocation2 + $0x70] sm:$0xf]  ;;  %v2639_v24 = vld [vmem:[#allocation2 + $0x60] sm:$0xe] }
 0x1e6   : > { %8977 = vmatprep.subr.bf16.mxu1 %v9544_v29  ;;  %v2762_v36 = vsel %vm10322_vm14, %v2760_v44, %v2761_v40  ;;  %v2759_v56 = vsel %vm10322_vm14, %v7767_v1, %v2758_v33  ;;  %v4615_v58 = vrot.slane %v4613_v10, 4  ;;  %v7798_v62 = vcombine.low %v2752_v54, %v2755_v61  ;;  %v10431_v17 = vld [vmem:[#allocation2 + $0x70] sm:$0xf]  ;;  %v4503_v32 = vld [vmem:[#allocation2 + $0x68] sm:$0x1] }
 0x1e7   : > { %v4616_v18 = vrot.slane %v4497_v8, 5  ;;  %v4622_v63 = vrot.slane %v4620_v53, 4  ;;  %v2765_v55 = vrot.slane %v10400_v47, 5  ;;  %v7799_v4 = vcombine.low %v2759_v56, %v2762_v36  ;;  %v10442_v34 = vld [vmem:[#allocation2 + $0x7c] sm:$0xf]  ;;  %v9605_v56 = vld [vmem:[%s10988_s3 + $0xf0] sm:$0xff]  }
 0x1e8   : > { %8946 = vmatmul.mubr.bf16.gmra.mrb[20].mxu1 %v7932_v46  ;;  %8836 = vmatpush3.bf16.msra.mxu0 %v9602_v45  ;;  %v4623_v9 = vrot.slane %v4500_v50, 5  ;;  %v2772_v5 = vrot.slane %v10404_v51, 5  ;;  %v7902_v11 = vrot.slane %v4495_v57, 9  ;;  %v7903_v16 = vrot.slane %v4498_v30, 9  ;;  %v4506_v49 = vld [vmem:[#allocation2 + $0x74] sm:$0x1] }
 0x1e9   : > { %8949 = vmatprep.mubr.bf16.mxu1 %v7933_v48  ;;  %8978 = vmatpush3.bf16.msra.mxu1 %v9544_v29  ;;  %v4617_v12 = vsel %vm10322_vm14, %v4615_v58, %v4616_v18  ;;  %v2767_v19 = vrot.slane %v2765_v55, 4  ;;  %v2768_v60 = vrot.slane %v2638_v14, 5  ;;  %v2775_v20 = vrot.slane %v2641_v59, 5  ;;  %v9547_v29 = vld [vmem:[%s10988_s3 + $0x1a8] sm:$0xff]   ;;  %v4501_v23 = vld [vmem:[#allocation2 + $0x60] sm:$0xe] }
 0x1ea   : > { %8979 = vmatprep.subr.bf16.mxu1 %v9545_v39  ;;  %8837 = vmatprep.subr.bf16.mxu0 %v9603_v7  ;;  %v4624_v38 = vsel %vm10322_vm14, %v4622_v63, %v4623_v9  ;;  %v2774_v15 = vrot.slane %v2772_v5, 4  ;;  %v4614_v26 = vsel %vm10322_vm14, %v7902_v11, %v4613_v10  ;;  %v4621_v25 = vsel %vm10322_vm14, %v7903_v16, %v4620_v53  ;;  %v4504_v44 = vld [vmem:[#allocation2 + $0x6c] sm:$0xe]  ;;  %v10452_v45 = vld [vmem:[%s10988_s3 + $0x1b0] sm:$0xff]   ;;  %v10457_v48 = vld [vmem:[#allocation2 + $0x7c] sm:$0xf] }
 0x1eb   : > { %8806 = vmatmul.mubr.bf16.gmra.mrb[40].mxu0 %v7798_v62  ;;  %v4627_v28 = vrot.slane %v10415_v6, 5  ;;  %v7934_v27 = vcombine.low %v4614_v26, %v4617_v12  ;;  %v7768_v0 = vrot.slane %v2636_v2, 9  ;;  %v2769_v13 = vsel %vm10322_vm14, %v2767_v19, %v2768_v60  ;;  %v2642_v8 = vld [vmem:[#allocation2 + $0x6c] sm:$0xe]  ;;  %v2644_v10 = vld [vmem:[#allocation2 + $0x74] sm:$0x1] }
 0x1ec   : > { %8809 = vmatprep.mubr.bf16.mxu0 %v7799_v4  ;;  %8838 = vmatpush3.bf16.msra.mxu0 %v9603_v7  ;;  %v4634_v33 = vrot.slane %v10422_v22, 5  ;;  %v7935_v35 = vcombine.low %v4621_v25, %v4624_v38  ;;  %v7769_v37 = vrot.slane %v2639_v24, 9  ;;  %v2776_v41 = vsel %vm10322_vm14, %v2774_v15, %v2775_v20  ;;  %v2647_v51 = vld [vmem:[#allocation2 + $0x80] sm:$0x1]  ;;  %v10459_v54 = vld [vmem:[#allocation2 + $0x88] sm:$0xf] }
 0x1ed   : > { %8980 = vmatpush3.bf16.msra.mxu1 %v9545_v39  ;;  %8839 = vmatprep.subr.bf16.mxu0 %v9604_v52  ;;  %v4629_v42 = vrot.slane %v4627_v28, 4  ;;  %v2766_v21 = vsel %vm10322_vm14, %v7768_v0, %v2765_v55  ;;  %v2779_v39 = vrot.slane %v10431_v17, 5  ;;  %v4630_v1 = vrot.slane %v4503_v32, 5  ;;  %v2645_v62 = vld [vmem:[#allocation2 + $0x78] sm:$0xe] }
 0x1ee   : > { %8981 = vmatprep.subr.bf16.mxu1 %v9546_v3  ;;  %v4636_v40 = vrot.slane %v4634_v33, 4  ;;  %v7800_v46 = vcombine.low %v2766_v21, %v2769_v13  ;;  %v2773_v61 = vsel %vm10322_vm14, %v7769_v37, %v2772_v5  ;;  %v2786_v47 = vrot.slane %v10442_v34, 5  ;;  %v10469_v55 = vld [vmem:[#allocation2 + $0x88] sm:$0xf]  ;;  %v10476_v5 = vld [vmem:[#allocation2 + $0x94] sm:$0xf] }
 0x1ef   : > { %v7801_v36 = vcombine.low %v2773_v61, %v2776_v41  ;;  %v4637_v50 = vrot.slane %v4506_v49, 5  ;;  %v2781_v53 = vrot.slane %v2779_v39, 4  ;;  %v7904_v57 = vrot.slane %v4501_v23, 9  ;;  %v9549_v6 = vld [vmem:[%s10988_s3 + $0x1b8] sm:$0xff]   ;;  %v4509_v38 = vld [vmem:[#allocation2 + $0x80] sm:$0x1] }
 0x1f0   : > { %8950 = vmatmul.mubr.bf16.gmra.mrb[24].mxu1 %v7934_v27  ;;  %8840 = vmatpush3.bf16.msra.mxu0 %v9604_v52  ;;  %v4631_v58 = vsel %vm10322_vm14, %v4629_v42, %v4630_v1  ;;  %v7905_v30 = vrot.slane %v4504_v44, 9  ;;  %v2788_v18 = vrot.slane %v2786_v47, 4  ;;  %v2782_v2 = vrot.slane %v2644_v10, 5  ;;  %v9606_v7 = vld [vmem:[%s10988_s3 + $0xf8] sm:$0xff]   ;;  %v4510_v26 = vld [vmem:[#allocation2 + $0x84] sm:$0xe] }
 0x1f1   : > { %8953 = vmatprep.mubr.bf16.mxu1 %v7935_v35  ;;  %8982 = vmatpush3.bf16.msra.mxu1 %v9546_v3  ;;  %v4638_v63 = vsel %vm10322_vm14, %v4636_v40, %v4637_v50  ;;  %v4641_v14 = vrot.slane %v10457_v48, 5  ;;  %v4628_v3 = vsel %vm10322_vm14, %v7904_v57, %v4627_v28  ;;  %v2789_v9 = vrot.slane %v2647_v51, 5  ;;  %v4507_v22 = vld [vmem:[#allocation2 + $0x78] sm:$0xe]  ;;  %v4512_v25 = vld [vmem:[#allocation2 + $0x8c] sm:$0x1] }
 0x1f2   : > { %8983 = vmatprep.subr.bf16.mxu1 %v9547_v29  ;;  %8841 = vmatprep.subr.bf16.mxu0 %v9605_v56  ;;  %v4635_v4 = vsel %vm10322_vm14, %v7905_v30, %v4634_v33  ;;  %v4648_v59 = vrot.slane %v10459_v54, 5  ;;  %v7936_v11 = vcombine.low %v4628_v3, %v4631_v58  ;;  %v7770_v12 = vrot.slane %v2642_v8, 9  ;;  %v2650_v52 = vld [vmem:[#allocation2 + $0x8c] sm:$0x1]  ;;  %v10493_v0 = vld [vmem:[#allocation2 + $0x94] sm:$0xf] }
 0x1f3   : > { %8810 = vmatmul.mubr.bf16.gmra.mrb[44].mxu0 %v7800_v46  ;;  %v2783_v16 = vsel %vm10322_vm14, %v2781_v53, %v2782_v2  ;;  %v7771_v19 = vrot.slane %v2645_v62, 9  ;;  %v7937_v60 = vcombine.low %v4635_v4, %v4638_v63  ;;  %v2790_v24 = vsel %vm10322_vm14, %v2788_v18, %v2789_v9  ;;  %v2651_v34 = vld [vmem:[#allocation2 + $0x90] sm:$0xe]  ;;  %v10497_v35 = vld [vmem:[#allocation2 + $0xa0] sm:$0xf] }
 0x1f4   : > { %8813 = vmatprep.mubr.bf16.mxu0 %v7801_v36  ;;  %8842 = vmatpush3.bf16.msra.mxu0 %v9605_v56  ;;  %v4643_v15 = vrot.slane %v4641_v14, 4  ;;  %v2793_v20 = vrot.slane %v10469_v55, 5  ;;  %v2780_v28 = vsel %vm10322_vm14, %v7770_v12, %v2779_v39  ;;  %v4650_v17 = vrot.slane %v4648_v59, 4  ;;  %v2653_v21 = vld [vmem:[#allocation2 + $0x98] sm:$0x1]  ;;  %v10503_v23 = vld [vmem:[%s10988_s3 + $0x1c0] sm:$0xff]  }
 0x1f5   : > { %8984 = vmatpush3.bf16.msra.mxu1 %v9547_v29  ;;  %8843 = vmatprep.subr.bf16.mxu0 %v9606_v7  ;;  %v2648_v29 = vld [vmem:[#allocation2 + $0x84] sm:$0xe]  ;;  %v2800_v27 = vrot.slane %v10476_v5, 5  ;;  %v7802_v13 = vcombine.low %v2780_v28, %v2783_v16  ;;  %v2787_v32 = vsel %vm10322_vm14, %v7771_v19, %v2786_v47  ;;  %v4644_v33 = vrot.slane %v4509_v38, 5  ;;  %v10513_v10 = vld [vmem:[#allocation2 + $0xac] sm:$0xf] }
 0x1f6   : > { %8985 = vmatprep.subr.bf16.mxu1 %v10452_v45  ;;  %v7803_v37 = vcombine.low %v2787_v32, %v2790_v24  ;;  %v7906_v41 = vrot.slane %v4507_v22, 9  ;;  %v4651_v42 = vrot.slane %v4512_v25, 5  ;;  %v2795_v49 = vrot.slane %v2793_v20, 4  ;;  %v4515_v56 = vld [vmem:[#allocation2 + $0x98] sm:$0x1] }
 0x1f7   : > { %v4645_v44 = vsel %vm10322_vm14, %v4643_v15, %v4644_v33  ;;  %v7907_v40 = vrot.slane %v4510_v26, 9  ;;  %v2802_v39 = vrot.slane %v2800_v27, 4  ;;  %v4655_v46 = vrot.slane %v10493_v0, 5  ;;  %v4513_v62 = vld [vmem:[#allocation2 + $0x90] sm:$0xe] }
 0x1f8   : > { %8954 = vmatmul.mubr.bf16.gmra.mrb[28].mxu1 %v7936_v11  ;;  %8844 = vmatpush3.bf16.msra.mxu0 %v9606_v7  ;;  %v4652_v61 = vsel %vm10322_vm14, %v4650_v17, %v4651_v42  ;;  %v2796_v1 = vrot.slane %v2650_v52, 5  ;;  %v4662_v8 = vrot.slane %v10497_v35, 5  ;;  %v4642_v47 = vsel %vm10322_vm14, %v7906_v41, %v4641_v14  ;;  %v4518_v63 = vld [vmem:[#allocation2 + $0xa4] sm:$0x1]  ;;  %v4516_v55 = vld [vmem:[#allocation2 + $0x9c] sm:$0xe] }
 0x1f9   : > { %8957 = vmatprep.mubr.bf16.mxu1 %v7937_v60  ;;  %8986 = vmatpush3.bf16.msra.mxu1 %v10452_v45  ;;  %v10508_v45 = vld [vmem:[#allocation2 + $0xa0] sm:$0xf]  ;;  %v4649_v48 = vsel %vm10322_vm14, %v7907_v40, %v4648_v59  ;;  %v7772_v36 = vrot.slane %v2648_v29, 9  ;;  %v2803_v50 = vrot.slane %v2653_v21, 5  ;;  %v7938_v53 = vcombine.low %v4642_v47, %v4645_v44  ;;  %v4520_v4 = vld [vmem:[#allocation2 + $0xac] sm:$0xf] }
 0x1fa   : > { %8987 = vmatprep.subr.bf16.mxu1 %v9549_v6  ;;  %v2797_v51 = vsel %vm10322_vm14, %v2795_v49, %v2796_v1  ;;  %v7773_v54 = vrot.slane %v2651_v34, 9  ;;  %v2807_v57 = vrot.slane %v10508_v45, 5  ;;  %v7939_v58 = vcombine.low %v4649_v48, %v4652_v61  ;;  %v2656_v7 = vld [vmem:[#allocation2 + $0xa4] sm:$0x1]  ;;  %v4523_v11 = vld [vmem:[#allocation2 + $0xb8] sm:$0xf] }
 0x1fb   : > { %8814 = vmatmul.mubr.bf16.gmra.mrb[48].mxu0 %v7802_v13  ;;  %v2804_v30 = vsel %vm10322_vm14, %v2802_v39, %v2803_v50  ;;  %v4657_v18 = vrot.slane %v4655_v46, 4  ;;  %v2814_v2 = vrot.slane %v10513_v10, 5  ;;  %v2794_v14 = vsel %vm10322_vm14, %v7772_v36, %v2793_v20  ;;  %v2659_v38 = vld [vmem:[#allocation2 + $0xb0] sm:$0x1]  ;;  %v2661_v25 = vld [vmem:[#allocation2 + $0xb8] sm:$0xf] }
 0x1fc   : > { %8817 = vmatprep.mubr.bf16.mxu0 %v7803_v37  ;;  %v4664_v3 = vrot.slane %v4662_v8, 4  ;;  %v7804_v9 = vcombine.low %v2794_v14, %v2797_v51  ;;  %v2801_v59 = vsel %vm10322_vm14, %v7773_v54, %v2800_v27  ;;  %v4658_v5 = vrot.slane %v4515_v56, 5  ;;  %v2657_v17 = vld [vmem:[#allocation2 + $0xa8] sm:$0xe]  ;;  %v4521_v34 = vld [vmem:[#allocation2 + $0xb0] sm:$0x1] }
 0x1fd   : > { %8988 = vmatpush3.bf16.msra.mxu1 %v9549_v6  ;;  %v2654_v6 = vld [vmem:[#allocation2 + $0x9c] sm:$0xe]  ;;  %v7805_v12 = vcombine.low %v2801_v59, %v2804_v30  ;;  %v7908_v16 = vrot.slane %v4513_v62, 9  ;;  %v4665_v19 = vrot.slane %v4518_v63, 5  ;;  %v2809_v22 = vrot.slane %v2807_v57, 4 }
 0x1fe   : > { %9021 = vmatprep.subr.bf16.mxu1 %v10503_v23  ;;  %v4659_v60 = vsel %vm10322_vm14, %v4657_v18, %v4658_v5  ;;  %v7909_v24 = vrot.slane %v4516_v55, 9  ;;  %v2816_v15 = vrot.slane %v2814_v2, 4  ;;  %v4669_v26 = vrot.slane %v4520_v4, 5  ;;  %v4524_v21 = vld [vmem:[#allocation2 + $0xbc] sm:$0x1] }
 0x1ff   : > { %v4666_v20 = vsel %vm10322_vm14, %v4664_v3, %v4665_v19  ;;  %v2810_v28 = vrot.slane %v2656_v7, 5  ;;  %v4676_v29 = vrot.slane %v4523_v11, 5  ;;  %v4656_v52 = vsel %vm10322_vm14, %v7908_v16, %v4655_v46  ;;  %v4519_v40 = vld [vmem:[#allocation2 + $0xa8] sm:$0xe]  ;;  %v4526_v46 = vld [vmem:[#allocation2 + $0xc4] sm:$0xf] }
 0x200   : > { %8958 = vmatmul.mubr.bf16.gmra.mrb[0].mxu1 %v7938_v53  ;;  %v4663_v27 = vsel %vm10322_vm14, %v7909_v24, %v4662_v8  ;;  %v2817_v0 = vrot.slane %v2659_v38, 5  ;;  %v7940_v13 = vcombine.low %v4656_v52, %v4659_v60  ;;  %v7774_v32 = vrot.slane %v2654_v6, 9  ;;  %v4522_v8 = vld [vmem:[#allocation2 + $0xb4] sm:$0xe]  ;;  %v2662_v10 = vld [vmem:[#allocation2 + $0xbc] sm:$0x1] }
 0x201   : > { %8961 = vmatprep.mubr.bf16.mxu1 %v7939_v58  ;;  %v2811_v33 = vsel %vm10322_vm14, %v2809_v22, %v2810_v28  ;;  %v2821_v35 = vrot.slane %v2661_v25, 5  ;;  %v7941_v37 = vcombine.low %v4663_v27, %v4666_v20  ;;  %v7775_v41 = vrot.slane %v2657_v17, 9  ;;  %v2660_v51 = vld [vmem:[#allocation2 + $0xb4] sm:$0xe]  ;;  %v4527_v14 = vld [vmem:[#allocation2 + $0xc8] sm:$0x1] }
 0x202   : > { %v2818_v42 = vsel %vm10322_vm14, %v2816_v15, %v2817_v0  ;;  %v4671_v49 = vrot.slane %v4669_v26, 4  ;;  %v2808_v44 = vsel %vm10322_vm14, %v7774_v32, %v2807_v57  ;;  %v4678_v39 = vrot.slane %v4676_v29, 4  ;;  %v9550_v6 = vld [vmem:[#allocation2 + $0xc] sm:$0xff]   ;;  %v9551_v19 = vld [vmem:[#allocation2 + $0x18] sm:$0xff]   ;;  %v9554_v38 = vld [vmem:[#allocation2 + $0x24] sm:$0xff]  }
 0x203   : > { %8818 = vmatmul.mubr.bf16.gmra.mrb[52].mxu0 %v7804_v9  ;;  %v7806_v45 = vcombine.low %v2808_v44, %v2811_v33  ;;  %v2815_v61 = vsel %vm10322_vm14, %v7775_v41, %v2814_v2  ;;  %v4672_v1 = vrot.slane %v4521_v34, 5  ;;  %v4679_v48 = vrot.slane %v4524_v21, 5  ;;  %v4525_v9 = vld [vmem:[#allocation2 + $0xc0] sm:$0xe]  ;;  %v9552_v22 = vld [vmem:[#allocation2 + $0x18] sm:$0xff]   ;;  %v9555_v60 = vld [vmem:[#allocation2 + $0x24] sm:$0xff]  }
 0x204   : > { %8821 = vmatprep.mubr.bf16.mxu0 %v7805_v12  ;;  %v7807_v47 = vcombine.low %v2815_v61, %v2818_v42  ;;  %v2823_v36 = vrot.slane %v2821_v35, 4  ;;  %v7910_v50 = vrot.slane %v4519_v40, 9  ;;  %v4683_v54 = vrot.slane %v4526_v46, 5  ;;  %v9558_v24 = vld [vmem:[%s10988_s3 + $0x1c8] sm:$0xff]   ;;  %v9556_v15 = vld [vmem:[#allocation2 + $0x30] sm:$0xff]   ;;  %v9559_v25 = vld [vmem:[#allocation2 + $0x3c] sm:$0xff]  }
 0x205   : > { %v4673_v53 = vsel %vm10322_vm14, %v4671_v49, %v4672_v1  ;;  %v7911_v56 = vrot.slane %v4522_v8, 9  ;;  %v4680_v57 = vsel %vm10322_vm14, %v4678_v39, %v4679_v48  ;;  %v2824_v58 = vrot.slane %v2662_v10, 5  ;;  %v9563_v20 = vld [vmem:[%s10988_s3 + $0x1d0] sm:$0xff]   ;;  %v9560_v28 = vld [vmem:[#allocation2 + $0x3c] sm:$0xff]   ;;  %v5525_v21 = vld [vmem:[#allocation2 + $0x18] sm:$0xf] }
 0x206   : > { %v4670_v30 = vsel %vm10322_vm14, %v7910_v50, %v4669_v26  ;;  %v7776_v63 = vrot.slane %v2660_v51, 9  ;;  %v4685_v3 = vrot.slane %v4683_v54, 4  ;;  %v4686_v5 = vrot.slane %v4527_v14, 5  ;;  %v9557_v26 = vld [vmem:[#allocation2 + $0x30] sm:$0xff]   ;;  %v9568_v17 = vld [vmem:[%s10988_s3 + $0x1d8] sm:$0xff]   ;;  %v9571_v27 = vld [vmem:[%s10988_s3 + $0x1e0] sm:$0xff]  }
 0x207   : > { %v7942_v62 = vcombine.low %v4670_v30, %v4673_v53  ;;  %v4677_v18 = vsel %vm10322_vm14, %v7911_v56, %v4676_v29  ;;  %v2825_v2 = vsel %vm10322_vm14, %v2823_v36, %v2824_v58  ;;  %v7912_v7 = vrot.slane %v4525_v9, 9  ;;  %v9561_v29 = vld [vmem:[#allocation2 + $0x48] sm:$0xff]   ;;  %v9564_v52 = vld [vmem:[#allocation2 + $0x54] sm:$0xff]   ;;  %v9566_v32 = vld [vmem:[#allocation2 + $0x60] sm:$0xff]  }
 0x208   : > { %8962 = vmatmul.mubr.bf16.gmra.mrb[4].mxu1 %v7940_v13  ;;  %v7943_v55 = vcombine.low %v4677_v18, %v4680_v57  ;;  %v2822_v4 = vsel %vm10322_vm14, %v7776_v63, %v2821_v35  ;;  %v4687_v11 = vsel %vm10322_vm14, %v4685_v3, %v4686_v5  ;;  %v9565_v0 = vld [vmem:[#allocation2 + $0x54] sm:$0xff]   ;;  %v9574_v13 = vld [vmem:[%s10988_s3 + $0x1e8] sm:$0xff]   ;;  %v9567_v33 = vld [vmem:[#allocation2 + $0x60] sm:$0xff]   ;;  %v5577_v61 = vshll.u32 %v5525_v21, 16 }
 0x209   : > { %8965 = vmatprep.mubr.bf16.mxu1 %v7941_v37  ;;  %v7808_v59 = vcombine.low %v2822_v4, %v2825_v2  ;;  %v4684_v12 = vsel %vm10322_vm14, %v7912_v7, %v4683_v54  ;;  %v9577_v34 = vld [vmem:[%s10988_s3 + $0x1f0] sm:$0xff]   ;;  %v9580_v37 = vld [vmem:[%s10988_s3 + $0x1f8] sm:$0xff]   ;;  %v10587_v42 = vld [vmem:[%s10988_s3 + $0x200] sm:$0xff]  }
 0x20a   : > { %v7944_v16 = vcombine.low %v4684_v12, %v4687_v11  ;;  %v9569_v35 = vld [vmem:[#allocation2 + $0x6c] sm:$0xff]   ;;  %v9570_v41 = vld [vmem:[#allocation2 + $0x78] sm:$0xff]   ;;  %v9572_v44 = vld [vmem:[#allocation2 + $0x84] sm:$0xff]   ;;  %v5579_v36 = vrot.slane %v5577_v61, 5 }
 0x20b   : > { %8822 = vmatmul.mubr.bf16.gmra.mrb[56].mxu0 %v7806_v45  ;;  %v5526_v49 = vld [vmem:[#allocation2 + $0x1c] sm:$0xf]  ;;  %v9573_v46 = vld [vmem:[#allocation2 + $0x90] sm:$0xff]   ;;  %v5574_v45 = vshrl.u32 %v5525_v21, 16  ;;  %v5528_v10 = vld [vmem:[#allocation2 + $0x24] sm:$0xf] }
 0x20c   : > { %8825 = vmatprep.mubr.bf16.mxu0 %v7807_v47  ;;  %v5583_v40 = vshll.u32 %v5526_v49, 16  ;;  %v5587_v39 = vshrl.u32 %v5526_v49, 16  ;;  %v5529_v47 = vld [vmem:[#allocation2 + $0x28] sm:$0xf]  ;;  %v5527_v50 = vld [vmem:[#allocation2 + $0x20] sm:$0x1] }
 0x20d   : > { %v5576_v48 = vrot.slane %v5574_v45, 4  ;;  %v5598_v53 = vshrl.u32 %v5528_v10, 16  ;;  %v5601_v51 = vshll.u32 %v5528_v10, 16  ;;  %v9575_v54 = vld [vmem:[#allocation2 + $0x9c] sm:$0xff]   ;;  %v5607_v57 = vshll.u32 %v5529_v47, 16 }
 0x20e   : > { %v5585_v1 = vrot.slane %v5583_v40, 5  ;;  %v5589_v8 = vrot.slane %v5587_v39, 4  ;;  %v5611_v58 = vshrl.u32 %v5529_v47, 16  ;;  %v5531_v30 = vld [vmem:[#allocation2 + $0x30] sm:$0xf]  ;;  %v5593_v63 = vshll.u32 %v5527_v50, 16 }
 0x20f   : > { %v5580_v18 = vor.u32 %v5579_v36, %v5576_v48  ;;  %v5532_v2 = vld [vmem:[#allocation2 + $0x34] sm:$0xf]  ;;  %v5530_v14 = vld [vmem:[#allocation2 + $0x2c] sm:$0x1]  ;;  %v5603_v3 = vrot.slane %v5601_v51, 5  ;;  %v5622_v4 = vshrl.u32 %v5531_v30, 16 }
 0x210   : > { %8966 = vmatmul.mubr.bf16.gmra.mrb[8].mxu1 %v7942_v62  ;;  %v5590_v56 = vor.u32 %v5589_v8, %v5585_v1  ;;  %v9576_v62 = vld [vmem:[#allocation2 + $0xa8] sm:$0xff]   ;;  %v5613_v5 = vrot.slane %v5611_v58, 4  ;;  %v5631_v7 = vshll.u32 %v5532_v2, 16  ;;  %v5635_v11 = vshrl.u32 %v5532_v2, 16  ;;  %v5536_v36 = vld [vmem:[#allocation2 + $0x44] sm:$0x1] }
 0x211   : > { %8969 = vmatprep.mubr.bf16.mxu1 %v7943_v55  ;;  %v5600_v55 = vrot.slane %v5598_v53, 4  ;;  %v5581_v12 = vrot.slane %v5580_v18, 4  ;;  %v5537_v49 = vld [vmem:[#allocation2 + $0x48] sm:$0xf]  ;;  %v9581_v8 = vld [vmem:[#allocation2 + $0xcc] sm:$0xff]  }
 0x212   : > { %v5591_v9 = vrot.slane %v5590_v56, 4  ;;  %v5670_v51 = vshrl.u32 %v5537_v49, 16 }
 0x213   : > { %8826 = vmatmul.mubr.bf16.gmra.mrb[60].mxu0 %v7808_v59  ;;  %v10590_v59 = vrot.slane %v5607_v57, 5 }
 0x214   : > { %8845 = vmatprep.mubr.bf16.mxu0 %v9550_v6  ;;  %v5625_v6 = vshll.u32 %v5531_v30, 16 }
 0x218   : > { %8970 = vmatmul.mubr.bf16.gmra.mrb[12].mxu1 %v7944_v16  ;;  %v5595_v16 = vrot.slane %v5593_v63, 5 }
 0x219   : > { %8989 = vmatprep.mubr.bf16.mxu1 %v9551_v19  ;;  %v5617_v19 = vshll.u32 %v5530_v14, 16  ;;  %v5543_v14 = vld [vmem:[#allocation2 + $0x60] sm:$0xf] }
 0x21b   : > { %8846 = vmatmul.mubr.bf16.vlgmr.msra.gmra.mrb[32].mxu0 %v9552_v22  ;;  %v5534_v22 = vld [vmem:[#allocation2 + $0x3c] sm:$0xf] }
 0x21c   : > { %8849 = vmatprep.mubr.bf16.mxu0 %v9554_v38  ;;  %v9578_v38 = vld [vmem:[#allocation2 + $0xb4] sm:$0xff]  }
 0x220   : > { %8990 = vmatmul.mubr.bf16.vlgmr.msra.gmra.mrb[16].mxu1 %v9555_v60  ;;  %v9579_v60 = vld [vmem:[#allocation2 + $0xc0] sm:$0xff]  }
 0x221   : > { %9022 = vmatpush3.bf16.msra.mxu1 %v10503_v23  ;;  %8993 = vmatprep.mubr.bf16.mxu1 %v9556_v15  ;;  %v9562_v23 = vld [vmem:[#allocation2 + $0x48] sm:$0xff]   ;;  %v5535_v15 = vld [vmem:[#allocation2 + $0x40] sm:$0xf] }
 0x222   : > { %9023 = vmatprep.subr.bf16.mxu1 %v9558_v24 }
 0x223   : > { %8850 = vmatmul.mubr.bf16.gmra.mrb[36].mxu0 %v9557_v26  ;;  %v5596_v26 = vsel %vm10112_vm11, %v5591_v9, %v5595_v16  ;;  %v5665_v9 = vshll.u32 %v5536_v36, 16  ;;  %v5549_v36 = vld [vmem:[#allocation2 + $0x78] sm:$0xf] }
 0x224   : > { %8853 = vmatprep.mubr.bf16.mxu0 %v9559_v25  ;;  %v5614_v25 = vor.u32 %v5613_v5, %v10590_v59  ;;  %v5544_v5 = vld [vmem:[#allocation2 + $0x64] sm:$0xf] }
 0x225   : > { %9024 = vmatpush3.bf16.msra.mxu1 %v9558_v24  ;;  %v5604_v24 = vor.u32 %v5603_v3, %v5600_v55 }
 0x226   : > { %9025 = vmatprep.subr.bf16.mxu1 %v9563_v20  ;;  %v5615_v39 = vrot.slane %v5614_v25, 4  ;;  %v5731_v25 = vshrl.u32 %v5544_v5, 16 }
 0x228   : > { %8994 = vmatmul.mubr.bf16.gmra.mrb[20].mxu1 %v9560_v28  ;;  %v5624_v28 = vrot.slane %v5622_v4, 4 }
 0x229   : > { %8997 = vmatprep.mubr.bf16.mxu1 %v9561_v29  ;;  %9026 = vmatpush3.bf16.msra.mxu1 %v9563_v20  ;;  %v5533_v20 = vld [vmem:[#allocation2 + $0x38] sm:$0x1]  ;;  %v5538_v29 = vld [vmem:[#allocation2 + $0x4c] sm:$0xf] }
 0x22a   : > { %9027 = vmatprep.subr.bf16.mxu1 %v9568_v17  ;;  %v5679_v21 = vshll.u32 %v5538_v29, 16 }
 0x22b   : > { %8854 = vmatmul.mubr.bf16.gmra.mrb[40].mxu0 %v9562_v23  ;;  %v10595_v23 = vrot.slane %v5631_v7, 5 }
 0x22c   : > { %8857 = vmatprep.mubr.bf16.mxu0 %v9564_v52  ;;  %v5637_v52 = vrot.slane %v5635_v11, 4  ;;  %v10602_v56 = vrot.slane %v5679_v21, 5  ;;  %v5539_v11 = vld [vmem:[#allocation2 + $0x50] sm:$0x1] }
 0x22d   : > { %9028 = vmatpush3.bf16.msra.mxu1 %v9568_v17  ;;  %v5627_v17 = vrot.slane %v5625_v6, 5 }
 0x22e   : > { %9029 = vmatprep.subr.bf16.mxu1 %v9571_v27  ;;  %v5638_v47 = vor.u32 %v5637_v52, %v10595_v23 }
 0x22f   : > { %v5628_v10 = vor.u32 %v5627_v17, %v5624_v28 }
 0x230   : > { %8998 = vmatmul.mubr.bf16.gmra.mrb[24].mxu1 %v9565_v0  ;;  %v5649_v0 = vshll.u32 %v5534_v22, 16  ;;  %v5639_v4 = vrot.slane %v5638_v47, 4 }
 0x231   : > { %9001 = vmatprep.mubr.bf16.mxu1 %v9566_v32  ;;  %9030 = vmatpush3.bf16.msra.mxu1 %v9571_v27  ;;  %v5646_v27 = vshrl.u32 %v5534_v22, 16  ;;  %v5586_v32 = vsel %vm10112_vm11, %v5581_v12, %v5585_v1  ;;  %v5629_v3 = vrot.slane %v5628_v10, 4  ;;  %v5672_v12 = vrot.slane %v5670_v51, 4 }
 0x232   : > { %9031 = vmatprep.subr.bf16.mxu1 %v9574_v13  ;;  %v8009_v40 = vcombine.low %v5586_v32, %v5596_v26  ;;  %v5651_v1 = vrot.slane %v5649_v0, 5  ;;  %v5727_v26 = vshll.u32 %v5544_v5, 16  ;;  %v5667_v0 = vrot.slane %v5665_v9, 5  ;;  %v5547_v32 = vld [vmem:[#allocation2 + $0x70] sm:$0xf] }
 0x233   : > { %8858 = vmatmul.mubr.bf16.gmra.mrb[44].mxu0 %v9567_v33  ;;  %v5619_v33 = vrot.slane %v5617_v19, 5  ;;  %v5648_v48 = vrot.slane %v5646_v27, 4  ;;  %v5542_v19 = vld [vmem:[#allocation2 + $0x5c] sm:$0x1]  ;;  %v5634_v28 = vsel %vm10112_vm11, %v5629_v3, %v10595_v23  ;;  %v5769_v3 = vshll.u32 %v5549_v36, 16 }
 0x235   : > { %9032 = vmatpush3.bf16.msra.mxu1 %v9574_v13  ;;  %v5541_v13 = vld [vmem:[#allocation2 + $0x58] sm:$0xf]  ;;  %v5620_v55 = vsel %vm10112_vm11, %v5615_v39, %v5619_v33  ;;  %v5652_v6 = vor.u32 %v5651_v1, %v5648_v48 }
 0x236   : > { %9033 = vmatprep.subr.bf16.mxu1 %v9577_v34  ;;  %v5703_v45 = vshll.u32 %v5541_v13, 16  ;;  %v5707_v61 = vshrl.u32 %v5541_v13, 16  ;;  %v5713_v13 = vshll.u32 %v5542_v19, 16  ;;  %v5553_v19 = vld [vmem:[#allocation2 + $0x88] sm:$0xf] }
 0x237   : > { %v5653_v52 = vrot.slane %v5652_v6, 4 }
 0x238   : > { %9002 = vmatmul.mubr.bf16.gmra.mrb[28].mxu1 %v9569_v35  ;;  %v5659_v35 = vshrl.u32 %v5535_v15, 16  ;;  %v10607_v63 = vrot.slane %v5703_v45, 5  ;;  %v5709_v2 = vrot.slane %v5707_v61, 4  ;;  %v5545_v45 = vld [vmem:[#allocation2 + $0x68] sm:$0x1]  ;;  %v5751_v61 = vshll.u32 %v5547_v32, 16 }
 0x239   : > { %9005 = vmatprep.mubr.bf16.mxu1 %v9570_v41  ;;  %9034 = vmatpush3.bf16.msra.mxu1 %v9577_v34  ;;  %v5655_v34 = vshll.u32 %v5535_v15, 16  ;;  %v5641_v41 = vshll.u32 %v5533_v20, 16  ;;  %v5721_v15 = vshll.u32 %v5543_v14, 16  ;;  %v5715_v47 = vrot.slane %v5713_v13, 5 }
 0x23a   : > { %9035 = vmatprep.subr.bf16.mxu1 %v9580_v37  ;;  %v5661_v53 = vrot.slane %v5659_v35, 4 }
 0x23b   : > { %v10600_v50 = vrot.slane %v5655_v34, 5  ;;  %v5643_v18 = vrot.slane %v5641_v41, 5  ;;  %v5546_v41 = vld [vmem:[#allocation2 + $0x6c] sm:$0xf]  ;;  %v5723_v23 = vrot.slane %v5721_v15, 5  ;;  %v9585_v15 = vld [vmem:[%s10988_s3 + $0x218] sm:$0xff]  }
 0x23c   : > { %v5742_v48 = vshrl.u32 %v5546_v41, 16  ;;  %v5745_v1 = vshll.u32 %v5546_v41, 16 }
 0x23d   : > { %9036 = vmatpush3.bf16.msra.mxu1 %v9580_v37  ;;  %v5605_v37 = vrot.slane %v5604_v24, 4  ;;  %v5662_v7 = vor.u32 %v5661_v53, %v10600_v50  ;;  %v5710_v24 = vor.u32 %v5709_v2, %v10607_v63  ;;  %v5644_v17 = vsel %vm10112_vm11, %v5639_v4, %v5643_v18 }
 0x23e   : > { %9069 = vmatprep.subr.bf16.mxu1 %v10587_v42  ;;  %v8011_v39 = vcombine.low %v5634_v28, %v5644_v17  ;;  %v5658_v10 = vsel %vm10112_vm11, %v5653_v52, %v10600_v50  ;;  %v9584_v50 = vld [vmem:[%s10988_s3 + $0x210] sm:$0xff]   ;;  %v5737_v18 = vshll.u32 %v5545_v45, 16  ;;  %v10638_v2 = vrot.slane %v5751_v61, 5 }
 0x23f   : > { %v5663_v27 = vrot.slane %v5662_v7, 4  ;;  %v5711_v21 = vrot.slane %v5710_v24, 4  ;;  %v5744_v4 = vrot.slane %v5742_v48, 4  ;;  %v5747_v9 = vrot.slane %v5745_v1, 5  ;;  %v5556_v17 = vld [vmem:[#allocation2 + $0x94] sm:$0xf] }
 0x240   : > { %9006 = vmatmul.mubr.bf16.gmra.mrb[0].mxu1 %v9572_v44  ;;  %v5683_v44 = vshrl.u32 %v5538_v29, 16  ;;  %v5689_v29 = vshll.u32 %v5539_v11, 16  ;;  %v5739_v24 = vrot.slane %v5737_v18, 5  ;;  %v5771_v28 = vrot.slane %v5769_v3, 5 }
 0x241   : > { %9009 = vmatprep.mubr.bf16.mxu1 %v9573_v46  ;;  %v5540_v46 = vld [vmem:[#allocation2 + $0x54] sm:$0xf]  ;;  %v5668_v53 = vsel %vm10112_vm11, %v5663_v27, %v5667_v0  ;;  %v5551_v0 = vld [vmem:[#allocation2 + $0x80] sm:$0x1] }
 0x242   : > { %v5685_v57 = vrot.slane %v5683_v44, 4  ;;  %v5694_v58 = vshrl.u32 %v5540_v46, 16  ;;  %v5697_v30 = vshll.u32 %v5540_v46, 16  ;;  %v10622_v44 = vrot.slane %v5727_v26, 5  ;;  %v5555_v26 = vld [vmem:[#allocation2 + $0x90] sm:$0xf] }
 0x243   : > { %v5691_v46 = vrot.slane %v5689_v29, 5  ;;  %v8012_v7 = vcombine.low %v5658_v10, %v5668_v53  ;;  %v5817_v41 = vshll.u32 %v5555_v26, 16  ;;  %v5785_v10 = vshll.u32 %v5551_v0, 16  ;;  %v5558_v53 = vld [vmem:[#allocation2 + $0x9c] sm:$0xf] }
 0x244   : > { %v5696_v22 = vrot.slane %v5694_v58, 4  ;;  %v5550_v58 = vld [vmem:[#allocation2 + $0x7c] sm:$0xf] }
 0x245   : > { %v5775_v5 = vshll.u32 %v5550_v58, 16  ;;  %v5779_v6 = vshrl.u32 %v5550_v58, 16  ;;  %v9587_v58 = vld [vmem:[%s10988_s3 + $0x228] sm:$0xff]  }
 0x247   : > { %v10650_v52 = vrot.slane %v5775_v5, 5  ;;  %v5781_v27 = vrot.slane %v5779_v6, 4  ;;  %v5838_v5 = vshrl.u32 %v5558_v53, 16  ;;  %v5841_v6 = vshll.u32 %v5558_v53, 16 }
 0x248   : > { %9010 = vmatmul.mubr.bf16.gmra.mrb[4].mxu1 %v9575_v54  ;;  %v5673_v54 = vshll.u32 %v5537_v49, 16  ;;  %v9583_v49 = vld [vmem:[%s10988_s3 + $0x208] sm:$0xff]  }
 0x249   : > { %9013 = vmatprep.mubr.bf16.mxu1 %v9576_v62  ;;  %v5610_v62 = vsel %vm10112_vm11, %v5605_v37, %v10590_v59  ;;  %v5686_v59 = vor.u32 %v5685_v57, %v10602_v56 }
 0x24a   : > { %v5675_v16 = vrot.slane %v5673_v54, 5  ;;  %v8010_v20 = vcombine.low %v5610_v62, %v5620_v55  ;;  %v5766_v55 = vshrl.u32 %v5549_v36, 16 }
 0x24b   : > { %v5687_v34 = vrot.slane %v5686_v59, 4  ;;  %v5552_v59 = vld [vmem:[#allocation2 + $0x84] sm:$0xf] }
 0x24c   : > { %v5676_v33 = vor.u32 %v5675_v16, %v5672_v12  ;;  %v5548_v16 = vld [vmem:[#allocation2 + $0x74] sm:$0x1]  ;;  %v5790_v13 = vshrl.u32 %v5552_v59, 16 }
 0x24d   : > { %v5692_v54 = vsel %vm10112_vm11, %v5687_v34, %v5691_v46  ;;  %v5761_v29 = vshll.u32 %v5548_v16, 16  ;;  %v5803_v34 = vshrl.u32 %v5553_v19, 16 }
 0x24e   : > { %v5677_v51 = vrot.slane %v5676_v33, 4  ;;  %v5799_v33 = vshll.u32 %v5553_v19, 16 }
 0x24f   : > { %v5763_v61 = vrot.slane %v5761_v29, 5  ;;  %v5805_v36 = vrot.slane %v5803_v34, 4  ;;  %v5843_v29 = vrot.slane %v5841_v6, 5 }
 0x250   : > { %9014 = vmatmul.mubr.bf16.gmra.mrb[8].mxu1 %v9578_v38  ;;  %v5699_v38 = vrot.slane %v5697_v30, 5  ;;  %v5716_v30 = vsel %vm10112_vm11, %v5711_v21, %v5715_v47  ;;  %v5682_v11 = vsel %vm10112_vm11, %v5677_v51, %v10602_v56  ;;  %v5827_v21 = vshrl.u32 %v5556_v17, 16 }
 0x251   : > { %9017 = vmatprep.mubr.bf16.mxu1 %v9579_v60  ;;  %v5718_v60 = vshrl.u32 %v5543_v14, 16  ;;  %v5792_v47 = vrot.slane %v5790_v13, 4  ;;  %v10661_v1 = vrot.slane %v5799_v33, 5 }
 0x252   : > { %v5700_v35 = vor.u32 %v5699_v38, %v5696_v22  ;;  %v8013_v22 = vcombine.low %v5682_v11, %v5692_v54 }
 0x253   : > { %v5720_v37 = vrot.slane %v5718_v60, 4 }
 0x254   : > { %v5701_v57 = vrot.slane %v5700_v35, 4  ;;  %v9586_v35 = vld [vmem:[%s10988_s3 + $0x220] sm:$0xff]  }
 0x255   : > { %v5724_v62 = vor.u32 %v5723_v23, %v5720_v37  ;;  %v5814_v37 = vshrl.u32 %v5555_v26, 16 }
 0x256   : > { %v5706_v12 = vsel %vm10112_vm11, %v5701_v57, %v10607_v63  ;;  %v5748_v63 = vor.u32 %v5747_v9, %v5744_v4  ;;  %v5829_v57 = vrot.slane %v5827_v21, 4  ;;  %v5806_v4 = vor.u32 %v5805_v36, %v10661_v1  ;;  %v5557_v9 = vld [vmem:[#allocation2 + $0x98] sm:$0x1] }
 0x257   : > { %v8014_v38 = vcombine.low %v5706_v12, %v5716_v30  ;;  %v5725_v60 = vrot.slane %v5724_v62, 4  ;;  %v5816_v51 = vrot.slane %v5814_v37, 4  ;;  %v5787_v12 = vrot.slane %v5785_v10, 5 }
 0x258   : > { %9018 = vmatmul.mubr.bf16.gmra.mrb[12].mxu1 %v9581_v8  ;;  %v5755_v8 = vshrl.u32 %v5547_v32, 16  ;;  %v5793_v32 = vshll.u32 %v5552_v59, 16  ;;  %v5749_v45 = vrot.slane %v5748_v63, 4  ;;  %v5833_v26 = vshll.u32 %v5557_v9, 16 }
 0x259   : > { %9037 = vmatprep.mubr.bf16.mxu1 %v8009_v40  ;;  %v5733_v40 = vrot.slane %v5731_v25, 4  ;;  %v5730_v23 = vsel %vm10112_vm11, %v5725_v60, %v10622_v44  ;;  %v5840_v63 = vrot.slane %v5838_v5, 4 }
 0x25a   : > { %v5757_v14 = vrot.slane %v5755_v8, 4  ;;  %v5782_v8 = vor.u32 %v5781_v27, %v10650_v52  ;;  %v5795_v48 = vrot.slane %v5793_v32, 5  ;;  %v9589_v32 = vld [vmem:[%s10988_s3 + $0x238] sm:$0xff]  }
 0x25c   : > { %v5758_v56 = vor.u32 %v5757_v14, %v10638_v2  ;;  %v5783_v18 = vrot.slane %v5782_v8, 4  ;;  %v5554_v14 = vld [vmem:[#allocation2 + $0x8c] sm:$0x1]  ;;  %v5796_v3 = vor.u32 %v5795_v48, %v5792_v47  ;;  %v5568_v8 = vld [vmem:[#allocation2 + $0xc4] sm:$0xf] }
 0x25d   : > { %v5563_v48 = vld [vmem:[#allocation2 + $0xb0] sm:$0x1] }
 0x25e   : > { %v5881_v9 = vshll.u32 %v5563_v48, 16 }
 0x260   : > { %9038 = vmatmul.mubr.bf16.vlgmr.msra.gmra.mrb[16].mxu1 %v8010_v20  ;;  %v5768_v20 = vrot.slane %v5766_v55, 4  ;;  %v5559_v55 = vld [vmem:[#allocation2 + $0xa0] sm:$0xf] }
 0x261   : > { %9070 = vmatpush3.bf16.msra.mxu1 %v10587_v42  ;;  %9041 = vmatprep.mubr.bf16.mxu1 %v8011_v39  ;;  %v5734_v42 = vor.u32 %v5733_v40, %v10622_v44  ;;  %v5759_v39 = vrot.slane %v5758_v56, 4  ;;  %v5819_v44 = vrot.slane %v5817_v41, 5  ;;  %v5851_v60 = vshrl.u32 %v5559_v55, 16  ;;  %v5564_v41 = vld [vmem:[#allocation2 + $0xb4] sm:$0xf] }
 0x262   : > { %9071 = vmatprep.subr.bf16.mxu1 %v9583_v49  ;;  %v5772_v46 = vor.u32 %v5771_v28, %v5768_v20  ;;  %v5797_v20 = vrot.slane %v5796_v3, 4  ;;  %v5807_v28 = vrot.slane %v5806_v4, 4  ;;  %v5570_v3 = vld [vmem:[#allocation2 + $0xcc] sm:$0xf] }
 0x263   : > { %v5735_v25 = vrot.slane %v5734_v42, 4  ;;  %v5764_v30 = vsel %vm10112_vm11, %v5759_v39, %v5763_v61  ;;  %v5754_v42 = vsel %vm10112_vm11, %v5749_v45, %v10638_v2  ;;  %v5820_v16 = vor.u32 %v5819_v44, %v5816_v51  ;;  %v9588_v2 = vld [vmem:[%s10988_s3 + $0x230] sm:$0xff]  }
 0x264   : > { %v5773_v62 = vrot.slane %v5772_v46, 4  ;;  %v8016_v11 = vcombine.low %v5754_v42, %v5764_v30  ;;  %v5853_v37 = vrot.slane %v5851_v60, 4  ;;  %v5802_v39 = vsel %vm10112_vm11, %v5797_v20, %v10661_v1  ;;  %v5566_v60 = vld [vmem:[#allocation2 + $0xbc] sm:$0x1] }
 0x265   : > { %9072 = vmatpush3.bf16.msra.mxu1 %v9583_v49  ;;  %v5823_v49 = vshll.u32 %v5556_v17, 16  ;;  %v5740_v40 = vsel %vm10112_vm11, %v5735_v25, %v5739_v24  ;;  %v5561_v24 = vld [vmem:[#allocation2 + $0xa8] sm:$0xf]  ;;  %v5560_v17 = vld [vmem:[#allocation2 + $0xa4] sm:$0x1]  ;;  %v5821_v27 = vrot.slane %v5820_v16, 4  ;;  %v5844_v45 = vor.u32 %v5843_v29, %v5840_v63 }
 0x266   : > { %9073 = vmatprep.subr.bf16.mxu1 %v9584_v50  ;;  %v5778_v19 = vsel %vm10112_vm11, %v5773_v62, %v10650_v52  ;;  %v5862_v13 = vshrl.u32 %v5561_v24, 16  ;;  %v5865_v52 = vshll.u32 %v5561_v24, 16  ;;  %v5857_v61 = vshll.u32 %v5560_v17, 16 }
 0x267   : > { %v10663_v54 = vrot.slane %v5823_v49, 5  ;;  %v5835_v49 = vrot.slane %v5833_v26, 5  ;;  %v5886_v51 = vshrl.u32 %v5564_v41, 16  ;;  %v5889_v30 = vshll.u32 %v5564_v41, 16 }
 0x268   : > { %9042 = vmatmul.mubr.bf16.gmra.mrb[20].mxu1 %v8012_v7  ;;  %v5562_v7 = vld [vmem:[#allocation2 + $0xac] sm:$0xf]  ;;  %v5864_v36 = vrot.slane %v5862_v13, 4  ;;  %v5867_v53 = vrot.slane %v5865_v52, 5  ;;  %v5919_v62 = vshll.u32 %v5568_v8, 16  ;;  %v5923_v42 = vshrl.u32 %v5568_v8, 16 }
 0x269   : > { %9045 = vmatprep.mubr.bf16.mxu1 %v8013_v22  ;;  %9074 = vmatpush3.bf16.msra.mxu1 %v9584_v50  ;;  %v8015_v50 = vcombine.low %v5730_v23, %v5740_v40  ;;  %v5830_v59 = vor.u32 %v5829_v57, %v10663_v54  ;;  %v5809_v22 = vshll.u32 %v5554_v14, 16  ;;  %v5871_v25 = vshll.u32 %v5562_v7, 16  ;;  %v5565_v40 = vld [vmem:[#allocation2 + $0xb8] sm:$0xf] }
 0x26a   : > { %9075 = vmatprep.subr.bf16.mxu1 %v9585_v15  ;;  %v5875_v56 = vshrl.u32 %v5562_v7, 16  ;;  %v5826_v10 = vsel %vm10112_vm11, %v5821_v27, %v10663_v54  ;;  %v5895_v44 = vshll.u32 %v5565_v40, 16  ;;  %v5899_v57 = vshrl.u32 %v5565_v40, 16  ;;  %v5571_v7 = vld [vmem:[#allocation2 + $0xd0] sm:$0xf] }
 0x26b   : > { %v5831_v0 = vrot.slane %v5830_v59, 4  ;;  %v5811_v34 = vrot.slane %v5809_v22, 5  ;;  %v10688_v21 = vrot.slane %v5871_v25, 5  ;;  %v5845_v14 = vrot.slane %v5844_v45, 4 }
 0x26c   : > { %v5877_v23 = vrot.slane %v5875_v56, 4  ;;  %v5868_v4 = vor.u32 %v5867_v53, %v5864_v36  ;;  %v5897_v16 = vrot.slane %v5895_v44, 5  ;;  %v5901_v59 = vrot.slane %v5899_v57, 4 }
 0x26d   : > { %9076 = vmatpush3.bf16.msra.mxu1 %v9585_v15  ;;  %v5788_v15 = vsel %vm10112_vm11, %v5783_v18, %v5787_v12  ;;  %v5812_v46 = vsel %vm10112_vm11, %v5807_v28, %v5811_v34  ;;  %v5836_v47 = vsel %vm10112_vm11, %v5831_v0, %v5835_v49  ;;  %v5888_v12 = vrot.slane %v5886_v51, 4  ;;  %v5569_v0 = vld [vmem:[#allocation2 + $0xc8] sm:$0x1]  ;;  %v9590_v51 = vld [vmem:[%s10990_s5] sm:$0xff]  }
 0x26e   : > { %9077 = vmatprep.subr.bf16.mxu1 %v9586_v35  ;;  %v8017_v33 = vcombine.low %v5778_v19, %v5788_v15  ;;  %v8018_v18 = vcombine.low %v5802_v39, %v5812_v46  ;;  %v8019_v54 = vcombine.low %v5826_v10, %v5836_v47  ;;  %v5891_v19 = vrot.slane %v5889_v30, 5  ;;  %v5572_v46 = vld [vmem:[#allocation2 + $0xd4] sm:$0x1]  ;;  %9117 = vmatprep.subr.bf16.mxu0 %v9590_v51 }
 0x26f   : > { %v5921_v22 = vrot.slane %v5919_v62, 5  ;;  %v5934_v24 = vshrl.u32 %v5570_v3, 16  ;;  %v5937_v15 = vshll.u32 %v5570_v3, 16  ;;  %v5943_v26 = vshll.u32 %v5571_v7, 16  ;;  %9118 = vmatpush3.bf16.msra.mxu0 %v9590_v51 }
 0x270   : > { %9046 = vmatmul.mubr.bf16.gmra.mrb[24].mxu1 %v8014_v38  ;;  %v5847_v38 = vshll.u32 %v5559_v55, 16  ;;  %v5859_v55 = vrot.slane %v5857_v61, 5  ;;  %v5947_v25 = vshrl.u32 %v5571_v7, 16  ;;  %v5869_v56 = vrot.slane %v5868_v4, 4 }
 0x271   : > { %9049 = vmatprep.mubr.bf16.mxu1 %v8015_v50  ;;  %9078 = vmatpush3.bf16.msra.mxu1 %v9586_v35  ;;  %v5878_v50 = vor.u32 %v5877_v23, %v10688_v21  ;;  %v5883_v20 = vrot.slane %v5881_v9, 5  ;;  %v5902_v27 = vor.u32 %v5901_v59, %v5897_v16  ;;  %v5892_v52 = vor.u32 %v5891_v19, %v5888_v12  ;;  %v6345_v9 = vld [vmem:[#allocation2 + $0x20] sm:$0x1]  ;;  %v6343_v12 = vld [vmem:[#allocation2 + $0x18] sm:$0xe] }
 0x272   : > { %9079 = vmatprep.subr.bf16.mxu1 %v9587_v58  ;;  %v10686_v35 = vrot.slane %v5847_v38, 5  ;;  %v5925_v38 = vrot.slane %v5923_v42, 4  ;;  %v5936_v34 = vrot.slane %v5934_v24, 4  ;;  %v5945_v41 = vrot.slane %v5943_v26, 5  ;;  %v9593_v59 = vld [vmem:[%s10990_s5 + $0x18] sm:$0xff]  }
 0x273   : > { %v5949_v49 = vrot.slane %v5947_v25, 4  ;;  %v5929_v39 = vshll.u32 %v5569_v0, 16  ;;  %v5903_v61 = vrot.slane %v5902_v27, 4  ;;  %v5893_v47 = vrot.slane %v5892_v52, 4  ;;  %v6348_v26 = vld [vmem:[#allocation2 + $0x2c] sm:$0x1] }
 0x274   : > { %v5854_v1 = vor.u32 %v5853_v37, %v10686_v35  ;;  %v5850_v63 = vsel %vm10112_vm11, %v5845_v14, %v10686_v35  ;;  %v5939_v37 = vrot.slane %v5937_v15, 5  ;;  %v5874_v35 = vsel %vm10112_vm11, %v5869_v56, %v10688_v21  ;;  %v9591_v21 = vld [vmem:[%s10990_s5 + $0x8] sm:$0xff]   ;;  %v9592_v14 = vld [vmem:[%s10990_s5 + $0x10] sm:$0xff]  }
 0x275   : > { %9080 = vmatpush3.bf16.msra.mxu1 %v9587_v58  ;;  %v5567_v58 = vld [vmem:[#allocation2 + $0xc0] sm:$0xf]  ;;  %v5950_v36 = vor.u32 %v5949_v49, %v5945_v41  ;;  %v5953_v53 = vshll.u32 %v5572_v46, 16  ;;  %v5931_v57 = vrot.slane %v5929_v39, 5  ;;  %v5898_v62 = vsel %vm10112_vm11, %v5893_v47, %v5897_v16  ;;  %9119 = vmatprep.subr.bf16.mxu0 %v9591_v21  ;;  %v6350_v16 = vld [vmem:[#allocation2 + $0x34] sm:$0xf] }
 0x276   : > { %9081 = vmatprep.subr.bf16.mxu1 %v9588_v2  ;;  %v5910_v5 = vshrl.u32 %v5567_v58, 16  ;;  %v5913_v6 = vshll.u32 %v5567_v58, 16  ;;  %v5940_v48 = vor.u32 %v5939_v37, %v5936_v34  ;;  %9120 = vmatpush3.bf16.msra.mxu0 %v9591_v21  ;;  %v6455_v24 = vrot.slane %v6350_v16, 5  ;;  %v6349_v27 = vld [vmem:[#allocation2 + $0x30] sm:$0xe] }
 0x277   : > { %9121 = vmatprep.subr.bf16.mxu0 %v9592_v14  ;;  %v6356_v0 = vld [vmem:[#allocation2 + $0x4c] sm:$0xf]  ;;  %v8035_v34 = vrot.slane %v6349_v27, 9 }
 0x278   : > { %9050 = vmatmul.mubr.bf16.gmra.mrb[28].mxu1 %v8016_v11  ;;  %v5855_v11 = vrot.slane %v5854_v1, 4  ;;  %v5912_v28 = vrot.slane %v5910_v5, 4  ;;  %v5915_v17 = vrot.slane %v5913_v6, 5  ;;  %v6344_v1 = vld [vmem:[#allocation2 + $0x1c] sm:$0xf]  ;;  %v5941_v42 = vrot.slane %v5940_v48, 4 }
 0x279   : > { %9053 = vmatprep.mubr.bf16.mxu1 %v8017_v33  ;;  %9082 = vmatpush3.bf16.msra.mxu1 %v9588_v2  ;;  %v5879_v2 = vrot.slane %v5878_v50, 4  ;;  %v5926_v33 = vor.u32 %v5925_v38, %v5921_v22  ;;  %v6441_v30 = vrot.slane %v6344_v1, 5  ;;  %v6347_v6 = vld [vmem:[#allocation2 + $0x28] sm:$0xf]  ;;  %v8033_v38 = vrot.slane %v6343_v12, 9 }
 0x27a   : > { %9083 = vmatprep.subr.bf16.mxu1 %v9589_v32  ;;  %v5860_v29 = vsel %vm10112_vm11, %v5855_v11, %v5859_v55  ;;  %v5916_v40 = vor.u32 %v5915_v17, %v5912_v28  ;;  %v5946_v7 = vsel %vm10112_vm11, %v5941_v42, %v5945_v41  ;;  %v6448_v19 = vrot.slane %v6347_v6, 5  ;;  %9122 = vmatpush3.bf16.msra.mxu0 %v9592_v14  ;;  %v6346_v28 = vld [vmem:[#allocation2 + $0x24] sm:$0xe]  ;;  %v6355_v48 = vld [vmem:[#allocation2 + $0x48] sm:$0xe] }
 0x27b   : > { %v5884_v13 = vsel %vm10112_vm11, %v5879_v2, %v5883_v20  ;;  %v8020_v23 = vcombine.low %v5850_v63, %v5860_v29  ;;  %v5927_v10 = vrot.slane %v5926_v33, 4  ;;  %v6443_v5 = vrot.slane %v6441_v30, 4  ;;  %9123 = vmatprep.subr.bf16.mxu0 %v9593_v59  ;;  %v6351_v20 = vld [vmem:[#allocation2 + $0x38] sm:$0x1]  ;;  %v6353_v63 = vld [vmem:[#allocation2 + $0x40] sm:$0xf] }
 0x27c   : > { %v8021_v45 = vcombine.low %v5874_v35, %v5884_v13  ;;  %v5917_v44 = vrot.slane %v5916_v40, 4  ;;  %v6444_v2 = vrot.slane %v6345_v9, 5  ;;  %v6442_v15 = vsel %vm10322_vm14, %v8033_v38, %v6441_v30  ;;  %v6354_v40 = vld [vmem:[#allocation2 + $0x44] sm:$0x1]  ;;  %v6360_v42 = vld [vmem:[#allocation2 + $0x5c] sm:$0x1] }
 0x27d   : > { %9084 = vmatpush3.bf16.msra.mxu1 %v9589_v32  ;;  %v5905_v32 = vshll.u32 %v5566_v60, 16  ;;  %v5932_v50 = vsel %vm10112_vm11, %v5927_v10, %v5931_v57  ;;  %v6450_v56 = vrot.slane %v6448_v19, 4  ;;  %v6457_v17 = vrot.slane %v6455_v24, 4  ;;  %v6359_v10 = vld [vmem:[#allocation2 + $0x58] sm:$0xf] }
 0x27e   : > { %v5922_v3 = vsel %vm10112_vm11, %v5917_v44, %v5921_v22  ;;  %v6445_v60 = vsel %vm10322_vm14, %v6443_v5, %v6444_v2  ;;  %9124 = vmatpush3.bf16.msra.mxu0 %v9593_v59  ;;  %v6451_v29 = vrot.slane %v6348_v26, 5  ;;  %v6458_v13 = vrot.slane %v6351_v20, 5  ;;  %v6363_v14 = vld [vmem:[#allocation2 + $0x68] sm:$0x1]  ;;  %v6361_v5 = vld [vmem:[#allocation2 + $0x60] sm:$0xe] }
 0x27f   : > { %v5907_v8 = vrot.slane %v5905_v32, 5  ;;  %v8023_v4 = vcombine.low %v5922_v3, %v5932_v50  ;;  %v8065_v25 = vcombine.low %v6442_v15, %v6445_v60  ;;  %9125 = vmatprep.subr.bf16.mxu0 %v9594_v31  ;;  %v8034_v52 = vrot.slane %v6346_v28, 9  ;;  %v6368_v6 = vld [vmem:[#allocation2 + $0x7c] sm:$0xf]  ;;  %v6369_v26 = vld [vmem:[#allocation2 + $0x80] sm:$0x1] }
 0x280   : > { %9054 = vmatmul.mubr.bf16.gmra.mrb[0].mxu1 %v8018_v18  ;;  %v5951_v18 = vrot.slane %v5950_v36, 4  ;;  %v6452_v32 = vsel %vm10322_vm14, %v6450_v56, %v6451_v29  ;;  %v6462_v33 = vrot.slane %v6353_v63, 5  ;;  %v6459_v37 = vsel %vm10322_vm14, %v6457_v17, %v6458_v13  ;;  %v6362_v36 = vld [vmem:[#allocation2 + $0x64] sm:$0xf]  ;;  %v6371_v20 = vld [vmem:[#allocation2 + $0x88] sm:$0xf] }
 0x281   : > { %9057 = vmatprep.mubr.bf16.mxu1 %v8019_v54  ;;  %v5908_v58 = vsel %vm10112_vm11, %v5903_v61, %v5907_v8  ;;  %v5955_v54 = vrot.slane %v5953_v53, 5  ;;  %v6469_v41 = vrot.slane %v6356_v0, 5  ;;  %v6449_v49 = vsel %vm10322_vm14, %v8034_v52, %v6448_v19  ;;  %v6352_v61 = vld [vmem:[#allocation2 + $0x3c] sm:$0xe]  ;;  %v6367_v17 = vld [vmem:[#allocation2 + $0x78] sm:$0xe] }
 0x282   : > { %v8022_v55 = vcombine.low %v5898_v62, %v5908_v58  ;;  %9126 = vmatpush3.bf16.msra.mxu0 %v9594_v31  ;;  %v6456_v35 = vsel %vm10322_vm14, %v8035_v34, %v6455_v24  ;;  %v6464_v46 = vrot.slane %v6462_v33, 4  ;;  %v6465_v47 = vrot.slane %v6354_v40, 5  ;;  %v6366_v24 = vld [vmem:[#allocation2 + $0x74] sm:$0x1]  ;;  %v6375_v40 = vld [vmem:[#allocation2 + $0x98] sm:$0x1] }
 0x283   : > { %v5956_v11 = vsel %vm10112_vm11, %v5951_v18, %v5955_v54  ;;  %v8067_v39 = vcombine.low %v6456_v35, %v6459_v37  ;;  %v6471_v8 = vrot.slane %v6469_v41, 4  ;;  %v8036_v1 = vrot.slane %v6352_v61, 9  ;;  %v6374_v63 = vld [vmem:[#allocation2 + $0x94] sm:$0xf] }
 0x284   : > { %v8024_v22 = vcombine.low %v5946_v7, %v5956_v11  ;;  %v6466_v51 = vsel %vm10322_vm14, %v6464_v46, %v6465_v47  ;;  %v6476_v21 = vrot.slane %v6359_v10, 5  ;;  %v8037_v44 = vrot.slane %v6355_v48, 9  ;;  %v6380_v10 = vld [vmem:[#allocation2 + $0xac] sm:$0xf] }
 0x285   : > { %v6483_v58 = vrot.slane %v6362_v36, 5  ;;  %v6463_v50 = vsel %vm10322_vm14, %v8036_v1, %v6462_v33  ;;  %v6479_v9 = vrot.slane %v6360_v42, 5  ;;  %v6486_v7 = vrot.slane %v6363_v14, 5  ;;  %v6381_v42 = vld [vmem:[#allocation2 + $0xb0] sm:$0x1] }
 0x286   : > { %v8068_v30 = vcombine.low %v6463_v50, %v6466_v51  ;;  %v6470_v62 = vsel %vm10322_vm14, %v8037_v44, %v6469_v41  ;;  %v6478_v54 = vrot.slane %v6476_v21, 4  ;;  %v8039_v59 = vrot.slane %v6361_v5, 9  ;;  %v6378_v50 = vld [vmem:[#allocation2 + $0xa4] sm:$0x1]  ;;  %v6383_v14 = vld [vmem:[#allocation2 + $0xb8] sm:$0xf] }
 0x287   : > { %v6485_v3 = vrot.slane %v6483_v58, 4  ;;  %v6497_v19 = vrot.slane %v6368_v6, 5  ;;  %v6493_v28 = vrot.slane %v6366_v24, 5  ;;  %v6500_v29 = vrot.slane %v6369_v26, 5 }
 0x288   : > { %9058 = vmatmul.mubr.bf16.gmra.mrb[4].mxu1 %v8020_v23  ;;  %v8066_v23 = vcombine.low %v6449_v49, %v6452_v32  ;;  %v6480_v12 = vsel %vm10322_vm14, %v6478_v54, %v6479_v9  ;;  %v6484_v60 = vsel %vm10322_vm14, %v8039_v59, %v6483_v58  ;;  %v6504_v13 = vrot.slane %v6371_v20, 5  ;;  %v6372_v49 = vld [vmem:[#allocation2 + $0x8c] sm:$0x1] }
 0x289   : > { %9061 = vmatprep.mubr.bf16.mxu1 %v8021_v45  ;;  %v6357_v45 = vld [vmem:[#allocation2 + $0x50] sm:$0x1]  ;;  %v6487_v2 = vsel %vm10322_vm14, %v6485_v3, %v6486_v7  ;;  %v6499_v56 = vrot.slane %v6497_v19, 4  ;;  %v8041_v52 = vrot.slane %v6367_v17, 9  ;;  %v6511_v33 = vrot.slane %v6374_v63, 5 }
 0x28a   : > { %v6472_v53 = vrot.slane %v6357_v45, 5  ;;  %v8071_v31 = vcombine.low %v6484_v60, %v6487_v2  ;;  %v6506_v35 = vrot.slane %v6504_v13, 4  ;;  %v6377_v45 = vld [vmem:[#allocation2 + $0xa0] sm:$0xf]  ;;  %v6507_v61 = vrot.slane %v6372_v49, 5 }
 0x28b   : > { %v6501_v32 = vsel %vm10322_vm14, %v6499_v56, %v6500_v29  ;;  %v6498_v41 = vsel %vm10322_vm14, %v8041_v52, %v6497_v19  ;;  %v6513_v46 = vrot.slane %v6511_v33, 4  ;;  %v6514_v47 = vrot.slane %v6375_v40, 5  ;;  %v6379_v3 = vld [vmem:[#allocation2 + $0xa8] sm:$0xe]  ;;  %v6385_v56 = vld [vmem:[#allocation2 + $0xc0] sm:$0xe] }
 0x28c   : > { %v6473_v57 = vsel %vm10322_vm14, %v6471_v8, %v6472_v53  ;;  %v6373_v8 = vld [vmem:[#allocation2 + $0x90] sm:$0xe]  ;;  %v6508_v36 = vsel %vm10322_vm14, %v6506_v35, %v6507_v61  ;;  %v6518_v53 = vrot.slane %v6377_v45, 5  ;;  %v6528_v9 = vrot.slane %v6381_v42, 5  ;;  %v6388_v17 = vld [vmem:[#allocation2 + $0xcc] sm:$0xe] }
 0x28d   : > { %v8069_v18 = vcombine.low %v6470_v62, %v6473_v57  ;;  %v8043_v1 = vrot.slane %v6373_v8, 9  ;;  %v6515_v51 = vsel %vm10322_vm14, %v6513_v46, %v6514_v47  ;;  %v6532_v7 = vrot.slane %v6383_v14, 5  ;;  %v6390_v63 = vld [vmem:[#allocation2 + $0xd4] sm:$0x1]  ;;  %v9595_v14 = vld [vmem:[%s10990_s5 + $0x28] sm:$0xff]  }
 0x28e   : > { %v6520_v62 = vrot.slane %v6518_v53, 4  ;;  %9127 = vmatprep.subr.bf16.mxu0 %v9595_v14 }
 0x28f   : > { %v6512_v58 = vsel %vm10322_vm14, %v8043_v1, %v6511_v33  ;;  %v6534_v24 = vrot.slane %v6532_v7, 4  ;;  %9128 = vmatpush3.bf16.msra.mxu0 %v9595_v14 }
 0x290   : > { %9062 = vmatmul.mubr.bf16.gmra.mrb[8].mxu1 %v8022_v55  ;;  %v6358_v55 = vld [vmem:[#allocation2 + $0x54] sm:$0xe] }
 0x291   : > { %9065 = vmatprep.mubr.bf16.mxu1 %v8023_v4  ;;  %v6365_v4 = vld [vmem:[#allocation2 + $0x70] sm:$0xf]  ;;  %v8038_v11 = vrot.slane %v6358_v55, 9  ;;  %v6521_v55 = vrot.slane %v6378_v50, 5 }
 0x292   : > { %v6490_v16 = vrot.slane %v6365_v4, 5  ;;  %v6386_v4 = vld [vmem:[#allocation2 + $0xc4] sm:$0xf] }
 0x293   : > { %v6522_v6 = vsel %vm10322_vm14, %v6520_v62, %v6521_v55 }
 0x294   : > { %v6492_v15 = vrot.slane %v6490_v16, 4 }
 0x296   : > { %v6494_v0 = vsel %vm10322_vm14, %v6492_v15, %v6493_v28  ;;  %v6382_v15 = vld [vmem:[#allocation2 + $0xb4] sm:$0xe] }
 0x297   : > { %v8046_v29 = vrot.slane %v6382_v15, 9 }
 0x298   : > { %9066 = vmatmul.mubr.bf16.gmra.mrb[12].mxu1 %v8024_v22  ;;  %v6477_v22 = vsel %vm10322_vm14, %v8038_v11, %v6476_v21  ;;  %v6525_v21 = vrot.slane %v6380_v10, 5  ;;  %v8045_v11 = vrot.slane %v6379_v3, 9  ;;  %v9596_v3 = vld [vmem:[%s10990_s5 + $0x30] sm:$0xff]  }
 0x299   : > { %9085 = vmatprep.mubr.bf16.mxu1 %v8065_v25  ;;  %v8070_v38 = vcombine.low %v6477_v22, %v6480_v12  ;;  %v6364_v25 = vld [vmem:[#allocation2 + $0x6c] sm:$0xe]  ;;  %v6384_v22 = vld [vmem:[#allocation2 + $0xbc] sm:$0x1]  ;;  %v6533_v52 = vsel %vm10322_vm14, %v8046_v29, %v6532_v7  ;;  %9129 = vmatprep.subr.bf16.mxu0 %v9596_v3 }
 0x29a   : > { %v8040_v27 = vrot.slane %v6364_v25, 9  ;;  %v6527_v54 = vrot.slane %v6525_v21, 4  ;;  %v6526_v19 = vsel %vm10322_vm14, %v8045_v11, %v6525_v21  ;;  %v6535_v25 = vrot.slane %v6384_v22, 5  ;;  %9130 = vmatpush3.bf16.msra.mxu0 %v9596_v3 }
 0x29c   : > { %v6491_v34 = vsel %vm10322_vm14, %v8040_v27, %v6490_v16  ;;  %v6529_v12 = vsel %vm10322_vm14, %v6527_v54, %v6528_v9  ;;  %v6539_v16 = vrot.slane %v6386_v4, 5  ;;  %v6536_v27 = vsel %vm10322_vm14, %v6534_v24, %v6535_v25 }
 0x29d   : > { %v8072_v37 = vcombine.low %v6491_v34, %v6494_v0  ;;  %v8077_v60 = vcombine.low %v6526_v19, %v6529_v12  ;;  %v8047_v0 = vrot.slane %v6385_v56, 9  ;;  %v6549_v34 = vrot.slane %v6390_v63, 5  ;;  %v10853_v19 = vld [vmem:[%s10989_s4] ss:$0 sm:$0xff] }
 0x29e   : > { %v6541_v26 = vrot.slane %v6539_v16, 4 }
 0x2a0   : > { %9086 = vmatmul.mubr.bf16.vlgmr.msra.gmra.mrb[16].mxu1 %v8066_v23  ;;  %v8073_v23 = vcombine.low %v6498_v41, %v6501_v32  ;;  %v8048_v32 = vrot.slane %v6388_v17, 9  ;;  %v6540_v41 = vsel %vm10322_vm14, %v8047_v0, %v6539_v16 }
 0x2a1   : > { %9089 = vmatprep.mubr.bf16.mxu1 %v8067_v39  ;;  %v6370_v39 = vld [vmem:[#allocation2 + $0x84] sm:$0xe] }
 0x2a2   : > { %v8042_v48 = vrot.slane %v6370_v39, 9 }
 0x2a4   : > { %v6505_v44 = vsel %vm10322_vm14, %v8042_v48, %v6504_v13 }
 0x2a5   : > { %v8074_v57 = vcombine.low %v6505_v44, %v6508_v36 }
 0x2a8   : > { %9090 = vmatmul.mubr.bf16.gmra.mrb[20].mxu1 %v8068_v30  ;;  %v8075_v30 = vcombine.low %v6512_v58, %v6515_v51 }
 0x2a9   : > { %9093 = vmatprep.mubr.bf16.mxu1 %v8069_v18  ;;  %v6376_v18 = vld [vmem:[#allocation2 + $0x9c] sm:$0xe] }
 0x2aa   : > { %v8044_v5 = vrot.slane %v6376_v18, 9 }
 0x2ac   : > { %v6519_v59 = vsel %vm10322_vm14, %v8044_v5, %v6518_v53 }
 0x2ad   : > { %v8076_v2 = vcombine.low %v6519_v59, %v6522_v6  ;;  %v9597_v6 = vld [vmem:[%s10990_s5 + $0x38] sm:$0xff]  }
 0x2ae   : > { %9131 = vmatprep.subr.bf16.mxu0 %v9597_v6 }
 0x2af   : > { %9132 = vmatpush3.bf16.msra.mxu0 %v9597_v6 }
 0x2b0   : > { %9094 = vmatmul.mubr.bf16.gmra.mrb[24].mxu1 %v8070_v38  ;;  %v6389_v38 = vld [vmem:[#allocation2 + $0xd0] sm:$0xf] }
 0x2b1   : > { %9097 = vmatprep.mubr.bf16.mxu1 %v8071_v31  ;;  %v6387_v31 = vld [vmem:[#allocation2 + $0xc8] sm:$0x1]  ;;  %v6546_v20 = vrot.slane %v6389_v38, 5 }
 0x2b2   : > { %v6542_v28 = vrot.slane %v6387_v31, 5 }
 0x2b3   : > { %v6548_v33 = vrot.slane %v6546_v20, 4  ;;  %v6547_v46 = vsel %vm10322_vm14, %v8048_v32, %v6546_v20 }
 0x2b4   : > { %v6543_v13 = vsel %vm10322_vm14, %v6541_v26, %v6542_v28 }
 0x2b5   : > { %v6550_v45 = vsel %vm10322_vm14, %v6548_v33, %v6549_v34 }
 0x2b6   : > { %v8080_v61 = vcombine.low %v6547_v46, %v6550_v45 }
 0x2b8   : > { %9098 = vmatmul.mubr.bf16.gmra.mrb[28].mxu1 %v8072_v37  ;;  %v8078_v37 = vcombine.low %v6533_v52, %v6536_v27 }
 0x2b9   : > { %9101 = vmatprep.mubr.bf16.mxu1 %v8073_v23  ;;  %v8079_v23 = vcombine.low %v6540_v41, %v6543_v13 }
 0x2c0   : > { %9102 = vmatmul.mubr.bf16.gmra.mrb[0].mxu1 %v8074_v57 }
 0x2c1   : > { %9105 = vmatprep.mubr.bf16.mxu1 %v8075_v30 }
 0x2c8   : > { %9106 = vmatmul.mubr.bf16.gmra.mrb[4].mxu1 %v8076_v2 }
 0x2c9   : > { %9109 = vmatprep.mubr.bf16.mxu1 %v8077_v60 }
 0x2ce   : > { %v10799_v49 = vpop.f32.mrb[48].mxu0 }
 0x2cf   : > { %v10801_v35 = vpop.f32.mrb[49].mxu0 }
 0x2d0   : > { %9110 = vmatmul.mubr.bf16.gmra.mrb[8].mxu1 %v8078_v37  ;;  %v10803_v40 = vpop.f32.mrb[50].mxu0 }
 0x2d1   : > { %9113 = vmatprep.mubr.bf16.mxu1 %v8079_v23  ;;  %v10805_v39 = vpop.f32.mrb[51].mxu0 }
 0x2d6   : > { %v10811_v8 = vpop.f32.mrb[52].mxu0 }
 0x2d7   : > { %v10813_v10 = vpop.f32.mrb[53].mxu0 }
 0x2d8   : > { %9114 = vmatmul.mubr.bf16.gmra.mrb[12].mxu1 %v8080_v61  ;;  %v10815_v47 = vpop.f32.mrb[54].mxu0 }
 0x2d9   : > { %v10817_v48 = vpop.f32.mrb[55].mxu0 }
 0x2de   : > { %v10819_v36 = vpop.f32.mrb[56].mxu0 }
 0x2df   : > { %v10821_v53 = vpop.f32.mrb[57].mxu0 }
 0x2e0   : > { %v10823_v1 = vpop.f32.mrb[58].mxu0 }
 0x2e1   : > { %v10825_v51 = vpop.f32.mrb[59].mxu0 }
 0x2e6   : > { %v10827_v43 = vpop.f32.mrb[60].mxu0 }
 0x2e7   : > { %v10829_v21 = vpop.f32.mrb[61].mxu0 }
 0x2e8   : > { %v10831_v44 = vpop.f32.mrb[62].mxu0 }
 0x2e9   : > { %v10833_v57 = vpop.f32.mrb[63].mxu0 }
 0x2ee   : > { %v8847_v58 = vpop.f32.mrb[32].mxu0 }
 0x2ef   : > { %v3471_v50 = vpop.f32.mrb[33].mxu0 }
 0x2f0   : > { %v8848_v30 = vpop.f32.mrb[34].mxu0 }
 0x2f1   : > { %v3474_v62 = vpop.f32.mrb[35].mxu0 }
 0x2f6   : > { %v8851_v42 = vpop.f32.mrb[36].mxu0 }
 0x2f7   : > { %v3487_v18 = vpop.f32.mrb[37].mxu0 }
 0x2f8   : > { %v8852_v54 = vpop.f32.mrb[38].mxu0 }
 0x2f9   : > { %v3490_v55 = vpop.f32.mrb[39].mxu0 }
 0x2fe   : > { %v8855_v4 = vpop.f32.mrb[40].mxu0 }
 0x2ff   : > { %v3503_v9 = vpop.f32.mrb[41].mxu0 }
 0x300   : > { %v8856_v5 = vpop.f32.mrb[42].mxu0 }
 0x301   : > { %v3506_v7 = vpop.f32.mrb[43].mxu0 }
 0x306   : > { %v8859_v11 = vpop.f32.mrb[44].mxu0 }
 0x307   : > { %v10844_v12 = vpop.f32.mrb[45].mxu0 }
 0x308   : > { %v10846_v16 = vpop.f32.mrb[46].mxu0 }
 0x309   : > { %v10848_v59 = vpop.f32.mrb[47].mxu0 }
 0x373   : > { %v9087_v2 = vpop.f32.mrb[16].mxu1 }
 0x374   : > { %v9181_v22 = vadd.f32 %v9087_v2, %v8847_v58  ;;  %v6746_v38 = vpop.f32.mrb[17].mxu1 }
 0x375   : > { %v9182_v60 = vadd.f32 %v6746_v38, %v3471_v50  ;;  %v9088_v24 = vpop.f32.mrb[18].mxu1 }
 0x376   : > { %v6978_v31 = vadd.f32 %v9181_v22, %v10853_v19  ;;  %v9183_v15 = vadd.f32 %v9088_v24, %v8848_v30  ;;  %v6749_v26 = vpop.f32.mrb[19].mxu1 }
 0x377   : > { %v6976_v25 = vadd.f32 %v9182_v60, %v10853_v19  ;;  %v9184_v56 = vadd.f32 %v6749_v26, %v3474_v62 }
 0x378   : > { %v6979_v20 = vadd.f32 %v9183_v15, %v10853_v19  ;;  %v7010_v17 = vmax.f32 %v6978_v31, 0.0 }
 0x379   : > { %v6977_v28 = vadd.f32 %v9184_v56, %v10853_v19  ;;  %v7008_v29 = vmax.f32 %v6976_v25, 0.0 }
 0x37a   : > { %v7011_v63 = vmax.f32 %v6979_v20, 0.0 }
 0x37b   : > { %v7009_v27 = vmax.f32 %v6977_v28, 0.0  ;;  %v9091_v0 = vpop.f32.mrb[20].mxu1 }
 0x37c   : > { %v7041_v13 = vpack.c.bf16 %v7011_v63, %v7010_v17  ;;  %v9185_v52 = vadd.f32 %v9091_v0, %v8851_v42  ;;  %v6762_v32 = vpop.f32.mrb[21].mxu1 }
 0x37d   : > { %v9186_v33 = vadd.f32 %v6762_v32, %v3487_v18  ;;  %v9092_v34 = vpop.f32.mrb[22].mxu1  ;;  %v7040_v37 = vpack.c.bf16 %v7009_v27, %v7008_v29 }
 0x37e   : > { %v6982_v41 = vadd.f32 %v9185_v52, %v10853_v19  ;;  %v9187_v23 = vadd.f32 %v9092_v34, %v8852_v54  ;;  %v6765_v46 = vpop.f32.mrb[23].mxu1 }
 0x37f   : > { %v6980_v45 = vadd.f32 %v9186_v33, %v10853_v19  ;;  %v9188_v61 = vadd.f32 %v6765_v46, %v3490_v55  ;;  %9133 = vmatprep.mubr.bf16.mxu0 %v7040_v37 }
 0x380   : > { %v6983_v58 = vadd.f32 %v9187_v23, %v10853_v19  ;;  %9134 = vmatmul.mubr.bf16.vlgmr.msra.gmra.mrb[64].mxu0 %v7041_v13  ;;  %v7014_v30 = vmax.f32 %v6982_v41, 0.0 }
 0x381   : > { %v6981_v50 = vadd.f32 %v9188_v61, %v10853_v19  ;;  %v7012_v42 = vmax.f32 %v6980_v45, 0.0 }
 0x382   : > { %v7015_v62 = vmax.f32 %v6983_v58, 0.0 }
 0x383   : > { %v7013_v14 = vmax.f32 %v6981_v50, 0.0  ;;  %v9095_v18 = vpop.f32.mrb[24].mxu1 }
 0x384   : > { %v9189_v3 = vadd.f32 %v9095_v18, %v8855_v4  ;;  %v6778_v6 = vpop.f32.mrb[25].mxu1  ;;  %v7043_v2 = vpack.c.bf16 %v7015_v62, %v7014_v30 }
 0x385   : > { %v9190_v22 = vadd.f32 %v6778_v6, %v3503_v9  ;;  %v9096_v54 = vpop.f32.mrb[26].mxu1  ;;  %v7042_v38 = vpack.c.bf16 %v7013_v14, %v7012_v42 }
 0x386   : > { %v6986_v60 = vadd.f32 %v9189_v3, %v10853_v19  ;;  %v9191_v55 = vadd.f32 %v9096_v54, %v8856_v5  ;;  %v6781_v24 = vpop.f32.mrb[27].mxu1 }
 0x387   : > { %v6984_v31 = vadd.f32 %v9190_v22, %v10853_v19  ;;  %v9192_v15 = vadd.f32 %v6781_v24, %v3506_v7  ;;  %9137 = vmatprep.mubr.bf16.mxu0 %v7042_v38 }
 0x388   : > { %v6987_v26 = vadd.f32 %v9191_v55, %v10853_v19  ;;  %9138 = vmatmul.mubr.bf16.gmra.mrb[68].mxu0 %v7043_v2  ;;  %v7018_v56 = vmax.f32 %v6986_v60, 0.0 }
 0x389   : > { %v6985_v25 = vadd.f32 %v9192_v15, %v10853_v19  ;;  %v7016_v20 = vmax.f32 %v6984_v31, 0.0 }
 0x38a   : > { %v7019_v4 = vmax.f32 %v6987_v26, 0.0 }
 0x38b   : > { %v7017_v28 = vmax.f32 %v6985_v25, 0.0  ;;  %v9099_v9 = vpop.f32.mrb[28].mxu1 }
 0x38c   : > { %v9193_v17 = vadd.f32 %v9099_v9, %v8859_v11  ;;  %v6794_v63 = vpop.f32.mrb[29].mxu1  ;;  %v7045_v29 = vpack.c.bf16 %v7019_v4, %v7018_v56 }
 0x38d   : > { %v9194_v5 = vadd.f32 %v6794_v63, %v10844_v12  ;;  %v9100_v27 = vpop.f32.mrb[30].mxu1  ;;  %v7044_v0 = vpack.c.bf16 %v7017_v28, %v7016_v20 }
 0x38e   : > { %v6990_v7 = vadd.f32 %v9193_v17, %v10853_v19  ;;  %v9195_v13 = vadd.f32 %v9100_v27, %v10846_v16  ;;  %v6797_v52 = vpop.f32.mrb[31].mxu1 }
 0x38f   : > { %v6988_v32 = vadd.f32 %v9194_v5, %v10853_v19  ;;  %v9196_v33 = vadd.f32 %v6797_v52, %v10848_v59  ;;  %9141 = vmatprep.mubr.bf16.mxu0 %v7044_v0 }
 0x390   : > { %v6991_v34 = vadd.f32 %v9195_v13, %v10853_v19  ;;  %9142 = vmatmul.mubr.bf16.gmra.mrb[72].mxu0 %v7045_v29  ;;  %v7022_v37 = vmax.f32 %v6990_v7, 0.0 }
 0x391   : > { %v6989_v11 = vadd.f32 %v9196_v33, %v10853_v19  ;;  %v7020_v12 = vmax.f32 %v6988_v32, 0.0 }
 0x392   : > { %v7023_v41 = vmax.f32 %v6991_v34, 0.0 }
 0x393   : > { %v7021_v23 = vmax.f32 %v6989_v11, 0.0  ;;  %v9103_v46 = vpop.f32.mrb[0].mxu1 }
 0x394   : > { %v9197_v45 = vadd.f32 %v9103_v46, %v10799_v49  ;;  %v6810_v61 = vpop.f32.mrb[1].mxu1  ;;  %v7047_v16 = vpack.c.bf16 %v7023_v41, %v7022_v37 }
 0x395   : > { %v9198_v58 = vadd.f32 %v6810_v61, %v10801_v35  ;;  %v9104_v50 = vpop.f32.mrb[2].mxu1  ;;  %v7046_v30 = vpack.c.bf16 %v7021_v23, %v7020_v12 }
 0x396   : > { %v6994_v59 = vadd.f32 %v9197_v45, %v10853_v19  ;;  %v9199_v62 = vadd.f32 %v9104_v50, %v10803_v40  ;;  %v6813_v42 = vpop.f32.mrb[3].mxu1 }
 0x397   : > { %v6992_v14 = vadd.f32 %v9198_v58, %v10853_v19  ;;  %v9200_v18 = vadd.f32 %v6813_v42, %v10805_v39  ;;  %9145 = vmatprep.mubr.bf16.mxu0 %v7046_v30 }
 0x398   : > { %v6995_v3 = vadd.f32 %v9199_v62, %v10853_v19  ;;  %9146 = vmatmul.mubr.bf16.gmra.mrb[76].mxu0 %v7047_v16  ;;  %v7026_v6 = vmax.f32 %v6994_v59, 0.0 }
 0x399   : > { %v6993_v49 = vadd.f32 %v9200_v18, %v10853_v19  ;;  %v7024_v35 = vmax.f32 %v6992_v14, 0.0 }
 0x39a   : > { %v7027_v2 = vmax.f32 %v6995_v3, 0.0 }
 0x39b   : > { %v7025_v22 = vmax.f32 %v6993_v49, 0.0  ;;  %v9107_v54 = vpop.f32.mrb[4].mxu1  ;;  %v8200_v49 = vld [vmem:[%s9681_s12] sm:$0xff]  }
 0x39c   : > { %v9201_v38 = vadd.f32 %v9107_v54, %v10811_v8  ;;  %v6826_v60 = vpop.f32.mrb[5].mxu1  ;;  %v7049_v40 = vpack.c.bf16 %v7027_v2, %v7026_v6 }
 0x39d   : > { %v9202_v55 = vadd.f32 %v6826_v60, %v10813_v10  ;;  %v9108_v24 = vpop.f32.mrb[6].mxu1  ;;  %v7048_v31 = vpack.c.bf16 %v7025_v22, %v7024_v35 }
 0x39e   : > { %v6998_v39 = vadd.f32 %v9201_v38, %v10853_v19  ;;  %v9203_v15 = vadd.f32 %v9108_v24, %v10815_v47  ;;  %v6829_v26 = vpop.f32.mrb[7].mxu1 }
 0x39f   : > { %v6996_v25 = vadd.f32 %v9202_v55, %v10853_v19  ;;  %v9204_v56 = vadd.f32 %v6829_v26, %v10817_v48  ;;  %9149 = vmatprep.mubr.bf16.mxu0 %v7048_v31  ;;  %v8345_v26 = vld [vmem:[%s9681_s12 + $0x18] sm:$0xff]  }
 0x3a0   : > { %v6999_v4 = vadd.f32 %v9203_v15, %v10853_v19  ;;  %9150 = vmatmul.mubr.bf16.gmra.mrb[80].mxu0 %v7049_v40  ;;  %v7030_v20 = vmax.f32 %v6998_v39, 0.0  ;;  %v8202_v40 = vunpack.c.h.bf16 %v8200_v49 }
 0x3a1   : > { %v6997_v8 = vadd.f32 %v9204_v56, %v10853_v19  ;;  %v7028_v10 = vmax.f32 %v6996_v25, 0.0  ;;  %v8344_v56 = vld [vmem:[%s9681_s12 + $0x10] sm:$0xff]  }
 0x3a2   : > { %v7031_v28 = vmax.f32 %v6999_v4, 0.0 }
 0x3a3   : > { %v7029_v9 = vmax.f32 %v6997_v8, 0.0  ;;  %v9111_v17 = vpop.f32.mrb[8].mxu1 }
 0x3a4   : > { %v9205_v63 = vadd.f32 %v9111_v17, %v10819_v36  ;;  %v6842_v29 = vpop.f32.mrb[9].mxu1  ;;  %v7051_v47 = vpack.c.bf16 %v7031_v28, %v7030_v20  ;;  %v8213_v28 = vunpack.c.l.bf16 %v8345_v26 }
 0x3a5   : > { %v9206_v5 = vadd.f32 %v6842_v29, %v10821_v53  ;;  %v9112_v27 = vpop.f32.mrb[10].mxu1  ;;  %v7050_v0 = vpack.c.bf16 %v7029_v9, %v7028_v10 }
 0x3a6   : > { %v7002_v48 = vadd.f32 %v9205_v63, %v10853_v19  ;;  %v9207_v7 = vadd.f32 %v9112_v27, %v10823_v1  ;;  %v6845_v13 = vpop.f32.mrb[11].mxu1  ;;  %v8209_v63 = vunpack.c.l.bf16 %v8344_v56  ;;  %v8214_v27 = vunpack.c.h.bf16 %v8345_v26 }
 0x3a7   : > { %v7000_v52 = vadd.f32 %v9206_v5, %v10853_v19  ;;  %v9208_v32 = vadd.f32 %v6845_v13, %v10825_v51  ;;  %9153 = vmatprep.mubr.bf16.mxu0 %v7050_v0  ;;  %v8210_v13 = vunpack.c.h.bf16 %v8344_v56 }
 0x3a8   : > { %v7003_v33 = vadd.f32 %v9207_v7, %v10853_v19  ;;  %9154 = vmatmul.mubr.bf16.gmra.mrb[84].mxu0 %v7051_v47  ;;  %v7034_v34 = vmax.f32 %v7002_v48, 0.0 }
 0x3a9   : > { %v7001_v36 = vadd.f32 %v9208_v32, %v10853_v19  ;;  %v7032_v53 = vmax.f32 %v7000_v52, 0.0 }
 0x3aa   : > { %v7035_v11 = vmax.f32 %v7003_v33, 0.0 }
 0x3ab   : > { %v7033_v37 = vmax.f32 %v7001_v36, 0.0  ;;  %v9115_v41 = vpop.f32.mrb[12].mxu1 }
 0x3ac   : > { %v9209_v12 = vadd.f32 %v9115_v41, %v10827_v43  ;;  %v6858_v23 = vpop.f32.mrb[13].mxu1  ;;  %v7053_v1 = vpack.c.bf16 %v7035_v11, %v7034_v34  ;;  %v8347_v11 = vld [vmem:[%s9681_s12 + $0x28] sm:$0xff]  }
 0x3ad   : > { %v9210_v46 = vadd.f32 %v6858_v23, %v10829_v21  ;;  %v9116_v45 = vpop.f32.mrb[14].mxu1  ;;  %v7052_v61 = vpack.c.bf16 %v7033_v37, %v7032_v53  ;;  %v8346_v37 = vld [vmem:[%s9681_s12 + $0x20] sm:$0xff]  }
 0x3ae   : > { %v7006_v51 = vadd.f32 %v9209_v12, %v10853_v19  ;;  %v9211_v16 = vadd.f32 %v9116_v45, %v10831_v44  ;;  %v6861_v58 = vpop.f32.mrb[15].mxu1  ;;  %v8343_v44 = vld [vmem:[%s9681_s12 + $0x8] sm:$0xff]  }
 0x3af   : > { %v7004_v50 = vadd.f32 %v9210_v46, %v10853_v19  ;;  %v9212_v30 = vadd.f32 %v6861_v58, %v10833_v57  ;;  %9157 = vmatprep.mubr.bf16.mxu0 %v7052_v61  ;;  %v10911_v57 = vld [vmem:[%s10991_s6] ss:$0 sm:$0xff]  ;;  %v8205_v6 = vunpack.c.l.bf16 %v8343_v44  ;;  %v8206_v54 = vunpack.c.h.bf16 %v8343_v44 }
 0x3b0   : > { %v7007_v43 = vadd.f32 %v9211_v16, %v10853_v19  ;;  %9158 = vmatmul.mubr.bf16.gmra.mrb[88].mxu0 %v7053_v1  ;;  %v7038_v21 = vmax.f32 %v7006_v51, 0.0  ;;  %v8221_v1 = vunpack.c.l.bf16 %v8347_v11  ;;  %v8217_v51 = vunpack.c.l.bf16 %v8346_v37 }
 0x3b1   : > { %v7005_v59 = vadd.f32 %v9212_v30, %v10853_v19  ;;  %v7036_v42 = vmax.f32 %v7004_v50, 0.0  ;;  %v8201_v19 = vunpack.c.l.bf16 %v8200_v49  ;;  %v8222_v30 = vunpack.c.h.bf16 %v8347_v11  ;;  %v8349_v49 = vld [vmem:[%s9681_s12 + $0x38] sm:$0xff]  }
 0x3b2   : > { %v7039_v62 = vmax.f32 %v7007_v43, 0.0 }
 0x3b3   : > { %v7037_v14 = vmax.f32 %v7005_v59, 0.0 }
 0x3b4   : > { %v7055_v18 = vpack.c.bf16 %v7039_v62, %v7038_v21  ;;  %v8218_v62 = vunpack.c.h.bf16 %v8346_v37 }
 0x3b5   : > { %v7054_v3 = vpack.c.bf16 %v7037_v14, %v7036_v42 }
 0x3b7   : > { %9161 = vmatprep.mubr.bf16.mxu0 %v7054_v3 }
 0x3b8   : > { %9162 = vmatmul.mubr.bf16.gmra.mrb[92].mxu0 %v7055_v18 }
 0x453   : > { %v9135_v2 = vpop.f32.mrb[64].mxu0 }
 0x454   : > { %v7234_v35 = vadd.f32 %v9135_v2, %v10911_v57  ;;  %v7225_v22 = vpop.f32.mrb[65].mxu0  ;;  %v8348_v2 = vld [vmem:[%s9681_s12 + $0x30] sm:$0xff]  }
 0x455   : > { %v7226_v38 = vadd.f32 %v10911_v57, %v7225_v22  ;;  %v9136_v60 = vpop.f32.mrb[66].mxu0 }
 0x456   : > { %v7354_v55 = vadd.f32 %v8205_v6, %v7234_v35  ;;  %v7237_v24 = vadd.f32 %v9136_v60, %v10911_v57  ;;  %v7228_v31 = vpop.f32.mrb[67].mxu0 }
 0x457   : > { %v7352_v39 = vadd.f32 %v8201_v19, %v7226_v38  ;;  %v7229_v15 = vadd.f32 %v10911_v57, %v7228_v31 }
 0x458   : > { %v7355_v25 = vadd.f32 %v8206_v54, %v7237_v24  ;;  %v7386_v8 = vmax.f32 %v7354_v55, 0.0  ;;  %v8229_v54 = vunpack.c.l.bf16 %v8349_v49  ;;  %v8225_v55 = vunpack.c.l.bf16 %v8348_v2 }
 0x459   : > { %v7353_v4 = vadd.f32 %v8202_v40, %v7229_v15  ;;  %v7384_v10 = vmax.f32 %v7352_v39, 0.0  ;;  %v8230_v15 = vunpack.c.h.bf16 %v8349_v49 }
 0x45a   : > { %v7387_v20 = vmax.f32 %v7355_v25, 0.0 }
 0x45b   : > { %v7385_v9 = vmax.f32 %v7353_v4, 0.0  ;;  %v9139_v17 = vpop.f32.mrb[68].mxu0  ;;  %v8226_v4 = vunpack.c.h.bf16 %v8348_v2 }
 0x45c   : > { %v8271_v29 = vpack.c.bf16 %v7387_v20, %v7386_v8  ;;  %v7250_v47 = vadd.f32 %v9139_v17, %v10911_v57  ;;  %v7241_v5 = vpop.f32.mrb[69].mxu0  ;;  %v8351_v17 = vld [vmem:[%s9681_s12 + $0x48] sm:$0xff]  }
 0x45d   : > { %v8266_v0 = vpack.c.bf16 %v7385_v9, %v7384_v10  ;;  %v7242_v48 = vadd.f32 %v10911_v57, %v7241_v5  ;;  %v9140_v7 = vpop.f32.mrb[70].mxu0 }
 0x45e   : > { %8358 = vst [vmem:[%s10924_s19 + $0x8] sm:$0xff] %v8271_v29   ;;  %v7358_v52 = vadd.f32 %v8213_v28, %v7250_v47  ;;  %v7253_v32 = vadd.f32 %v9140_v7, %v10911_v57  ;;  %v7244_v33 = vpop.f32.mrb[71].mxu0  ;;  %v8350_v29 = vld [vmem:[%s9681_s12 + $0x40] sm:$0xff]  }
 0x45f   : > { %8267 = vst [vmem:[%s10924_s19] sm:$0xff] %v8266_v0   ;;  %v7356_v36 = vadd.f32 %v8209_v63, %v7242_v48  ;;  %v7245_v34 = vadd.f32 %v10911_v57, %v7244_v33  ;;  %v8237_v0 = vunpack.c.l.bf16 %v8351_v17 }
 0x460   : > { %v7359_v53 = vadd.f32 %v8214_v27, %v7253_v32  ;;  %v7390_v12 = vmax.f32 %v7358_v52, 0.0  ;;  %v8233_v52 = vunpack.c.l.bf16 %v8350_v29 }
 0x461   : > { %v7357_v41 = vadd.f32 %v8210_v13, %v7245_v34  ;;  %v7388_v46 = vmax.f32 %v7356_v36, 0.0  ;;  %v8238_v34 = vunpack.c.h.bf16 %v8351_v17 }
 0x462   : > { %v7391_v23 = vmax.f32 %v7359_v53, 0.0 }
 0x463   : > { %v7389_v45 = vmax.f32 %v7357_v41, 0.0  ;;  %v9143_v61 = vpop.f32.mrb[72].mxu0  ;;  %v8234_v41 = vunpack.c.h.bf16 %v8350_v29 }
 0x464   : > { %v8281_v16 = vpack.c.bf16 %v7391_v23, %v7390_v12  ;;  %v7266_v58 = vadd.f32 %v9143_v61, %v10911_v57  ;;  %v7257_v50 = vpop.f32.mrb[73].mxu0  ;;  %v8353_v61 = vld [vmem:[%s9681_s12 + $0x58] sm:$0xff]  }
 0x465   : > { %v8276_v43 = vpack.c.bf16 %v7389_v45, %v7388_v46  ;;  %v7258_v59 = vadd.f32 %v10911_v57, %v7257_v50  ;;  %v9144_v21 = vpop.f32.mrb[74].mxu0 }
 0x466   : > { %8360 = vst [vmem:[%s10924_s19 + $0x18] sm:$0xff] %v8281_v16   ;;  %v7362_v42 = vadd.f32 %v8221_v1, %v7266_v58  ;;  %v7269_v14 = vadd.f32 %v9144_v21, %v10911_v57  ;;  %v7260_v18 = vpop.f32.mrb[75].mxu0  ;;  %v8352_v16 = vld [vmem:[%s9681_s12 + $0x50] sm:$0xff]  }
 0x467   : > { %8359 = vst [vmem:[%s10924_s19 + $0x10] sm:$0xff] %v8276_v43   ;;  %v7360_v3 = vadd.f32 %v8217_v51, %v7258_v59  ;;  %v7261_v44 = vadd.f32 %v10911_v57, %v7260_v18  ;;  %v8245_v43 = vunpack.c.l.bf16 %v8353_v61 }
 0x468   : > { %v7363_v6 = vadd.f32 %v8222_v30, %v7269_v14  ;;  %v7394_v35 = vmax.f32 %v7362_v42, 0.0  ;;  %v8241_v42 = vunpack.c.l.bf16 %v8352_v16 }
 0x469   : > { %v7361_v19 = vadd.f32 %v8218_v62, %v7261_v44  ;;  %v7392_v38 = vmax.f32 %v7360_v3, 0.0  ;;  %v8246_v44 = vunpack.c.h.bf16 %v8353_v61 }
 0x46a   : > { %v7395_v22 = vmax.f32 %v7363_v6, 0.0 }
 0x46b   : > { %v7393_v60 = vmax.f32 %v7361_v19, 0.0  ;;  %v9147_v40 = vpop.f32.mrb[76].mxu0  ;;  %v8242_v19 = vunpack.c.h.bf16 %v8352_v16 }
 0x46c   : > { %v8291_v24 = vpack.c.bf16 %v7395_v22, %v7394_v35  ;;  %v7282_v31 = vadd.f32 %v9147_v40, %v10911_v57  ;;  %v7273_v39 = vpop.f32.mrb[77].mxu0  ;;  %v8355_v40 = vld [vmem:[%s9681_s12 + $0x68] sm:$0xff]  }
 0x46d   : > { %v8286_v26 = vpack.c.bf16 %v7393_v60, %v7392_v38  ;;  %v7274_v25 = vadd.f32 %v10911_v57, %v7273_v39  ;;  %v9148_v56 = vpop.f32.mrb[78].mxu0 }
 0x46e   : > { %8362 = vst [vmem:[%s10924_s19 + $0x28] sm:$0xff] %v8291_v24   ;;  %v7366_v8 = vadd.f32 %v8229_v54, %v7282_v31  ;;  %v7285_v20 = vadd.f32 %v9148_v56, %v10911_v57  ;;  %v7276_v28 = vpop.f32.mrb[79].mxu0  ;;  %v8354_v24 = vld [vmem:[%s9681_s12 + $0x60] sm:$0xff]  }
 0x46f   : > { %8361 = vst [vmem:[%s10924_s19 + $0x20] sm:$0xff] %v8286_v26   ;;  %v7364_v10 = vadd.f32 %v8225_v55, %v7274_v25  ;;  %v7277_v9 = vadd.f32 %v10911_v57, %v7276_v28  ;;  %v8253_v26 = vunpack.c.l.bf16 %v8355_v40 }
 0x470   : > { %v7367_v63 = vadd.f32 %v8230_v15, %v7285_v20  ;;  %v7398_v5 = vmax.f32 %v7366_v8, 0.0  ;;  %v8249_v8 = vunpack.c.l.bf16 %v8354_v24 }
 0x471   : > { %v7365_v47 = vadd.f32 %v8226_v4, %v7277_v9  ;;  %v7396_v48 = vmax.f32 %v7364_v10, 0.0  ;;  %v8254_v9 = vunpack.c.h.bf16 %v8355_v40 }
 0x472   : > { %v7399_v27 = vmax.f32 %v7367_v63, 0.0 }
 0x473   : > { %v7397_v7 = vmax.f32 %v7365_v47, 0.0  ;;  %v9151_v13 = vpop.f32.mrb[80].mxu0  ;;  %v8250_v47 = vunpack.c.h.bf16 %v8354_v24 }
 0x474   : > { %v8301_v32 = vpack.c.bf16 %v7399_v27, %v7398_v5  ;;  %v7298_v33 = vadd.f32 %v9151_v13, %v10911_v57  ;;  %v7289_v36 = vpop.f32.mrb[81].mxu0  ;;  %v8357_v13 = vld [vmem:[%s9681_s12 + $0x78] sm:$0xff]  }
 0x475   : > { %v8296_v11 = vpack.c.bf16 %v7397_v7, %v7396_v48  ;;  %v7290_v53 = vadd.f32 %v10911_v57, %v7289_v36  ;;  %v9152_v37 = vpop.f32.mrb[82].mxu0 }
 0x476   : > { %8364 = vst [vmem:[%s10924_s19 + $0x38] sm:$0xff] %v8301_v32   ;;  %v7370_v12 = vadd.f32 %v8237_v0, %v7298_v33  ;;  %v7301_v23 = vadd.f32 %v9152_v37, %v10911_v57  ;;  %v7292_v1 = vpop.f32.mrb[83].mxu0  ;;  %v8356_v32 = vld [vmem:[%s9681_s12 + $0x70] sm:$0xff]  }
 0x477   : > { %8363 = vst [vmem:[%s10924_s19 + $0x30] sm:$0xff] %v8296_v11   ;;  %v7368_v46 = vadd.f32 %v8233_v52, %v7290_v53  ;;  %v7293_v45 = vadd.f32 %v10911_v57, %v7292_v1  ;;  %v8261_v11 = vunpack.c.l.bf16 %v8357_v13 }
 0x478   : > { %v7371_v51 = vadd.f32 %v8238_v34, %v7301_v23  ;;  %v7402_v50 = vmax.f32 %v7370_v12, 0.0  ;;  %v8257_v12 = vunpack.c.l.bf16 %v8356_v32 }
 0x479   : > { %v7369_v58 = vadd.f32 %v8234_v41, %v7293_v45  ;;  %v7400_v59 = vmax.f32 %v7368_v46, 0.0  ;;  %v8262_v45 = vunpack.c.h.bf16 %v8357_v13 }
 0x47a   : > { %v7403_v30 = vmax.f32 %v7371_v51, 0.0 }
 0x47b   : > { %v7401_v21 = vmax.f32 %v7369_v58, 0.0  ;;  %v9155_v62 = vpop.f32.mrb[84].mxu0  ;;  %v8258_v58 = vunpack.c.h.bf16 %v8356_v32 }
 0x47c   : > { %v8311_v14 = vpack.c.bf16 %v7403_v30, %v7402_v50  ;;  %v7314_v18 = vadd.f32 %v9155_v62, %v10911_v57  ;;  %v7305_v3 = vpop.f32.mrb[85].mxu0 }
 0x47d   : > { %v8306_v49 = vpack.c.bf16 %v7401_v21, %v7400_v59  ;;  %v7306_v6 = vadd.f32 %v10911_v57, %v7305_v3  ;;  %v9156_v2 = vpop.f32.mrb[86].mxu0 }
 0x47e   : > { %8366 = vst [vmem:[%s10924_s19 + $0x48] sm:$0xff] %v8311_v14   ;;  %v7374_v35 = vadd.f32 %v8245_v43, %v7314_v18  ;;  %v7317_v22 = vadd.f32 %v9156_v2, %v10911_v57  ;;  %v7308_v54 = vpop.f32.mrb[87].mxu0 }
 0x47f   : > { %8365 = vst [vmem:[%s10924_s19 + $0x40] sm:$0xff] %v8306_v49   ;;  %v7372_v38 = vadd.f32 %v8241_v42, %v7306_v6  ;;  %v7309_v60 = vadd.f32 %v10911_v57, %v7308_v54 }
 0x480   : > { %v7375_v55 = vadd.f32 %v8246_v44, %v7317_v22  ;;  %v7406_v39 = vmax.f32 %v7374_v35, 0.0 }
 0x481   : > { %v7373_v31 = vadd.f32 %v8242_v19, %v7309_v60  ;;  %v7404_v25 = vmax.f32 %v7372_v38, 0.0 }
 0x482   : > { %v7407_v15 = vmax.f32 %v7375_v55, 0.0 }
 0x483   : > { %v7405_v56 = vmax.f32 %v7373_v31, 0.0  ;;  %v9159_v4 = vpop.f32.mrb[88].mxu0 }
 0x484   : > { %v8321_v20 = vpack.c.bf16 %v7407_v15, %v7406_v39  ;;  %v7330_v28 = vadd.f32 %v9159_v4, %v10911_v57  ;;  %v7321_v10 = vpop.f32.mrb[89].mxu0 }
 0x485   : > { %v8316_v17 = vpack.c.bf16 %v7405_v56, %v7404_v25  ;;  %v7322_v63 = vadd.f32 %v10911_v57, %v7321_v10  ;;  %v9160_v29 = vpop.f32.mrb[90].mxu0 }
 0x486   : > { %8368 = vst [vmem:[%s10924_s19 + $0x58] sm:$0xff] %v8321_v20   ;;  %v7378_v5 = vadd.f32 %v8253_v26, %v7330_v28  ;;  %v7333_v27 = vadd.f32 %v9160_v29, %v10911_v57  ;;  %v7324_v0 = vpop.f32.mrb[91].mxu0 }
 0x487   : > { %8367 = vst [vmem:[%s10924_s19 + $0x50] sm:$0xff] %v8316_v17   ;;  %v7376_v48 = vadd.f32 %v8249_v8, %v7322_v63  ;;  %v7325_v7 = vadd.f32 %v10911_v57, %v7324_v0 }
 0x488   : > { %v7379_v52 = vadd.f32 %v8254_v9, %v7333_v27  ;;  %v7410_v36 = vmax.f32 %v7378_v5, 0.0 }
 0x489   : > { %v7377_v33 = vadd.f32 %v8250_v47, %v7325_v7  ;;  %v7408_v53 = vmax.f32 %v7376_v48, 0.0 }
 0x48a   : > { %v7411_v34 = vmax.f32 %v7379_v52, 0.0 }
 0x48b   : > { %v7409_v37 = vmax.f32 %v7377_v33, 0.0  ;;  %v9163_v41 = vpop.f32.mrb[92].mxu0 }
 0x48c   : > { %v8331_v23 = vpack.c.bf16 %v7411_v34, %v7410_v36  ;;  %v7346_v1 = vadd.f32 %v9163_v41, %v10911_v57  ;;  %v7337_v46 = vpop.f32.mrb[93].mxu0 }
 0x48d   : > { %v8326_v61 = vpack.c.bf16 %v7409_v37, %v7408_v53  ;;  %v7338_v51 = vadd.f32 %v10911_v57, %v7337_v46  ;;  %v9164_v16 = vpop.f32.mrb[94].mxu0 }
 0x48e   : > { %8370 = vst [vmem:[%s10924_s19 + $0x68] sm:$0xff] %v8331_v23   ;;  %v7382_v50 = vadd.f32 %v8261_v11, %v7346_v1  ;;  %v7349_v30 = vadd.f32 %v9164_v16, %v10911_v57  ;;  %v7340_v43 = vpop.f32.mrb[95].mxu0 }
 0x48f   : > { %8369 = vst [vmem:[%s10924_s19 + $0x60] sm:$0xff] %v8326_v61   ;;  %v7380_v59 = vadd.f32 %v8257_v12, %v7338_v51  ;;  %v7341_v21 = vadd.f32 %v10911_v57, %v7340_v43 }
 0x490   : > { %v7383_v62 = vadd.f32 %v8262_v45, %v7349_v30  ;;  %v7414_v14 = vmax.f32 %v7382_v50, 0.0 }
 0x491   : > { %v7381_v42 = vadd.f32 %v8258_v58, %v7341_v21  ;;  %v7412_v3 = vmax.f32 %v7380_v59, 0.0 }
 0x492   : > { %v7415_v18 = vmax.f32 %v7383_v62, 0.0 }
 0x493   : > { %v7413_v44 = vmax.f32 %v7381_v42, 0.0 }
 0x494   : > { %v8341_v49 = vpack.c.bf16 %v7415_v18, %v7414_v14 }
 0x495   : > { %v8336_v6 = vpack.c.bf16 %v7413_v44, %v7412_v3 }
 0x496   : > { %8372 = vst [vmem:[%s10924_s19 + $0x78] sm:$0xff] %v8341_v49  }
 0x497   : > { %8371 = vst [vmem:[%s10924_s19 + $0x70] sm:$0xff] %v8336_v6  }
 0x498 PF: > { %s17_s24 = sadd.s32 1, %s9613_s24  }
 0x499   : > { %p14_p4 = scmp.ge.s32.totalorder %s17_s24, 4  }
 0x49b   :  { %16 = sbr.rel (!%p14_p4) target bundleno = 1 (0x1), region = 89 }

</bundles_post_ra>
